<compile_context>
chip_gen: v7x
topology: tpu7x:2x2x1
jax: 0.10.0
libtpu: 0.0.40
codegen_flags: <defaults>
</compile_context>

<pallas_src>
import functools

import numpy as np

import jax
import jax.numpy as jnp
from jax import lax
from jax.experimental import pallas as pl
from jax.experimental.pallas import tpu as pltpu


def _primal_dual_kernel(lmbda_ref, nu_ref, f_ref, widx_ref, hidx_ref,
                        u_out_ref,
                        u_ref, ubar_ref, p1_ref, p2_ref, p3_ref, quad_ref,
                        s1_ref, s2_ref, mu1_ref, mu2_ref, mub1_ref, mub2_ref,
                        done_ref,
                        *, l, proj, repeats, img_h, img_w, n_valid, s_rows,
                        pairs):
    lmbda = lmbda_ref[0]
    nu = nu_ref[0]

    sigmap = 1.0 / (3.0 + l)
    # sigmas == 1.0 in the reference -> folded away.
    tauu = 1.0 / 6.0
    tau_mu = 1.0 / (2.0 + proj / 4.0)
    nrj_thresh = 5.0e-5 * float(img_w * img_h * l)   # avoids per-check divide

    pair_idx = {pr: K for K, pr in enumerate(pairs)}

    # ---------------- init (u = ubar = f, duals = 0) ----------------
    f = f_ref[...]                                         # (S, 128) f32
    u_ref[...] = jnp.broadcast_to(f[None], (l, s_rows, 128))
    ubar_ref[...] = jnp.broadcast_to(f[None], (l, s_rows, 128))
    # data term lmbda * (k/l - f)^2, k = 1..l, kept in VMEM scratch so it is
    # not a loop-carried SSA value.
    quad_ref[...] = jnp.stack(
        [lmbda * jnp.square(float(k + 1) / l - f) for k in range(l)], axis=0)
    zl = jnp.zeros((l, s_rows, 128), jnp.float32)
    zp = jnp.zeros((proj, s_rows, 128), jnp.float32)
    p1_ref[...] = zl
    p2_ref[...] = zl
    p3_ref[...] = zl
    s1_ref[...] = zp
    s2_ref[...] = zp
    mu1_ref[...] = zp
    mu2_ref[...] = zp
    mub1_ref[...] = zp
    mub2_ref[...] = zp
    done_ref[0] = jnp.int32(0)

    # ---------------- loop-invariant spatial boundary masks ----------------
    col = lax.broadcasted_iota(jnp.int32, (s_rows, 128), 1)   # lane index
    w_idx = widx_ref[...]
    h_idx = hidx_ref[...]
    last_w = w_idx == (img_w - 1)
    first_w = w_idx == 0
    last_h = h_idx == (img_h - 1)
    first_h = h_idx == 0
    if n_valid < s_rows * 128:
        row = lax.broadcasted_iota(jnp.int32, (s_rows, 128), 0)
        valid = (row * 128 + col) < n_valid
    else:
        valid = None

    # --- shifts in the flattened (C*H*W) axis via XLU lane/sublane rolls ---
    def _read_ahead(x, shift):
        """y[flat] = x[flat + shift]; garbage where flat+shift is out of range
        (callers mask those positions)."""
        q, rm = divmod(shift, 128)
        a = pltpu.roll(x, shift=(128 - rm) % 128, axis=x.ndim - 1) if rm else x

        def subroll(arr, k):
            k = k % s_rows
            if k == 0:
                return arr
            return pltpu.roll(arr, shift=(s_rows - k) % s_rows,
                              axis=arr.ndim - 2)

        lo = subroll(a, q)
        if rm == 0:
            return lo
        hi = subroll(a, q + 1)
        return jnp.where(col >= 128 - rm, hi, lo)

    def _read_behind(x, shift):
        """y[flat] = x[flat - shift]; garbage where flat-shift is out of range."""
        q, rm = divmod(shift, 128)
        a = pltpu.roll(x, shift=rm, axis=x.ndim - 1) if rm else x

        def subroll(arr, k):
            k = k % s_rows
            if k == 0:
                return arr
            return pltpu.roll(arr, shift=k, axis=arr.ndim - 2)

        lo = subroll(a, q)
        if rm == 0:
            return lo
        hi = subroll(a, q + 1)
        return jnp.where(col < rm, hi, lo)

    # --- O(l^2) label reductions (instead of O(l^3) direct sums) ---
    def _containing_pair_sums(m_full):
        # out[z] = sum over pairs (k1, k2) with k1 <= z <= k2 of m_full[K]
        # via per-row suffix sums.
        ss = {}
        for k1 in range(l):
            acc = None
            for j in range(l - 1, k1 - 1, -1):
                term = m_full[pair_idx[(k1, j)]]
                acc = term if acc is None else acc + term
                ss[(k1, j)] = acc
        outs = []
        for z in range(l):
            tot = ss[(0, z)]
            for k1 in range(1, z + 1):
                tot = tot + ss[(k1, z)]
            outs.append(tot)
        return jnp.stack(outs, axis=0)

    def _interval_sums(p_full):
        # out[K] = sum_{z=k1..k2} p_full[z]  via prefix sums.
        csum = [p_full[0]]
        for z in range(1, l):
            csum.append(csum[-1] + p_full[z])
        outs = []
        for (k1, k2) in pairs:
            outs.append(csum[k2] if k1 == 0 else csum[k2] - csum[k1 - 1])
        return jnp.stack(outs, axis=0)

    def _cos_third_arccos(t):
        # cos(arccos(t)/3) for t in [0, 1): relevant root of 4c^3 - 3c = t,
        # Newton from c = 1 (4 steps reach f32 precision; denominator > 0).
        # TODO(synk): swap for jnp.cos(jnp.arccos(t) / 3.0) if/when inverse-trig
        # lowering on Mosaic is guaranteed.
        c = jnp.ones_like(t)
        for _ in range(4):
            c = c - (4.0 * c * c * c - 3.0 * c - t) * pl.reciprocal(
                12.0 * c * c - 3.0, approx=True)
        return c

    # ---------------- the primal-dual iteration loop ----------------
    @pl.loop(0, repeats)
    def _(it):
        @pl.when(done_ref[0] == 0)   # reproduces the torch `break`
        def _():
            quad = quad_ref[...]

            # ---------- parabola (dual p update) ----------
            ubar = ubar_ref[...]
            du_h = jnp.where(last_h, 0.0, _read_ahead(ubar, img_w) - ubar)
            du_w = jnp.where(last_w, 0.0, _read_ahead(ubar, 1) - ubar)
            du_l = jnp.concatenate(
                [ubar[1:] - ubar[:-1], jnp.zeros_like(ubar[:1])], axis=0)

            mu1sum = _containing_pair_sums(mu1_ref[...])
            mu2sum = _containing_pair_sums(mu2_ref[...])

            u1 = p1_ref[...] + sigmap * (du_h + mu1sum)
            u2 = p2_ref[...] + sigmap * (du_w + mu2sum)
            u3 = p3_ref[...] + sigmap * du_l

            sumsq = u1 * u1 + u2 * u2
            mask = u3 < (0.25 * sumsq - quad)
            y = u3 + quad
            inv_norm = lax.rsqrt(jnp.where(sumsq == 0.0, 1.0, sumsq))
            norm = sumsq * inv_norm          # == sqrt(sumsq), 0 when sumsq==0
            a = 0.5 * norm
            b = (2.0 / 3.0) * (1.0 - 0.5 * y)
            snb = jnp.sqrt(jnp.maximum(-b, 0.0))
            s3 = snb * snb * snb
            d = jnp.where(b < 0.0, (a - s3) * (a + s3), a * a + b * b * b)
            c = jnp.power(a + jnp.sqrt(jnp.maximum(d, 0.0)), 1.0 / 3.0)
            mask1 = jnp.logical_and(d >= 0.0, c == 0.0)
            mask3 = d < 0.0
            v_trig = 2.0 * snb * _cos_third_arccos(
                a * pl.reciprocal(jnp.where(s3 == 0.0, 1.0, s3), approx=True))
            v_card = c - b * pl.reciprocal(jnp.where(c == 0.0, 1.0, c),
                                           approx=True)
            v = jnp.where(mask1, 0.0, jnp.where(mask3, v_trig, v_card))
            proj_scale = 2.0 * v * inv_norm          # v / (2*0.25) / norm
            p1n = jnp.where(mask,
                            jnp.where(norm == 0.0, 0.0, proj_scale * u1), u1)
            p2n = jnp.where(mask,
                            jnp.where(norm == 0.0, 0.0, proj_scale * u2), u2)
            p3n = jnp.where(mask, 0.25 * (p1n * p1n + p2n * p2n) - quad, u3)
            p1_ref[...] = p1n                 # store as soon as final
            p2_ref[...] = p2n
            p3_ref[...] = p3n

            # ---------- l2 projection (dual s update) ----------
            m1 = s1_ref[...] - mub1_ref[...]          # sigmas == 1.0
            m2 = s2_ref[...] - mub2_ref[...]
            msq = m1 * m1 + m2 * m2
            inv_mn = lax.rsqrt(jnp.where(msq == 0.0, 1.0, msq))
            mnorm = msq * inv_mn
            pmask = mnorm > nu
            s1n = jnp.where(pmask, m1 * (nu * inv_mn), m1)
            s2n = jnp.where(pmask, m2 * (nu * inv_mn), m2)
            s1_ref[...] = s1n
            s2_ref[...] = s2n

            # ---------- mu update ----------
            t1 = _interval_sums(p1n)
            t2 = _interval_sums(p2n)
            mu1 = mu1_ref[...]
            mu2 = mu2_ref[...]
            mu1n = mu1 + tau_mu * (s1n - t1)
            mu2n = mu2 + tau_mu * (s2n - t2)
            mub1_ref[...] = 2.0 * mu1n - mu1
            mub2_ref[...] = 2.0 * mu2n - mu2
            mu1_ref[...] = mu1n
            mu2_ref[...] = mu2n

            # ---------- clipping (primal u update) ----------
            tm_h = jnp.where(last_h, 0.0, p1n)
            d1 = tm_h - jnp.where(first_h, 0.0, _read_behind(tm_h, img_w))
            tm_w = jnp.where(last_w, 0.0, p2n)
            d2 = tm_w - jnp.where(first_w, 0.0, _read_behind(tm_w, 1))
            zero_l = jnp.zeros_like(p3n[:1])
            head = p3n[:l - 1]
            d3 = (jnp.concatenate([head, zero_l], axis=0)
                  - jnp.concatenate([zero_l, head], axis=0))

            u_old = u_ref[...]
            un = jnp.clip(u_old + tauu * (d1 + d2 + d3), 0.0, 1.0)
            parts = [jnp.ones_like(un[:1])]        # u[..., 0] = 1
            if l > 2:
                parts.append(un[1:l - 1])
            parts.append(jnp.zeros_like(un[:1]))   # u[..., l-1] = 0
            un = jnp.concatenate(parts, axis=0)
            u_ref[...] = un
            ubar_ref[...] = 2.0 * un - u_old

            # ---------- energy / early stop (only every 10th iteration) ----
            @pl.when(it % 10 == 0)
            def _():
                diff = jnp.abs(un - u_old)
                if valid is not None:
                    diff = jnp.where(valid, diff, 0.0)
                nrj = jnp.sum(diff)
                done_ref[0] = (nrj <= nrj_thresh).astype(jnp.int32)

    u_out_ref[...] = u_ref[...]


def _vmem_limit_bytes():
    # ~75% of physical VMEM, capped at 100 MiB: ~96 MiB on v5e/v6e (128 MiB),
    # ~48 MiB on v7x (64 MiB).  Conservative fallback if the query fails.
    try:
        cap = int(pltpu.get_tpu_info().vmem_capacity_bytes)
    except Exception:
        cap = 64 * 1024 * 1024
    if cap <= 0:
        cap = 64 * 1024 * 1024
    return min((cap * 3) // 4, 100 * 1024 * 1024)


def primal_dual(f_hwc, repeats, l, lmbda, nu):
    """f_hwc: (H, W, C) float32.  Returns u: (H, W, C, L) float32 (torch layout)."""
    img_h, img_w, nc = f_hwc.shape
    l = int(l)
    repeats = int(repeats)
    proj = l * (l - 1) // 2 + l
    pairs = tuple((k1, k2) for k1 in range(l) for k2 in range(k1, l))

    # lane-dense flat spatial layout: flat = c*H*W + h*W + w, padded to S*128
    n_valid = nc * img_h * img_w
    s_rows = max(1, -(-n_valid // 128))
    spad = s_rows * 128

    f_flat = jnp.transpose(f_hwc.astype(jnp.float32), (2, 0, 1)).reshape(-1)
    if spad > n_valid:
        f_flat = jnp.pad(f_flat, (0, spad - n_valid))
    f_tiles = f_flat.reshape(s_rows, 128)

    # per-flat-position image coordinates (host precomputed: no vector int
    # div/mod inside the kernel)
    flat_np = np.arange(spad, dtype=np.int64)
    w_idx = jnp.asarray((flat_np % img_w).reshape(s_rows, 128), jnp.int32)
    h_idx = jnp.asarray(((flat_np // img_w) % img_h).reshape(s_rows, 128),
                        jnp.int32)

    kernel = functools.partial(
        _primal_dual_kernel, l=l, proj=proj, repeats=repeats,
        img_h=img_h, img_w=img_w, n_valid=n_valid, s_rows=s_rows, pairs=pairs)

    u_tiles = pl.pallas_call(
        kernel,
        out_shape=jax.ShapeDtypeStruct((l, s_rows, 128), jnp.float32),
        in_specs=[
            pl.BlockSpec(memory_space=pltpu.MemorySpace.SMEM),   # lmbda (1,)
            pl.BlockSpec(memory_space=pltpu.MemorySpace.SMEM),   # nu    (1,)
            pl.BlockSpec(memory_space=pltpu.MemorySpace.VMEM),   # f (S,128)
            pl.BlockSpec(memory_space=pltpu.MemorySpace.VMEM),   # w_idx
            pl.BlockSpec(memory_space=pltpu.MemorySpace.VMEM),   # h_idx
        ],
        out_specs=pl.BlockSpec(memory_space=pltpu.MemorySpace.VMEM),
        scratch_shapes=[
            pltpu.VMEM((l, s_rows, 128), jnp.float32),      # u
            pltpu.VMEM((l, s_rows, 128), jnp.float32),      # ubar
            pltpu.VMEM((l, s_rows, 128), jnp.float32),      # p1
            pltpu.VMEM((l, s_rows, 128), jnp.float32),      # p2
            pltpu.VMEM((l, s_rows, 128), jnp.float32),      # p3
            pltpu.VMEM((l, s_rows, 128), jnp.float32),      # quad (data term)
            pltpu.VMEM((proj, s_rows, 128), jnp.float32),   # s1
            pltpu.VMEM((proj, s_rows, 128), jnp.float32),   # s2
            pltpu.VMEM((proj, s_rows, 128), jnp.float32),   # mu1
            pltpu.VMEM((proj, s_rows, 128), jnp.float32),   # mu2
            pltpu.VMEM((proj, s_rows, 128), jnp.float32),   # mubar1
            pltpu.VMEM((proj, s_rows, 128), jnp.float32),   # mubar2
            pltpu.SMEM((1,), jnp.int32),                    # done / break flag
        ],
        compiler_params=pltpu.CompilerParams(
            vmem_limit_bytes=_vmem_limit_bytes()),
    )(jnp.asarray([lmbda], jnp.float32), jnp.asarray([nu], jnp.float32),
      f_tiles, w_idx, h_idx)

    # back to torch layout (H, W, C, L)
    u_flat = u_tiles.reshape(l, spad)[:, :n_valid].reshape(l, nc, img_h, img_w)
    return jnp.transpose(u_flat, (2, 3, 1, 0))


if __name__ == "__main__":
    key = jax.random.PRNGKey(0)
    h, w, nc, l = 16, 16, 1, 4
    repeats = 12
    lmbda, nu = 0.5, 0.1

    f = jax.random.uniform(key, (h, w, nc), dtype=jnp.float32)

    u = primal_dual(f, repeats, l, lmbda, nu)
    u = jax.block_until_ready(u)

    assert u.shape == (h, w, nc, l)
    assert bool(jnp.all(jnp.isfinite(u)))
    # torch forward forces u[..., 0] = 1 and u[..., l-1] = 0 every iteration
    assert bool(jnp.all(u[:, :, :, 0] == 1.0))
    assert bool(jnp.all(u[:, :, :, l - 1] == 0.0))
    print("KERNEL_OK")
</pallas_src>

<mosaic_0001>
module attributes {stable_mosaic.version = 11 : i64} {
  func.func @_primal_dual_kernel(%arg0: memref<1xf32, #tpu.memory_space<smem>>, %arg1: memref<1xf32, #tpu.memory_space<smem>>, %arg2: memref<2x128xf32, #tpu.memory_space<vmem>>, %arg3: memref<2x128xi32, #tpu.memory_space<vmem>>, %arg4: memref<2x128xi32, #tpu.memory_space<vmem>>, %arg5: memref<4x2x128xf32, #tpu.memory_space<vmem>>, %arg6: memref<4x2x128xf32, #tpu.memory_space<vmem>>, %arg7: memref<4x2x128xf32, #tpu.memory_space<vmem>>, %arg8: memref<4x2x128xf32, #tpu.memory_space<vmem>>, %arg9: memref<4x2x128xf32, #tpu.memory_space<vmem>>, %arg10: memref<4x2x128xf32, #tpu.memory_space<vmem>>, %arg11: memref<4x2x128xf32, #tpu.memory_space<vmem>>, %arg12: memref<10x2x128xf32, #tpu.memory_space<vmem>>, %arg13: memref<10x2x128xf32, #tpu.memory_space<vmem>>, %arg14: memref<10x2x128xf32, #tpu.memory_space<vmem>>, %arg15: memref<10x2x128xf32, #tpu.memory_space<vmem>>, %arg16: memref<10x2x128xf32, #tpu.memory_space<vmem>>, %arg17: memref<10x2x128xf32, #tpu.memory_space<vmem>>, %arg18: memref<1xi32, #tpu.memory_space<smem>>) attributes {dimension_semantics = [], scalar_prefetch = 0 : i64, scratch_operands = 13 : i64, tpu.core_type = #tpu.core_type<tc>} {
    %c0 = arith.constant 0 : index
    %0 = memref.load %arg0[%c0] : memref<1xf32, #tpu.memory_space<smem>>
    %c0_0 = arith.constant 0 : index
    %1 = memref.load %arg1[%c0_0] : memref<1xf32, #tpu.memory_space<smem>>
    %c0_1 = arith.constant 0 : index
    %c0_2 = arith.constant 0 : index
    %2 = vector.load %arg2[%c0_1, %c0_2] : memref<2x128xf32, #tpu.memory_space<vmem>>, vector<2x128xf32>
    %3 = vector.shape_cast %2 : vector<2x128xf32> to vector<1x2x128xf32>
    %4 = vector.shape_cast %3 : vector<1x2x128xf32> to vector<1x2x128xf32>
    %5 = vector.broadcast %4 : vector<1x2x128xf32> to vector<4x2x128xf32>
    %c0_3 = arith.constant 0 : index
    %c0_4 = arith.constant 0 : index
    %c0_5 = arith.constant 0 : index
    %6 = vector.load %arg6[%c0_3, %c0_4, %c0_5] : memref<4x2x128xf32, #tpu.memory_space<vmem>>, vector<4x2x128xf32>
    tpu.vector_store %arg6[%c0_3, %c0_4, %c0_5], %5 {strides = array<i32>} : memref<4x2x128xf32, #tpu.memory_space<vmem>>, vector<4x2x128xf32>,
    %7 = vector.shape_cast %2 : vector<2x128xf32> to vector<1x2x128xf32>
    %8 = vector.shape_cast %7 : vector<1x2x128xf32> to vector<1x2x128xf32>
    %9 = vector.broadcast %8 : vector<1x2x128xf32> to vector<4x2x128xf32>
    %c0_6 = arith.constant 0 : index
    %c0_7 = arith.constant 0 : index
    %c0_8 = arith.constant 0 : index
    %10 = vector.load %arg7[%c0_6, %c0_7, %c0_8] : memref<4x2x128xf32, #tpu.memory_space<vmem>>, vector<4x2x128xf32>
    tpu.vector_store %arg7[%c0_6, %c0_7, %c0_8], %9 {strides = array<i32>} : memref<4x2x128xf32, #tpu.memory_space<vmem>>, vector<4x2x128xf32>,
    %cst = arith.constant 2.500000e-01 : f32
    %11 = vector.broadcast %cst : f32 to vector<2x128xf32>
    %12 = arith.subf %11, %2 : vector<2x128xf32>
    %13 = arith.mulf %12, %12 : vector<2x128xf32>
    %14 = vector.broadcast %0 : f32 to vector<2x128xf32>
    %15 = arith.mulf %14, %13 : vector<2x128xf32>
    %cst_9 = arith.constant 5.000000e-01 : f32
    %16 = vector.broadcast %cst_9 : f32 to vector<2x128xf32>
    %17 = arith.subf %16, %2 : vector<2x128xf32>
    %18 = arith.mulf %17, %17 : vector<2x128xf32>
    %19 = vector.broadcast %0 : f32 to vector<2x128xf32>
    %20 = arith.mulf %19, %18 : vector<2x128xf32>
    %cst_10 = arith.constant 7.500000e-01 : f32
    %21 = vector.broadcast %cst_10 : f32 to vector<2x128xf32>
    %22 = arith.subf %21, %2 : vector<2x128xf32>
    %23 = arith.mulf %22, %22 : vector<2x128xf32>
    %24 = vector.broadcast %0 : f32 to vector<2x128xf32>
    %25 = arith.mulf %24, %23 : vector<2x128xf32>
    %cst_11 = arith.constant 1.000000e+00 : f32
    %26 = vector.broadcast %cst_11 : f32 to vector<2x128xf32>
    %27 = arith.subf %26, %2 : vector<2x128xf32>
    %28 = arith.mulf %27, %27 : vector<2x128xf32>
    %29 = vector.broadcast %0 : f32 to vector<2x128xf32>
    %30 = arith.mulf %29, %28 : vector<2x128xf32>
    %31 = vector.shape_cast %15 : vector<2x128xf32> to vector<1x2x128xf32>
    %32 = vector.shape_cast %20 : vector<2x128xf32> to vector<1x2x128xf32>
    %33 = vector.shape_cast %25 : vector<2x128xf32> to vector<1x2x128xf32>
    %34 = vector.shape_cast %30 : vector<2x128xf32> to vector<1x2x128xf32>
    %35 = tpu.concatenate %31, %32, %33, %34 in 0 : vector<1x2x128xf32>, vector<1x2x128xf32>, vector<1x2x128xf32>, vector<1x2x128xf32> -> vector<4x2x128xf32>
    %c0_12 = arith.constant 0 : index
    %c0_13 = arith.constant 0 : index
    %c0_14 = arith.constant 0 : index
    %36 = vector.load %arg11[%c0_12, %c0_13, %c0_14] : memref<4x2x128xf32, #tpu.memory_space<vmem>>, vector<4x2x128xf32>
    tpu.vector_store %arg11[%c0_12, %c0_13, %c0_14], %35 {strides = array<i32>} : memref<4x2x128xf32, #tpu.memory_space<vmem>>, vector<4x2x128xf32>,
    %cst_15 = arith.constant 0.000000e+00 : f32
    %37 = vector.broadcast %cst_15 : f32 to vector<4x2x128xf32>
    %cst_16 = arith.constant 0.000000e+00 : f32
    %38 = vector.broadcast %cst_16 : f32 to vector<10x2x128xf32>
    %c0_17 = arith.constant 0 : index
    %c0_18 = arith.constant 0 : index
    %c0_19 = arith.constant 0 : index
    %39 = vector.load %arg8[%c0_17, %c0_18, %c0_19] : memref<4x2x128xf32, #tpu.memory_space<vmem>>, vector<4x2x128xf32>
    tpu.vector_store %arg8[%c0_17, %c0_18, %c0_19], %37 {strides = array<i32>} : memref<4x2x128xf32, #tpu.memory_space<vmem>>, vector<4x2x128xf32>,
    %c0_20 = arith.constant 0 : index
    %c0_21 = arith.constant 0 : index
    %c0_22 = arith.constant 0 : index
    %40 = vector.load %arg9[%c0_20, %c0_21, %c0_22] : memref<4x2x128xf32, #tpu.memory_space<vmem>>, vector<4x2x128xf32>
    tpu.vector_store %arg9[%c0_20, %c0_21, %c0_22], %37 {strides = array<i32>} : memref<4x2x128xf32, #tpu.memory_space<vmem>>, vector<4x2x128xf32>,
    %c0_23 = arith.constant 0 : index
    %c0_24 = arith.constant 0 : index
    %c0_25 = arith.constant 0 : index
    %41 = vector.load %arg10[%c0_23, %c0_24, %c0_25] : memref<4x2x128xf32, #tpu.memory_space<vmem>>, vector<4x2x128xf32>
    tpu.vector_store %arg10[%c0_23, %c0_24, %c0_25], %37 {strides = array<i32>} : memref<4x2x128xf32, #tpu.memory_space<vmem>>, vector<4x2x128xf32>,
    %c0_26 = arith.constant 0 : index
    %c0_27 = arith.constant 0 : index
    %c0_28 = arith.constant 0 : index
    %42 = vector.load %arg12[%c0_26, %c0_27, %c0_28] : memref<10x2x128xf32, #tpu.memory_space<vmem>>, vector<10x2x128xf32>
    tpu.vector_store %arg12[%c0_26, %c0_27, %c0_28], %38 {strides = array<i32>} : memref<10x2x128xf32, #tpu.memory_space<vmem>>, vector<10x2x128xf32>,
    %c0_29 = arith.constant 0 : index
    %c0_30 = arith.constant 0 : index
    %c0_31 = arith.constant 0 : index
    %43 = vector.load %arg13[%c0_29, %c0_30, %c0_31] : memref<10x2x128xf32, #tpu.memory_space<vmem>>, vector<10x2x128xf32>
    tpu.vector_store %arg13[%c0_29, %c0_30, %c0_31], %38 {strides = array<i32>} : memref<10x2x128xf32, #tpu.memory_space<vmem>>, vector<10x2x128xf32>,
    %c0_32 = arith.constant 0 : index
    %c0_33 = arith.constant 0 : index
    %c0_34 = arith.constant 0 : index
    %44 = vector.load %arg14[%c0_32, %c0_33, %c0_34] : memref<10x2x128xf32, #tpu.memory_space<vmem>>, vector<10x2x128xf32>
    tpu.vector_store %arg14[%c0_32, %c0_33, %c0_34], %38 {strides = array<i32>} : memref<10x2x128xf32, #tpu.memory_space<vmem>>, vector<10x2x128xf32>,
    %c0_35 = arith.constant 0 : index
    %c0_36 = arith.constant 0 : index
    %c0_37 = arith.constant 0 : index
    %45 = vector.load %arg15[%c0_35, %c0_36, %c0_37] : memref<10x2x128xf32, #tpu.memory_space<vmem>>, vector<10x2x128xf32>
    tpu.vector_store %arg15[%c0_35, %c0_36, %c0_37], %38 {strides = array<i32>} : memref<10x2x128xf32, #tpu.memory_space<vmem>>, vector<10x2x128xf32>,
    %c0_38 = arith.constant 0 : index
    %c0_39 = arith.constant 0 : index
    %c0_40 = arith.constant 0 : index
    %46 = vector.load %arg16[%c0_38, %c0_39, %c0_40] : memref<10x2x128xf32, #tpu.memory_space<vmem>>, vector<10x2x128xf32>
    tpu.vector_store %arg16[%c0_38, %c0_39, %c0_40], %38 {strides = array<i32>} : memref<10x2x128xf32, #tpu.memory_space<vmem>>, vector<10x2x128xf32>,
    %c0_41 = arith.constant 0 : index
    %c0_42 = arith.constant 0 : index
    %c0_43 = arith.constant 0 : index
    %47 = vector.load %arg17[%c0_41, %c0_42, %c0_43] : memref<10x2x128xf32, #tpu.memory_space<vmem>>, vector<10x2x128xf32>
    tpu.vector_store %arg17[%c0_41, %c0_42, %c0_43], %38 {strides = array<i32>} : memref<10x2x128xf32, #tpu.memory_space<vmem>>, vector<10x2x128xf32>,
    %c0_i32 = arith.constant 0 : i32
    %c0_44 = arith.constant 0 : index
    %48 = memref.load %arg18[%c0_44] : memref<1xi32, #tpu.memory_space<smem>>
    memref.store %c0_i32, %arg18[%c0_44] : memref<1xi32, #tpu.memory_space<smem>>
    %49 = tpu.iota {dimensions = array<i32: 1>} : vector<2x128xi32>
    %c0_45 = arith.constant 0 : index
    %c0_46 = arith.constant 0 : index
    %50 = vector.load %arg3[%c0_45, %c0_46] : memref<2x128xi32, #tpu.memory_space<vmem>>, vector<2x128xi32>
    %c0_47 = arith.constant 0 : index
    %c0_48 = arith.constant 0 : index
    %51 = vector.load %arg4[%c0_47, %c0_48] : memref<2x128xi32, #tpu.memory_space<vmem>>, vector<2x128xi32>
    %c15_i32 = arith.constant 15 : i32
    %52 = vector.broadcast %c15_i32 : i32 to vector<2x128xi32>
    %53 = arith.cmpi eq, %50, %52 : vector<2x128xi32>
    %c0_i32_49 = arith.constant 0 : i32
    %54 = vector.broadcast %c0_i32_49 : i32 to vector<2x128xi32>
    %55 = arith.cmpi eq, %50, %54 : vector<2x128xi32>
    %c15_i32_50 = arith.constant 15 : i32
    %56 = vector.broadcast %c15_i32_50 : i32 to vector<2x128xi32>
    %57 = arith.cmpi eq, %51, %56 : vector<2x128xi32>
    %c0_i32_51 = arith.constant 0 : i32
    %58 = vector.broadcast %c0_i32_51 : i32 to vector<2x128xi32>
    %59 = arith.cmpi eq, %51, %58 : vector<2x128xi32>
    %c0_i32_52 = arith.constant 0 : i32
    %c12_i32 = arith.constant 12 : i32
    %60 = arith.addi %c0_i32_52, %c12_i32 : i32
    %c1_i32 = arith.constant 1 : i32
    scf.for %arg19 = %c0_i32_52 to %60 step %c1_i32  : i32 {
      %c1_i32_60 = arith.constant 1 : i32
      %63 = arith.muli %arg19, %c1_i32_60 : i32
      %c0_i32_61 = arith.constant 0 : i32
      %64 = arith.addi %c0_i32_61, %63 : i32
      %c0_62 = arith.constant 0 : index
      %65 = memref.load %arg18[%c0_62] : memref<1xi32, #tpu.memory_space<smem>>
      %c0_i32_63 = arith.constant 0 : i32
      %66 = arith.cmpi eq, %65, %c0_i32_63 : i32
      %67 = arith.extui %66 : i1 to i32
      %c0_i32_64 = arith.constant 0 : i32
      %68 = arith.cmpi ne, %67, %c0_i32_64 : i32
      scf.if %68 {
        %c0_65 = arith.constant 0 : index
        %c0_66 = arith.constant 0 : index
        %c0_67 = arith.constant 0 : index
        %69 = vector.load %arg11[%c0_65, %c0_66, %c0_67] : memref<4x2x128xf32, #tpu.memory_space<vmem>>, vector<4x2x128xf32>
        %c0_68 = arith.constant 0 : index
        %c0_69 = arith.constant 0 : index
        %c0_70 = arith.constant 0 : index
        %70 = vector.load %arg7[%c0_68, %c0_69, %c0_70] : memref<4x2x128xf32, #tpu.memory_space<vmem>>, vector<4x2x128xf32>
        %c112_i32 = arith.constant 112 : i32
        %71 = tpu.dynamic_rotate %70 by %c112_i32 dim 2 : vector<4x2x128xf32>, i32 -> vector<4x2x128xf32>
        %c1_i32_71 = arith.constant 1 : i32
        %72 = tpu.dynamic_rotate %71 by %c1_i32_71 dim 1 : vector<4x2x128xf32>, i32 -> vector<4x2x128xf32>
        %c112_i32_72 = arith.constant 112 : i32
        %73 = vector.broadcast %c112_i32_72 : i32 to vector<2x128xi32>
        %74 = arith.cmpi sge, %49, %73 : vector<2x128xi32>
        %75 = vector.shape_cast %74 : vector<2x128xi1> to vector<1x2x128xi1>
        %76 = vector.broadcast %75 : vector<1x2x128xi1> to vector<4x2x128xi1>
        %77 = arith.select %76, %72, %71 : vector<4x2x128xi1>, vector<4x2x128xf32>
        %78 = arith.subf %77, %70 : vector<4x2x128xf32>
        %cst_73 = arith.constant 0.000000e+00 : f32
        %79 = vector.shape_cast %57 : vector<2x128xi1> to vector<1x2x128xi1>
        %80 = vector.broadcast %79 : vector<1x2x128xi1> to vector<4x2x128xi1>
        %81 = vector.broadcast %cst_73 : f32 to vector<4x2x128xf32>
        %82 = arith.select %80, %81, %78 : vector<4x2x128xi1>, vector<4x2x128xf32>
        %c127_i32 = arith.constant 127 : i32
        %83 = tpu.dynamic_rotate %70 by %c127_i32 dim 2 : vector<4x2x128xf32>, i32 -> vector<4x2x128xf32>
        %c1_i32_74 = arith.constant 1 : i32
        %84 = tpu.dynamic_rotate %83 by %c1_i32_74 dim 1 : vector<4x2x128xf32>, i32 -> vector<4x2x128xf32>
        %c127_i32_75 = arith.constant 127 : i32
        %85 = vector.broadcast %c127_i32_75 : i32 to vector<2x128xi32>
        %86 = arith.cmpi sge, %49, %85 : vector<2x128xi32>
        %87 = vector.shape_cast %86 : vector<2x128xi1> to vector<1x2x128xi1>
        %88 = vector.broadcast %87 : vector<1x2x128xi1> to vector<4x2x128xi1>
        %89 = arith.select %88, %84, %83 : vector<4x2x128xi1>, vector<4x2x128xf32>
        %90 = arith.subf %89, %70 : vector<4x2x128xf32>
        %cst_76 = arith.constant 0.000000e+00 : f32
        %91 = vector.shape_cast %53 : vector<2x128xi1> to vector<1x2x128xi1>
        %92 = vector.broadcast %91 : vector<1x2x128xi1> to vector<4x2x128xi1>
        %93 = vector.broadcast %cst_76 : f32 to vector<4x2x128xf32>
        %94 = arith.select %92, %93, %90 : vector<4x2x128xi1>, vector<4x2x128xf32>
        %95 = vector.extract_strided_slice %70 {offsets = [1, 0, 0], sizes = [3, 2, 128], strides = [1, 1, 1]} : vector<4x2x128xf32> to vector<3x2x128xf32>
        %96 = vector.extract_strided_slice %70 {offsets = [0, 0, 0], sizes = [3, 2, 128], strides = [1, 1, 1]} : vector<4x2x128xf32> to vector<3x2x128xf32>
        %97 = arith.subf %95, %96 : vector<3x2x128xf32>
        %cst_77 = arith.constant 0.000000e+00 : f32
        %98 = vector.broadcast %cst_77 : f32 to vector<1x2x128xf32>
        %99 = tpu.concatenate %97, %98 in 0 : vector<3x2x128xf32>, vector<1x2x128xf32> -> vector<4x2x128xf32>
        %c0_78 = arith.constant 0 : index
        %c0_79 = arith.constant 0 : index
        %c0_80 = arith.constant 0 : index
        %100 = vector.load %arg14[%c0_78, %c0_79, %c0_80] : memref<10x2x128xf32, #tpu.memory_space<vmem>>, vector<10x2x128xf32>
        %101 = vector.extract_strided_slice %100 {offsets = [3, 0, 0], sizes = [1, 2, 128], strides = [1, 1, 1]} : vector<10x2x128xf32> to vector<1x2x128xf32>
        %102 = vector.shape_cast %101 : vector<1x2x128xf32> to vector<2x128xf32>
        %103 = vector.extract_strided_slice %100 {offsets = [2, 0, 0], sizes = [1, 2, 128], strides = [1, 1, 1]} : vector<10x2x128xf32> to vector<1x2x128xf32>
        %104 = vector.shape_cast %103 : vector<1x2x128xf32> to vector<2x128xf32>
        %105 = arith.addf %102, %104 : vector<2x128xf32>
        %106 = vector.extract_strided_slice %100 {offsets = [1, 0, 0], sizes = [1, 2, 128], strides = [1, 1, 1]} : vector<10x2x128xf32> to vector<1x2x128xf32>
        %107 = vector.shape_cast %106 : vector<1x2x128xf32> to vector<2x128xf32>
        %108 = arith.addf %105, %107 : vector<2x128xf32>
        %109 = vector.extract_strided_slice %100 {offsets = [0, 0, 0], sizes = [1, 2, 128], strides = [1, 1, 1]} : vector<10x2x128xf32> to vector<1x2x128xf32>
        %110 = vector.shape_cast %109 : vector<1x2x128xf32> to vector<2x128xf32>
        %111 = arith.addf %108, %110 : vector<2x128xf32>
        %112 = vector.extract_strided_slice %100 {offsets = [6, 0, 0], sizes = [1, 2, 128], strides = [1, 1, 1]} : vector<10x2x128xf32> to vector<1x2x128xf32>
        %113 = vector.shape_cast %112 : vector<1x2x128xf32> to vector<2x128xf32>
        %114 = vector.extract_strided_slice %100 {offsets = [5, 0, 0], sizes = [1, 2, 128], strides = [1, 1, 1]} : vector<10x2x128xf32> to vector<1x2x128xf32>
        %115 = vector.shape_cast %114 : vector<1x2x128xf32> to vector<2x128xf32>
        %116 = arith.addf %113, %115 : vector<2x128xf32>
        %117 = vector.extract_strided_slice %100 {offsets = [4, 0, 0], sizes = [1, 2, 128], strides = [1, 1, 1]} : vector<10x2x128xf32> to vector<1x2x128xf32>
        %118 = vector.shape_cast %117 : vector<1x2x128xf32> to vector<2x128xf32>
        %119 = arith.addf %116, %118 : vector<2x128xf32>
        %120 = vector.extract_strided_slice %100 {offsets = [8, 0, 0], sizes = [1, 2, 128], strides = [1, 1, 1]} : vector<10x2x128xf32> to vector<1x2x128xf32>
        %121 = vector.shape_cast %120 : vector<1x2x128xf32> to vector<2x128xf32>
        %122 = vector.extract_strided_slice %100 {offsets = [7, 0, 0], sizes = [1, 2, 128], strides = [1, 1, 1]} : vector<10x2x128xf32> to vector<1x2x128xf32>
        %123 = vector.shape_cast %122 : vector<1x2x128xf32> to vector<2x128xf32>
        %124 = arith.addf %121, %123 : vector<2x128xf32>
        %125 = vector.extract_strided_slice %100 {offsets = [9, 0, 0], sizes = [1, 2, 128], strides = [1, 1, 1]} : vector<10x2x128xf32> to vector<1x2x128xf32>
        %126 = vector.shape_cast %125 : vector<1x2x128xf32> to vector<2x128xf32>
        %127 = arith.addf %108, %119 : vector<2x128xf32>
        %128 = arith.addf %105, %116 : vector<2x128xf32>
        %129 = arith.addf %128, %124 : vector<2x128xf32>
        %130 = arith.addf %102, %113 : vector<2x128xf32>
        %131 = arith.addf %130, %121 : vector<2x128xf32>
        %132 = arith.addf %131, %126 : vector<2x128xf32>
        %133 = vector.shape_cast %111 : vector<2x128xf32> to vector<1x2x128xf32>
        %134 = vector.shape_cast %127 : vector<2x128xf32> to vector<1x2x128xf32>
        %135 = vector.shape_cast %129 : vector<2x128xf32> to vector<1x2x128xf32>
        %136 = vector.shape_cast %132 : vector<2x128xf32> to vector<1x2x128xf32>
        %137 = tpu.concatenate %133, %134, %135, %136 in 0 : vector<1x2x128xf32>, vector<1x2x128xf32>, vector<1x2x128xf32>, vector<1x2x128xf32> -> vector<4x2x128xf32>
        %c0_81 = arith.constant 0 : index
        %c0_82 = arith.constant 0 : index
        %c0_83 = arith.constant 0 : index
        %138 = vector.load %arg15[%c0_81, %c0_82, %c0_83] : memref<10x2x128xf32, #tpu.memory_space<vmem>>, vector<10x2x128xf32>
        %139 = vector.extract_strided_slice %138 {offsets = [3, 0, 0], sizes = [1, 2, 128], strides = [1, 1, 1]} : vector<10x2x128xf32> to vector<1x2x128xf32>
        %140 = vector.shape_cast %139 : vector<1x2x128xf32> to vector<2x128xf32>
        %141 = vector.extract_strided_slice %138 {offsets = [2, 0, 0], sizes = [1, 2, 128], strides = [1, 1, 1]} : vector<10x2x128xf32> to vector<1x2x128xf32>
        %142 = vector.shape_cast %141 : vector<1x2x128xf32> to vector<2x128xf32>
        %143 = arith.addf %140, %142 : vector<2x128xf32>
        %144 = vector.extract_strided_slice %138 {offsets = [1, 0, 0], sizes = [1, 2, 128], strides = [1, 1, 1]} : vector<10x2x128xf32> to vector<1x2x128xf32>
        %145 = vector.shape_cast %144 : vector<1x2x128xf32> to vector<2x128xf32>
        %146 = arith.addf %143, %145 : vector<2x128xf32>
        %147 = vector.extract_strided_slice %138 {offsets = [0, 0, 0], sizes = [1, 2, 128], strides = [1, 1, 1]} : vector<10x2x128xf32> to vector<1x2x128xf32>
        %148 = vector.shape_cast %147 : vector<1x2x128xf32> to vector<2x128xf32>
        %149 = arith.addf %146, %148 : vector<2x128xf32>
        %150 = vector.extract_strided_slice %138 {offsets = [6, 0, 0], sizes = [1, 2, 128], strides = [1, 1, 1]} : vector<10x2x128xf32> to vector<1x2x128xf32>
        %151 = vector.shape_cast %150 : vector<1x2x128xf32> to vector<2x128xf32>
        %152 = vector.extract_strided_slice %138 {offsets = [5, 0, 0], sizes = [1, 2, 128], strides = [1, 1, 1]} : vector<10x2x128xf32> to vector<1x2x128xf32>
        %153 = vector.shape_cast %152 : vector<1x2x128xf32> to vector<2x128xf32>
        %154 = arith.addf %151, %153 : vector<2x128xf32>
        %155 = vector.extract_strided_slice %138 {offsets = [4, 0, 0], sizes = [1, 2, 128], strides = [1, 1, 1]} : vector<10x2x128xf32> to vector<1x2x128xf32>
        %156 = vector.shape_cast %155 : vector<1x2x128xf32> to vector<2x128xf32>
        %157 = arith.addf %154, %156 : vector<2x128xf32>
        %158 = vector.extract_strided_slice %138 {offsets = [8, 0, 0], sizes = [1, 2, 128], strides = [1, 1, 1]} : vector<10x2x128xf32> to vector<1x2x128xf32>
        %159 = vector.shape_cast %158 : vector<1x2x128xf32> to vector<2x128xf32>
        %160 = vector.extract_strided_slice %138 {offsets = [7, 0, 0], sizes = [1, 2, 128], strides = [1, 1, 1]} : vector<10x2x128xf32> to vector<1x2x128xf32>
        %161 = vector.shape_cast %160 : vector<1x2x128xf32> to vector<2x128xf32>
        %162 = arith.addf %159, %161 : vector<2x128xf32>
        %163 = vector.extract_strided_slice %138 {offsets = [9, 0, 0], sizes = [1, 2, 128], strides = [1, 1, 1]} : vector<10x2x128xf32> to vector<1x2x128xf32>
        %164 = vector.shape_cast %163 : vector<1x2x128xf32> to vector<2x128xf32>
        %165 = arith.addf %146, %157 : vector<2x128xf32>
        %166 = arith.addf %143, %154 : vector<2x128xf32>
        %167 = arith.addf %166, %162 : vector<2x128xf32>
        %168 = arith.addf %140, %151 : vector<2x128xf32>
        %169 = arith.addf %168, %159 : vector<2x128xf32>
        %170 = arith.addf %169, %164 : vector<2x128xf32>
        %171 = vector.shape_cast %149 : vector<2x128xf32> to vector<1x2x128xf32>
        %172 = vector.shape_cast %165 : vector<2x128xf32> to vector<1x2x128xf32>
        %173 = vector.shape_cast %167 : vector<2x128xf32> to vector<1x2x128xf32>
        %174 = vector.shape_cast %170 : vector<2x128xf32> to vector<1x2x128xf32>
        %175 = tpu.concatenate %171, %172, %173, %174 in 0 : vector<1x2x128xf32>, vector<1x2x128xf32>, vector<1x2x128xf32>, vector<1x2x128xf32> -> vector<4x2x128xf32>
        %c0_84 = arith.constant 0 : index
        %c0_85 = arith.constant 0 : index
        %c0_86 = arith.constant 0 : index
        %176 = vector.load %arg8[%c0_84, %c0_85, %c0_86] : memref<4x2x128xf32, #tpu.memory_space<vmem>>, vector<4x2x128xf32>
        %177 = arith.addf %82, %137 : vector<4x2x128xf32>
        %cst_87 = arith.constant 0.142857149 : f32
        %178 = vector.broadcast %cst_87 : f32 to vector<4x2x128xf32>
        %179 = arith.mulf %178, %177 : vector<4x2x128xf32>
        %180 = arith.addf %176, %179 : vector<4x2x128xf32>
        %c0_88 = arith.constant 0 : index
        %c0_89 = arith.constant 0 : index
        %c0_90 = arith.constant 0 : index
        %181 = vector.load %arg9[%c0_88, %c0_89, %c0_90] : memref<4x2x128xf32, #tpu.memory_space<vmem>>, vector<4x2x128xf32>
        %182 = arith.addf %94, %175 : vector<4x2x128xf32>
        %cst_91 = arith.constant 0.142857149 : f32
        %183 = vector.broadcast %cst_91 : f32 to vector<4x2x128xf32>
        %184 = arith.mulf %183, %182 : vector<4x2x128xf32>
        %185 = arith.addf %181, %184 : vector<4x2x128xf32>
        %c0_92 = arith.constant 0 : index
        %c0_93 = arith.constant 0 : index
        %c0_94 = arith.constant 0 : index
        %186 = vector.load %arg10[%c0_92, %c0_93, %c0_94] : memref<4x2x128xf32, #tpu.memory_space<vmem>>, vector<4x2x128xf32>
        %cst_95 = arith.constant 0.142857149 : f32
        %187 = vector.broadcast %cst_95 : f32 to vector<4x2x128xf32>
        %188 = arith.mulf %187, %99 : vector<4x2x128xf32>
        %189 = arith.addf %186, %188 : vector<4x2x128xf32>
        %190 = arith.mulf %180, %180 : vector<4x2x128xf32>
        %191 = arith.mulf %185, %185 : vector<4x2x128xf32>
        %192 = arith.addf %190, %191 : vector<4x2x128xf32>
        %cst_96 = arith.constant 2.500000e-01 : f32
        %193 = vector.broadcast %cst_96 : f32 to vector<4x2x128xf32>
        %194 = arith.mulf %193, %192 : vector<4x2x128xf32>
        %195 = arith.subf %194, %69 : vector<4x2x128xf32>
        %196 = arith.cmpf olt, %189, %195 : vector<4x2x128xf32>
        %197 = arith.addf %189, %69 : vector<4x2x128xf32>
        %cst_97 = arith.constant 0.000000e+00 : f32
        %198 = vector.broadcast %cst_97 : f32 to vector<4x2x128xf32>
        %199 = arith.cmpf oeq, %192, %198 : vector<4x2x128xf32>
        %cst_98 = arith.constant 1.000000e+00 : f32
        %200 = vector.broadcast %cst_98 : f32 to vector<4x2x128xf32>
        %201 = arith.select %199, %200, %192 : vector<4x2x128xi1>, vector<4x2x128xf32>
        %202 = math.rsqrt %201 : vector<4x2x128xf32>
        %203 = arith.mulf %192, %202 : vector<4x2x128xf32>
        %cst_99 = arith.constant 5.000000e-01 : f32
        %204 = vector.broadcast %cst_99 : f32 to vector<4x2x128xf32>
        %205 = arith.mulf %204, %203 : vector<4x2x128xf32>
        %cst_100 = arith.constant 5.000000e-01 : f32
        %206 = vector.broadcast %cst_100 : f32 to vector<4x2x128xf32>
        %207 = arith.mulf %206, %197 : vector<4x2x128xf32>
        %cst_101 = arith.constant 1.000000e+00 : f32
        %208 = vector.broadcast %cst_101 : f32 to vector<4x2x128xf32>
        %209 = arith.subf %208, %207 : vector<4x2x128xf32>
        %cst_102 = arith.constant 0.666666686 : f32
        %210 = vector.broadcast %cst_102 : f32 to vector<4x2x128xf32>
        %211 = arith.mulf %210, %209 : vector<4x2x128xf32>
        %cst_103 = arith.constant 0.000000e+00 : f32
        %212 = vector.broadcast %cst_103 : f32 to vector<4x2x128xf32>
        %213 = arith.subf %212, %211 : vector<4x2x128xf32>
        %cst_104 = arith.constant 0.000000e+00 : f32
        %214 = vector.broadcast %cst_104 : f32 to vector<4x2x128xf32>
        %215 = arith.maximumf %213, %214 : vector<4x2x128xf32>
        %216 = math.sqrt %215 : vector<4x2x128xf32>
        %217 = arith.mulf %216, %216 : vector<4x2x128xf32>
        %218 = arith.mulf %217, %216 : vector<4x2x128xf32>
        %cst_105 = arith.constant 0.000000e+00 : f32
        %219 = vector.broadcast %cst_105 : f32 to vector<4x2x128xf32>
        %220 = arith.cmpf olt, %211, %219 : vector<4x2x128xf32>
        %221 = arith.subf %205, %218 : vector<4x2x128xf32>
        %222 = arith.addf %205, %218 : vector<4x2x128xf32>
        %223 = arith.mulf %221, %222 : vector<4x2x128xf32>
        %224 = arith.mulf %205, %205 : vector<4x2x128xf32>
        %225 = arith.mulf %211, %211 : vector<4x2x128xf32>
        %226 = arith.mulf %225, %211 : vector<4x2x128xf32>
        %227 = arith.addf %224, %226 : vector<4x2x128xf32>
        %228 = arith.select %220, %223, %227 : vector<4x2x128xi1>, vector<4x2x128xf32>
        %cst_106 = arith.constant 0.000000e+00 : f32
        %229 = vector.broadcast %cst_106 : f32 to vector<4x2x128xf32>
        %230 = arith.maximumf %228, %229 : vector<4x2x128xf32>
        %231 = math.sqrt %230 : vector<4x2x128xf32>
        %232 = arith.addf %205, %231 : vector<4x2x128xf32>
        %cst_107 = arith.constant 0.333333343 : f32
        %233 = vector.broadcast %cst_107 : f32 to vector<4x2x128xf32>
        %234 = math.powf %232, %233 : vector<4x2x128xf32>
        %cst_108 = arith.constant 0.000000e+00 : f32
        %235 = vector.broadcast %cst_108 : f32 to vector<4x2x128xf32>
        %236 = arith.cmpf oge, %228, %235 : vector<4x2x128xf32>
        %cst_109 = arith.constant 0.000000e+00 : f32
        %237 = vector.broadcast %cst_109 : f32 to vector<4x2x128xf32>
        %238 = arith.cmpf oeq, %234, %237 : vector<4x2x128xf32>
        %239 = arith.andi %236, %238 : vector<4x2x128xi1>
        %cst_110 = arith.constant 0.000000e+00 : f32
        %240 = vector.broadcast %cst_110 : f32 to vector<4x2x128xf32>
        %241 = arith.cmpf olt, %228, %240 : vector<4x2x128xf32>
        %cst_111 = arith.constant 2.000000e+00 : f32
        %242 = vector.broadcast %cst_111 : f32 to vector<4x2x128xf32>
        %243 = arith.mulf %242, %216 : vector<4x2x128xf32>
        %cst_112 = arith.constant 0.000000e+00 : f32
        %244 = vector.broadcast %cst_112 : f32 to vector<4x2x128xf32>
        %245 = arith.cmpf oeq, %218, %244 : vector<4x2x128xf32>
        %cst_113 = arith.constant 1.000000e+00 : f32
        %246 = vector.broadcast %cst_113 : f32 to vector<4x2x128xf32>
        %247 = arith.select %245, %246, %218 : vector<4x2x128xi1>, vector<4x2x128xf32>
        %248 = tpu.reciprocal %247 {approx = true} : vector<4x2x128xf32> -> vector<4x2x128xf32>
        %249 = arith.mulf %205, %248 : vector<4x2x128xf32>
        %cst_114 = arith.constant 1.000000e+00 : f32
        %250 = vector.broadcast %cst_114 : f32 to vector<4x2x128xf32>
        %cst_115 = arith.constant 4.000000e+00 : f32
        %251 = vector.broadcast %cst_115 : f32 to vector<4x2x128xf32>
        %252 = arith.mulf %251, %250 : vector<4x2x128xf32>
        %253 = arith.mulf %252, %250 : vector<4x2x128xf32>
        %254 = arith.mulf %253, %250 : vector<4x2x128xf32>
        %cst_116 = arith.constant 3.000000e+00 : f32
        %255 = vector.broadcast %cst_116 : f32 to vector<4x2x128xf32>
        %256 = arith.mulf %255, %250 : vector<4x2x128xf32>
        %257 = arith.subf %254, %256 : vector<4x2x128xf32>
        %258 = arith.subf %257, %249 : vector<4x2x128xf32>
        %cst_117 = arith.constant 1.200000e+01 : f32
        %259 = vector.broadcast %cst_117 : f32 to vector<4x2x128xf32>
        %260 = arith.mulf %259, %250 : vector<4x2x128xf32>
        %261 = arith.mulf %260, %250 : vector<4x2x128xf32>
        %cst_118 = arith.constant 3.000000e+00 : f32
        %262 = vector.broadcast %cst_118 : f32 to vector<4x2x128xf32>
        %263 = arith.subf %261, %262 : vector<4x2x128xf32>
        %264 = tpu.reciprocal %263 {approx = true} : vector<4x2x128xf32> -> vector<4x2x128xf32>
        %265 = arith.mulf %258, %264 : vector<4x2x128xf32>
        %266 = arith.subf %250, %265 : vector<4x2x128xf32>
        %cst_119 = arith.constant 4.000000e+00 : f32
        %267 = vector.broadcast %cst_119 : f32 to vector<4x2x128xf32>
        %268 = arith.mulf %267, %266 : vector<4x2x128xf32>
        %269 = arith.mulf %268, %266 : vector<4x2x128xf32>
        %270 = arith.mulf %269, %266 : vector<4x2x128xf32>
        %cst_120 = arith.constant 3.000000e+00 : f32
        %271 = vector.broadcast %cst_120 : f32 to vector<4x2x128xf32>
        %272 = arith.mulf %271, %266 : vector<4x2x128xf32>
        %273 = arith.subf %270, %272 : vector<4x2x128xf32>
        %274 = arith.subf %273, %249 : vector<4x2x128xf32>
        %cst_121 = arith.constant 1.200000e+01 : f32
        %275 = vector.broadcast %cst_121 : f32 to vector<4x2x128xf32>
        %276 = arith.mulf %275, %266 : vector<4x2x128xf32>
        %277 = arith.mulf %276, %266 : vector<4x2x128xf32>
        %cst_122 = arith.constant 3.000000e+00 : f32
        %278 = vector.broadcast %cst_122 : f32 to vector<4x2x128xf32>
        %279 = arith.subf %277, %278 : vector<4x2x128xf32>
        %280 = tpu.reciprocal %279 {approx = true} : vector<4x2x128xf32> -> vector<4x2x128xf32>
        %281 = arith.mulf %274, %280 : vector<4x2x128xf32>
        %282 = arith.subf %266, %281 : vector<4x2x128xf32>
        %cst_123 = arith.constant 4.000000e+00 : f32
        %283 = vector.broadcast %cst_123 : f32 to vector<4x2x128xf32>
        %284 = arith.mulf %283, %282 : vector<4x2x128xf32>
        %285 = arith.mulf %284, %282 : vector<4x2x128xf32>
        %286 = arith.mulf %285, %282 : vector<4x2x128xf32>
        %cst_124 = arith.constant 3.000000e+00 : f32
        %287 = vector.broadcast %cst_124 : f32 to vector<4x2x128xf32>
        %288 = arith.mulf %287, %282 : vector<4x2x128xf32>
        %289 = arith.subf %286, %288 : vector<4x2x128xf32>
        %290 = arith.subf %289, %249 : vector<4x2x128xf32>
        %cst_125 = arith.constant 1.200000e+01 : f32
        %291 = vector.broadcast %cst_125 : f32 to vector<4x2x128xf32>
        %292 = arith.mulf %291, %282 : vector<4x2x128xf32>
        %293 = arith.mulf %292, %282 : vector<4x2x128xf32>
        %cst_126 = arith.constant 3.000000e+00 : f32
        %294 = vector.broadcast %cst_126 : f32 to vector<4x2x128xf32>
        %295 = arith.subf %293, %294 : vector<4x2x128xf32>
        %296 = tpu.reciprocal %295 {approx = true} : vector<4x2x128xf32> -> vector<4x2x128xf32>
        %297 = arith.mulf %290, %296 : vector<4x2x128xf32>
        %298 = arith.subf %282, %297 : vector<4x2x128xf32>
        %cst_127 = arith.constant 4.000000e+00 : f32
        %299 = vector.broadcast %cst_127 : f32 to vector<4x2x128xf32>
        %300 = arith.mulf %299, %298 : vector<4x2x128xf32>
        %301 = arith.mulf %300, %298 : vector<4x2x128xf32>
        %302 = arith.mulf %301, %298 : vector<4x2x128xf32>
        %cst_128 = arith.constant 3.000000e+00 : f32
        %303 = vector.broadcast %cst_128 : f32 to vector<4x2x128xf32>
        %304 = arith.mulf %303, %298 : vector<4x2x128xf32>
        %305 = arith.subf %302, %304 : vector<4x2x128xf32>
        %306 = arith.subf %305, %249 : vector<4x2x128xf32>
        %cst_129 = arith.constant 1.200000e+01 : f32
        %307 = vector.broadcast %cst_129 : f32 to vector<4x2x128xf32>
        %308 = arith.mulf %307, %298 : vector<4x2x128xf32>
        %309 = arith.mulf %308, %298 : vector<4x2x128xf32>
        %cst_130 = arith.constant 3.000000e+00 : f32
        %310 = vector.broadcast %cst_130 : f32 to vector<4x2x128xf32>
        %311 = arith.subf %309, %310 : vector<4x2x128xf32>
        %312 = tpu.reciprocal %311 {approx = true} : vector<4x2x128xf32> -> vector<4x2x128xf32>
        %313 = arith.mulf %306, %312 : vector<4x2x128xf32>
        %314 = arith.subf %298, %313 : vector<4x2x128xf32>
        %315 = arith.mulf %243, %314 : vector<4x2x128xf32>
        %cst_131 = arith.constant 0.000000e+00 : f32
        %316 = vector.broadcast %cst_131 : f32 to vector<4x2x128xf32>
        %317 = arith.cmpf oeq, %234, %316 : vector<4x2x128xf32>
        %cst_132 = arith.constant 1.000000e+00 : f32
        %318 = vector.broadcast %cst_132 : f32 to vector<4x2x128xf32>
        %319 = arith.select %317, %318, %234 : vector<4x2x128xi1>, vector<4x2x128xf32>
        %320 = tpu.reciprocal %319 {approx = true} : vector<4x2x128xf32> -> vector<4x2x128xf32>
        %321 = arith.mulf %211, %320 : vector<4x2x128xf32>
        %322 = arith.subf %234, %321 : vector<4x2x128xf32>
        %323 = arith.select %241, %315, %322 : vector<4x2x128xi1>, vector<4x2x128xf32>
        %cst_133 = arith.constant 0.000000e+00 : f32
        %324 = vector.broadcast %cst_133 : f32 to vector<4x2x128xf32>
        %325 = arith.select %239, %324, %323 : vector<4x2x128xi1>, vector<4x2x128xf32>
        %cst_134 = arith.constant 2.000000e+00 : f32
        %326 = vector.broadcast %cst_134 : f32 to vector<4x2x128xf32>
        %327 = arith.mulf %326, %325 : vector<4x2x128xf32>
        %328 = arith.mulf %327, %202 : vector<4x2x128xf32>
        %cst_135 = arith.constant 0.000000e+00 : f32
        %329 = vector.broadcast %cst_135 : f32 to vector<4x2x128xf32>
        %330 = arith.cmpf oeq, %203, %329 : vector<4x2x128xf32>
        %331 = arith.mulf %328, %180 : vector<4x2x128xf32>
        %cst_136 = arith.constant 0.000000e+00 : f32
        %332 = vector.broadcast %cst_136 : f32 to vector<4x2x128xf32>
        %333 = arith.select %330, %332, %331 : vector<4x2x128xi1>, vector<4x2x128xf32>
        %334 = arith.select %196, %333, %180 : vector<4x2x128xi1>, vector<4x2x128xf32>
        %cst_137 = arith.constant 0.000000e+00 : f32
        %335 = vector.broadcast %cst_137 : f32 to vector<4x2x128xf32>
        %336 = arith.cmpf oeq, %203, %335 : vector<4x2x128xf32>
        %337 = arith.mulf %328, %185 : vector<4x2x128xf32>
        %cst_138 = arith.constant 0.000000e+00 : f32
        %338 = vector.broadcast %cst_138 : f32 to vector<4x2x128xf32>
        %339 = arith.select %336, %338, %337 : vector<4x2x128xi1>, vector<4x2x128xf32>
        %340 = arith.select %196, %339, %185 : vector<4x2x128xi1>, vector<4x2x128xf32>
        %341 = arith.mulf %334, %334 : vector<4x2x128xf32>
        %342 = arith.mulf %340, %340 : vector<4x2x128xf32>
        %343 = arith.addf %341, %342 : vector<4x2x128xf32>
        %cst_139 = arith.constant 2.500000e-01 : f32
        %344 = vector.broadcast %cst_139 : f32 to vector<4x2x128xf32>
        %345 = arith.mulf %344, %343 : vector<4x2x128xf32>
        %346 = arith.subf %345, %69 : vector<4x2x128xf32>
        %347 = arith.select %196, %346, %189 : vector<4x2x128xi1>, vector<4x2x128xf32>
        %c0_140 = arith.constant 0 : index
        %c0_141 = arith.constant 0 : index
        %c0_142 = arith.constant 0 : index
        %348 = vector.load %arg8[%c0_140, %c0_141, %c0_142] : memref<4x2x128xf32, #tpu.memory_space<vmem>>, vector<4x2x128xf32>
        tpu.vector_store %arg8[%c0_140, %c0_141, %c0_142], %334 {strides = array<i32>} : memref<4x2x128xf32, #tpu.memory_space<vmem>>, vector<4x2x128xf32>,
        %c0_143 = arith.constant 0 : index
        %c0_144 = arith.constant 0 : index
        %c0_145 = arith.constant 0 : index
        %349 = vector.load %arg9[%c0_143, %c0_144, %c0_145] : memref<4x2x128xf32, #tpu.memory_space<vmem>>, vector<4x2x128xf32>
        tpu.vector_store %arg9[%c0_143, %c0_144, %c0_145], %340 {strides = array<i32>} : memref<4x2x128xf32, #tpu.memory_space<vmem>>, vector<4x2x128xf32>,
        %c0_146 = arith.constant 0 : index
        %c0_147 = arith.constant 0 : index
        %c0_148 = arith.constant 0 : index
        %350 = vector.load %arg10[%c0_146, %c0_147, %c0_148] : memref<4x2x128xf32, #tpu.memory_space<vmem>>, vector<4x2x128xf32>
        tpu.vector_store %arg10[%c0_146, %c0_147, %c0_148], %347 {strides = array<i32>} : memref<4x2x128xf32, #tpu.memory_space<vmem>>, vector<4x2x128xf32>,
        %c0_149 = arith.constant 0 : index
        %c0_150 = arith.constant 0 : index
        %c0_151 = arith.constant 0 : index
        %351 = vector.load %arg12[%c0_149, %c0_150, %c0_151] : memref<10x2x128xf32, #tpu.memory_space<vmem>>, vector<10x2x128xf32>
        %c0_152 = arith.constant 0 : index
        %c0_153 = arith.constant 0 : index
        %c0_154 = arith.constant 0 : index
        %352 = vector.load %arg16[%c0_152, %c0_153, %c0_154] : memref<10x2x128xf32, #tpu.memory_space<vmem>>, vector<10x2x128xf32>
        %353 = arith.subf %351, %352 : vector<10x2x128xf32>
        %c0_155 = arith.constant 0 : index
        %c0_156 = arith.constant 0 : index
        %c0_157 = arith.constant 0 : index
        %354 = vector.load %arg13[%c0_155, %c0_156, %c0_157] : memref<10x2x128xf32, #tpu.memory_space<vmem>>, vector<10x2x128xf32>
        %c0_158 = arith.constant 0 : index
        %c0_159 = arith.constant 0 : index
        %c0_160 = arith.constant 0 : index
        %355 = vector.load %arg17[%c0_158, %c0_159, %c0_160] : memref<10x2x128xf32, #tpu.memory_space<vmem>>, vector<10x2x128xf32>
        %356 = arith.subf %354, %355 : vector<10x2x128xf32>
        %357 = arith.mulf %353, %353 : vector<10x2x128xf32>
        %358 = arith.mulf %356, %356 : vector<10x2x128xf32>
        %359 = arith.addf %357, %358 : vector<10x2x128xf32>
        %cst_161 = arith.constant 0.000000e+00 : f32
        %360 = vector.broadcast %cst_161 : f32 to vector<10x2x128xf32>
        %361 = arith.cmpf oeq, %359, %360 : vector<10x2x128xf32>
        %cst_162 = arith.constant 1.000000e+00 : f32
        %362 = vector.broadcast %cst_162 : f32 to vector<10x2x128xf32>
        %363 = arith.select %361, %362, %359 : vector<10x2x128xi1>, vector<10x2x128xf32>
        %364 = math.rsqrt %363 : vector<10x2x128xf32>
        %365 = arith.mulf %359, %364 : vector<10x2x128xf32>
        %366 = vector.broadcast %1 : f32 to vector<10x2x128xf32>
        %367 = arith.cmpf ogt, %365, %366 : vector<10x2x128xf32>
        %368 = vector.broadcast %1 : f32 to vector<10x2x128xf32>
        %369 = arith.mulf %368, %364 : vector<10x2x128xf32>
        %370 = arith.mulf %353, %369 : vector<10x2x128xf32>
        %371 = arith.select %367, %370, %353 : vector<10x2x128xi1>, vector<10x2x128xf32>
        %372 = vector.broadcast %1 : f32 to vector<10x2x128xf32>
        %373 = arith.mulf %372, %364 : vector<10x2x128xf32>
        %374 = arith.mulf %356, %373 : vector<10x2x128xf32>
        %375 = arith.select %367, %374, %356 : vector<10x2x128xi1>, vector<10x2x128xf32>
        %c0_163 = arith.constant 0 : index
        %c0_164 = arith.constant 0 : index
        %c0_165 = arith.constant 0 : index
        %376 = vector.load %arg12[%c0_163, %c0_164, %c0_165] : memref<10x2x128xf32, #tpu.memory_space<vmem>>, vector<10x2x128xf32>
        tpu.vector_store %arg12[%c0_163, %c0_164, %c0_165], %371 {strides = array<i32>} : memref<10x2x128xf32, #tpu.memory_space<vmem>>, vector<10x2x128xf32>,
        %c0_166 = arith.constant 0 : index
        %c0_167 = arith.constant 0 : index
        %c0_168 = arith.constant 0 : index
        %377 = vector.load %arg13[%c0_166, %c0_167, %c0_168] : memref<10x2x128xf32, #tpu.memory_space<vmem>>, vector<10x2x128xf32>
        tpu.vector_store %arg13[%c0_166, %c0_167, %c0_168], %375 {strides = array<i32>} : memref<10x2x128xf32, #tpu.memory_space<vmem>>, vector<10x2x128xf32>,
        %378 = vector.extract_strided_slice %334 {offsets = [0, 0, 0], sizes = [1, 2, 128], strides = [1, 1, 1]} : vector<4x2x128xf32> to vector<1x2x128xf32>
        %379 = vector.shape_cast %378 : vector<1x2x128xf32> to vector<2x128xf32>
        %380 = vector.extract_strided_slice %334 {offsets = [1, 0, 0], sizes = [1, 2, 128], strides = [1, 1, 1]} : vector<4x2x128xf32> to vector<1x2x128xf32>
        %381 = vector.shape_cast %380 : vector<1x2x128xf32> to vector<2x128xf32>
        %382 = arith.addf %379, %381 : vector<2x128xf32>
        %383 = vector.extract_strided_slice %334 {offsets = [2, 0, 0], sizes = [1, 2, 128], strides = [1, 1, 1]} : vector<4x2x128xf32> to vector<1x2x128xf32>
        %384 = vector.shape_cast %383 : vector<1x2x128xf32> to vector<2x128xf32>
        %385 = arith.addf %382, %384 : vector<2x128xf32>
        %386 = vector.extract_strided_slice %334 {offsets = [3, 0, 0], sizes = [1, 2, 128], strides = [1, 1, 1]} : vector<4x2x128xf32> to vector<1x2x128xf32>
        %387 = vector.shape_cast %386 : vector<1x2x128xf32> to vector<2x128xf32>
        %388 = arith.addf %385, %387 : vector<2x128xf32>
        %389 = arith.subf %382, %379 : vector<2x128xf32>
        %390 = arith.subf %385, %379 : vector<2x128xf32>
        %391 = arith.subf %388, %379 : vector<2x128xf32>
        %392 = arith.subf %385, %382 : vector<2x128xf32>
        %393 = arith.subf %388, %382 : vector<2x128xf32>
        %394 = arith.subf %388, %385 : vector<2x128xf32>
        %395 = vector.shape_cast %379 : vector<2x128xf32> to vector<1x2x128xf32>
        %396 = vector.shape_cast %382 : vector<2x128xf32> to vector<1x2x128xf32>
        %397 = vector.shape_cast %385 : vector<2x128xf32> to vector<1x2x128xf32>
        %398 = vector.shape_cast %388 : vector<2x128xf32> to vector<1x2x128xf32>
        %399 = vector.shape_cast %389 : vector<2x128xf32> to vector<1x2x128xf32>
        %400 = vector.shape_cast %390 : vector<2x128xf32> to vector<1x2x128xf32>
        %401 = vector.shape_cast %391 : vector<2x128xf32> to vector<1x2x128xf32>
        %402 = vector.shape_cast %392 : vector<2x128xf32> to vector<1x2x128xf32>
        %403 = vector.shape_cast %393 : vector<2x128xf32> to vector<1x2x128xf32>
        %404 = vector.shape_cast %394 : vector<2x128xf32> to vector<1x2x128xf32>
        %405 = tpu.concatenate %395, %396, %397, %398, %399, %400, %401, %402, %403, %404 in 0 : vector<1x2x128xf32>, vector<1x2x128xf32>, vector<1x2x128xf32>, vector<1x2x128xf32>, vector<1x2x128xf32>, vector<1x2x128xf32>, vector<1x2x128xf32>, vector<1x2x128xf32>, vector<1x2x128xf32>, vector<1x2x128xf32> -> vector<10x2x128xf32>
        %406 = vector.extract_strided_slice %340 {offsets = [0, 0, 0], sizes = [1, 2, 128], strides = [1, 1, 1]} : vector<4x2x128xf32> to vector<1x2x128xf32>
        %407 = vector.shape_cast %406 : vector<1x2x128xf32> to vector<2x128xf32>
        %408 = vector.extract_strided_slice %340 {offsets = [1, 0, 0], sizes = [1, 2, 128], strides = [1, 1, 1]} : vector<4x2x128xf32> to vector<1x2x128xf32>
        %409 = vector.shape_cast %408 : vector<1x2x128xf32> to vector<2x128xf32>
        %410 = arith.addf %407, %409 : vector<2x128xf32>
        %411 = vector.extract_strided_slice %340 {offsets = [2, 0, 0], sizes = [1, 2, 128], strides = [1, 1, 1]} : vector<4x2x128xf32> to vector<1x2x128xf32>
        %412 = vector.shape_cast %411 : vector<1x2x128xf32> to vector<2x128xf32>
        %413 = arith.addf %410, %412 : vector<2x128xf32>
        %414 = vector.extract_strided_slice %340 {offsets = [3, 0, 0], sizes = [1, 2, 128], strides = [1, 1, 1]} : vector<4x2x128xf32> to vector<1x2x128xf32>
        %415 = vector.shape_cast %414 : vector<1x2x128xf32> to vector<2x128xf32>
        %416 = arith.addf %413, %415 : vector<2x128xf32>
        %417 = arith.subf %410, %407 : vector<2x128xf32>
        %418 = arith.subf %413, %407 : vector<2x128xf32>
        %419 = arith.subf %416, %407 : vector<2x128xf32>
        %420 = arith.subf %413, %410 : vector<2x128xf32>
        %421 = arith.subf %416, %410 : vector<2x128xf32>
        %422 = arith.subf %416, %413 : vector<2x128xf32>
        %423 = vector.shape_cast %407 : vector<2x128xf32> to vector<1x2x128xf32>
        %424 = vector.shape_cast %410 : vector<2x128xf32> to vector<1x2x128xf32>
        %425 = vector.shape_cast %413 : vector<2x128xf32> to vector<1x2x128xf32>
        %426 = vector.shape_cast %416 : vector<2x128xf32> to vector<1x2x128xf32>
        %427 = vector.shape_cast %417 : vector<2x128xf32> to vector<1x2x128xf32>
        %428 = vector.shape_cast %418 : vector<2x128xf32> to vector<1x2x128xf32>
        %429 = vector.shape_cast %419 : vector<2x128xf32> to vector<1x2x128xf32>
        %430 = vector.shape_cast %420 : vector<2x128xf32> to vector<1x2x128xf32>
        %431 = vector.shape_cast %421 : vector<2x128xf32> to vector<1x2x128xf32>
        %432 = vector.shape_cast %422 : vector<2x128xf32> to vector<1x2x128xf32>
        %433 = tpu.concatenate %423, %424, %425, %426, %427, %428, %429, %430, %431, %432 in 0 : vector<1x2x128xf32>, vector<1x2x128xf32>, vector<1x2x128xf32>, vector<1x2x128xf32>, vector<1x2x128xf32>, vector<1x2x128xf32>, vector<1x2x128xf32>, vector<1x2x128xf32>, vector<1x2x128xf32>, vector<1x2x128xf32> -> vector<10x2x128xf32>
        %c0_169 = arith.constant 0 : index
        %c0_170 = arith.constant 0 : index
        %c0_171 = arith.constant 0 : index
        %434 = vector.load %arg14[%c0_169, %c0_170, %c0_171] : memref<10x2x128xf32, #tpu.memory_space<vmem>>, vector<10x2x128xf32>
        %c0_172 = arith.constant 0 : index
        %c0_173 = arith.constant 0 : index
        %c0_174 = arith.constant 0 : index
        %435 = vector.load %arg15[%c0_172, %c0_173, %c0_174] : memref<10x2x128xf32, #tpu.memory_space<vmem>>, vector<10x2x128xf32>
        %436 = arith.subf %371, %405 : vector<10x2x128xf32>
        %cst_175 = arith.constant 0.222222224 : f32
        %437 = vector.broadcast %cst_175 : f32 to vector<10x2x128xf32>
        %438 = arith.mulf %437, %436 : vector<10x2x128xf32>
        %439 = arith.addf %434, %438 : vector<10x2x128xf32>
        %440 = arith.subf %375, %433 : vector<10x2x128xf32>
        %cst_176 = arith.constant 0.222222224 : f32
        %441 = vector.broadcast %cst_176 : f32 to vector<10x2x128xf32>
        %442 = arith.mulf %441, %440 : vector<10x2x128xf32>
        %443 = arith.addf %435, %442 : vector<10x2x128xf32>
        %cst_177 = arith.constant 2.000000e+00 : f32
        %444 = vector.broadcast %cst_177 : f32 to vector<10x2x128xf32>
        %445 = arith.mulf %444, %439 : vector<10x2x128xf32>
        %446 = arith.subf %445, %434 : vector<10x2x128xf32>
        %c0_178 = arith.constant 0 : index
        %c0_179 = arith.constant 0 : index
        %c0_180 = arith.constant 0 : index
        %447 = vector.load %arg16[%c0_178, %c0_179, %c0_180] : memref<10x2x128xf32, #tpu.memory_space<vmem>>, vector<10x2x128xf32>
        tpu.vector_store %arg16[%c0_178, %c0_179, %c0_180], %446 {strides = array<i32>} : memref<10x2x128xf32, #tpu.memory_space<vmem>>, vector<10x2x128xf32>,
        %cst_181 = arith.constant 2.000000e+00 : f32
        %448 = vector.broadcast %cst_181 : f32 to vector<10x2x128xf32>
        %449 = arith.mulf %448, %443 : vector<10x2x128xf32>
        %450 = arith.subf %449, %435 : vector<10x2x128xf32>
        %c0_182 = arith.constant 0 : index
        %c0_183 = arith.constant 0 : index
        %c0_184 = arith.constant 0 : index
        %451 = vector.load %arg17[%c0_182, %c0_183, %c0_184] : memref<10x2x128xf32, #tpu.memory_space<vmem>>, vector<10x2x128xf32>
        tpu.vector_store %arg17[%c0_182, %c0_183, %c0_184], %450 {strides = array<i32>} : memref<10x2x128xf32, #tpu.memory_space<vmem>>, vector<10x2x128xf32>,
        %c0_185 = arith.constant 0 : index
        %c0_186 = arith.constant 0 : index
        %c0_187 = arith.constant 0 : index
        %452 = vector.load %arg14[%c0_185, %c0_186, %c0_187] : memref<10x2x128xf32, #tpu.memory_space<vmem>>, vector<10x2x128xf32>
        tpu.vector_store %arg14[%c0_185, %c0_186, %c0_187], %439 {strides = array<i32>} : memref<10x2x128xf32, #tpu.memory_space<vmem>>, vector<10x2x128xf32>,
        %c0_188 = arith.constant 0 : index
        %c0_189 = arith.constant 0 : index
        %c0_190 = arith.constant 0 : index
        %453 = vector.load %arg15[%c0_188, %c0_189, %c0_190] : memref<10x2x128xf32, #tpu.memory_space<vmem>>, vector<10x2x128xf32>
        tpu.vector_store %arg15[%c0_188, %c0_189, %c0_190], %443 {strides = array<i32>} : memref<10x2x128xf32, #tpu.memory_space<vmem>>, vector<10x2x128xf32>,
        %cst_191 = arith.constant 0.000000e+00 : f32
        %454 = vector.shape_cast %57 : vector<2x128xi1> to vector<1x2x128xi1>
        %455 = vector.broadcast %454 : vector<1x2x128xi1> to vector<4x2x128xi1>
        %456 = vector.broadcast %cst_191 : f32 to vector<4x2x128xf32>
        %457 = arith.select %455, %456, %334 : vector<4x2x128xi1>, vector<4x2x128xf32>
        %c16_i32 = arith.constant 16 : i32
        %458 = tpu.dynamic_rotate %457 by %c16_i32 dim 2 : vector<4x2x128xf32>, i32 -> vector<4x2x128xf32>
        %c1_i32_192 = arith.constant 1 : i32
        %459 = tpu.dynamic_rotate %458 by %c1_i32_192 dim 1 : vector<4x2x128xf32>, i32 -> vector<4x2x128xf32>
        %c16_i32_193 = arith.constant 16 : i32
        %460 = vector.broadcast %c16_i32_193 : i32 to vector<2x128xi32>
        %461 = arith.cmpi slt, %49, %460 : vector<2x128xi32>
        %462 = vector.shape_cast %461 : vector<2x128xi1> to vector<1x2x128xi1>
        %463 = vector.broadcast %462 : vector<1x2x128xi1> to vector<4x2x128xi1>
        %464 = arith.select %463, %459, %458 : vector<4x2x128xi1>, vector<4x2x128xf32>
        %cst_194 = arith.constant 0.000000e+00 : f32
        %465 = vector.shape_cast %59 : vector<2x128xi1> to vector<1x2x128xi1>
        %466 = vector.broadcast %465 : vector<1x2x128xi1> to vector<4x2x128xi1>
        %467 = vector.broadcast %cst_194 : f32 to vector<4x2x128xf32>
        %468 = arith.select %466, %467, %464 : vector<4x2x128xi1>, vector<4x2x128xf32>
        %469 = arith.subf %457, %468 : vector<4x2x128xf32>
        %cst_195 = arith.constant 0.000000e+00 : f32
        %470 = vector.shape_cast %53 : vector<2x128xi1> to vector<1x2x128xi1>
        %471 = vector.broadcast %470 : vector<1x2x128xi1> to vector<4x2x128xi1>
        %472 = vector.broadcast %cst_195 : f32 to vector<4x2x128xf32>
        %473 = arith.select %471, %472, %340 : vector<4x2x128xi1>, vector<4x2x128xf32>
        %c1_i32_196 = arith.constant 1 : i32
        %474 = tpu.dynamic_rotate %473 by %c1_i32_196 dim 2 : vector<4x2x128xf32>, i32 -> vector<4x2x128xf32>
        %c1_i32_197 = arith.constant 1 : i32
        %475 = tpu.dynamic_rotate %474 by %c1_i32_197 dim 1 : vector<4x2x128xf32>, i32 -> vector<4x2x128xf32>
        %c1_i32_198 = arith.constant 1 : i32
        %476 = vector.broadcast %c1_i32_198 : i32 to vector<2x128xi32>
        %477 = arith.cmpi slt, %49, %476 : vector<2x128xi32>
        %478 = vector.shape_cast %477 : vector<2x128xi1> to vector<1x2x128xi1>
        %479 = vector.broadcast %478 : vector<1x2x128xi1> to vector<4x2x128xi1>
        %480 = arith.select %479, %475, %474 : vector<4x2x128xi1>, vector<4x2x128xf32>
        %cst_199 = arith.constant 0.000000e+00 : f32
        %481 = vector.shape_cast %55 : vector<2x128xi1> to vector<1x2x128xi1>
        %482 = vector.broadcast %481 : vector<1x2x128xi1> to vector<4x2x128xi1>
        %483 = vector.broadcast %cst_199 : f32 to vector<4x2x128xf32>
        %484 = arith.select %482, %483, %480 : vector<4x2x128xi1>, vector<4x2x128xf32>
        %485 = arith.subf %473, %484 : vector<4x2x128xf32>
        %cst_200 = arith.constant 0.000000e+00 : f32
        %486 = vector.broadcast %cst_200 : f32 to vector<1x2x128xf32>
        %487 = vector.extract_strided_slice %347 {offsets = [0, 0, 0], sizes = [3, 2, 128], strides = [1, 1, 1]} : vector<4x2x128xf32> to vector<3x2x128xf32>
        %488 = tpu.concatenate %487, %486 in 0 : vector<3x2x128xf32>, vector<1x2x128xf32> -> vector<4x2x128xf32>
        %489 = tpu.concatenate %486, %487 in 0 : vector<1x2x128xf32>, vector<3x2x128xf32> -> vector<4x2x128xf32>
        %490 = arith.subf %488, %489 : vector<4x2x128xf32>
        %c0_201 = arith.constant 0 : index
        %c0_202 = arith.constant 0 : index
        %c0_203 = arith.constant 0 : index
        %491 = vector.load %arg6[%c0_201, %c0_202, %c0_203] : memref<4x2x128xf32, #tpu.memory_space<vmem>>, vector<4x2x128xf32>
        %492 = arith.addf %469, %485 : vector<4x2x128xf32>
        %493 = arith.addf %492, %490 : vector<4x2x128xf32>
        %cst_204 = arith.constant 0.166666672 : f32
        %494 = vector.broadcast %cst_204 : f32 to vector<4x2x128xf32>
        %495 = arith.mulf %494, %493 : vector<4x2x128xf32>
        %496 = arith.addf %491, %495 : vector<4x2x128xf32>
        %cst_205 = arith.constant 0.000000e+00 : f32
        %cst_206 = arith.constant 1.000000e+00 : f32
        %497 = vector.broadcast %cst_205 : f32 to vector<4x2x128xf32>
        %498 = arith.maximumf %497, %496 : vector<4x2x128xf32>
        %499 = vector.broadcast %cst_206 : f32 to vector<4x2x128xf32>
        %500 = arith.minimumf %499, %498 : vector<4x2x128xf32>
        %cst_207 = arith.constant 1.000000e+00 : f32
        %501 = vector.broadcast %cst_207 : f32 to vector<1x2x128xf32>
        %502 = vector.extract_strided_slice %500 {offsets = [1, 0, 0], sizes = [2, 2, 128], strides = [1, 1, 1]} : vector<4x2x128xf32> to vector<2x2x128xf32>
        %cst_208 = arith.constant 0.000000e+00 : f32
        %503 = vector.broadcast %cst_208 : f32 to vector<1x2x128xf32>
        %504 = tpu.concatenate %501, %502, %503 in 0 : vector<1x2x128xf32>, vector<2x2x128xf32>, vector<1x2x128xf32> -> vector<4x2x128xf32>
        %c0_209 = arith.constant 0 : index
        %c0_210 = arith.constant 0 : index
        %c0_211 = arith.constant 0 : index
        %505 = vector.load %arg6[%c0_209, %c0_210, %c0_211] : memref<4x2x128xf32, #tpu.memory_space<vmem>>, vector<4x2x128xf32>
        tpu.vector_store %arg6[%c0_209, %c0_210, %c0_211], %504 {strides = array<i32>} : memref<4x2x128xf32, #tpu.memory_space<vmem>>, vector<4x2x128xf32>,
        %cst_212 = arith.constant 2.000000e+00 : f32
        %506 = vector.broadcast %cst_212 : f32 to vector<4x2x128xf32>
        %507 = arith.mulf %506, %504 : vector<4x2x128xf32>
        %508 = arith.subf %507, %491 : vector<4x2x128xf32>
        %c0_213 = arith.constant 0 : index
        %c0_214 = arith.constant 0 : index
        %c0_215 = arith.constant 0 : index
        %509 = vector.load %arg7[%c0_213, %c0_214, %c0_215] : memref<4x2x128xf32, #tpu.memory_space<vmem>>, vector<4x2x128xf32>
        tpu.vector_store %arg7[%c0_213, %c0_214, %c0_215], %508 {strides = array<i32>} : memref<4x2x128xf32, #tpu.memory_space<vmem>>, vector<4x2x128xf32>,
        %c10_i32 = arith.constant 10 : i32
        %c0_i32_216 = arith.constant 0 : i32
        %510 = arith.cmpi eq, %c10_i32, %c0_i32_216 : i32
        %c1_i32_217 = arith.constant 1 : i32
        %511 = arith.select %510, %c1_i32_217, %c10_i32 : i32
        %512 = arith.remsi %64, %511 : i32
        %c0_i32_218 = arith.constant 0 : i32
        %513 = arith.cmpi ne, %512, %c0_i32_218 : i32
        %c0_i32_219 = arith.constant 0 : i32
        %514 = arith.cmpi slt, %512, %c0_i32_219 : i32
        %c0_i32_220 = arith.constant 0 : i32
        %515 = arith.cmpi slt, %511, %c0_i32_220 : i32
        %516 = arith.xori %514, %515 : i1
        %517 = arith.andi %516, %513 : i1
        %518 = arith.addi %512, %511 : i32
        %519 = arith.select %517, %518, %512 : i32
        %c0_i32_221 = arith.constant 0 : i32
        %520 = arith.cmpi eq, %519, %c0_i32_221 : i32
        %521 = arith.extui %520 : i1 to i32
        %c0_i32_222 = arith.constant 0 : i32
        %522 = arith.cmpi ne, %521, %c0_i32_222 : i32
        scf.if %522 {
          %523 = arith.subf %504, %491 : vector<4x2x128xf32>
          %524 = math.absf %523 : vector<4x2x128xf32>
          %525 = vector.shape_cast %524 : vector<4x2x128xf32> to vector<1x4x2x128xf32>
          %cst_223 = arith.constant dense<0.000000e+00> : vector<1xf32>
          %526 = vector.multi_reduction <add>, %525, %cst_223 [1, 2, 3] : vector<1x4x2x128xf32> to vector<1xf32>
          %527 = vector.shape_cast %526 : vector<1xf32> to vector<1x1x1x1xf32>
          %528 = vector.extract %527[0, 0, 0, 0] : f32 from vector<1x1x1x1xf32>
          %cst_224 = arith.constant 5.120000e-02 : f32
          %529 = arith.cmpf ole, %528, %cst_224 : f32
          %530 = arith.extui %529 : i1 to i32
          %c0_225 = arith.constant 0 : index
          %531 = memref.load %arg18[%c0_225] : memref<1xi32, #tpu.memory_space<smem>>
          memref.store %530, %arg18[%c0_225] : memref<1xi32, #tpu.memory_space<smem>>
        } else {
        }
      } else {
      }
    }
    %c12_i32_53 = arith.constant 12 : i32
    %c0_54 = arith.constant 0 : index
    %c0_55 = arith.constant 0 : index
    %c0_56 = arith.constant 0 : index
    %61 = vector.load %arg6[%c0_54, %c0_55, %c0_56] : memref<4x2x128xf32, #tpu.memory_space<vmem>>, vector<4x2x128xf32>
    %c0_57 = arith.constant 0 : index
    %c0_58 = arith.constant 0 : index
    %c0_59 = arith.constant 0 : index
    %62 = vector.load %arg5[%c0_57, %c0_58, %c0_59] : memref<4x2x128xf32, #tpu.memory_space<vmem>>, vector<4x2x128xf32>
    tpu.vector_store %arg5[%c0_57, %c0_58, %c0_59], %61 {strides = array<i32>} : memref<4x2x128xf32, #tpu.memory_space<vmem>>, vector<4x2x128xf32>,
    return
  }
}

</mosaic_0001>

<bundles_post_ra>
// kernel: tpu_custom_call.1
= control target key start
LH: loop header
LB: loop body
LE: loop exit
PB: predicated region body
PF: predicated region fallthrough
CT: control target
= control target key end

     0   :  { %12 = vsyncpa [#allocation18], 0  ;;  %v125_v1 = vlaneseq  ;;  %s1676_s20 = smov 0   ;;  %v1677_v6 = vmov 0.0   ;;  %s3366_s0 = inlined_call_operand.<no memory space> [shape: f32[1], index: 0, kind: input, shape index: {}]   ;;  %s3367_s1 = inlined_call_operand.<no memory space> [shape: f32[1], index: 1, kind: input, shape index: {}]   ;;  %s3368_s2 = inlined_call_operand.vmem [shape: f32[2,128], index: 2, kind: input, shape index: {}]   ;;  %s3369_s3 = inlined_call_operand.vmem [shape: s32[2,128], index: 3, kind: input, shape index: {}]   ;;  %s3370_s4 = inlined_call_operand.vmem [shape: s32[2,128], index: 4, kind: input, shape index: {}]   ;;  %s3371_s5 = inlined_call_operand.hbm [shape: f32[4,2,128], index: 5, kind: output, shape index: {}]  }
   0x1   :  { %v1720_v0 = vld [vmem:[%s3368_s2] sm:$0x3]  ;;  %124 = sst [smem:[#allocation14]] %s1676_s20  ;;  %v1744_v5 = vstv %s3366_s0  ;;  %51 = vst [vmem:[#allocation4] sm:$0x3] %v1677_v6  ;;  %s1835_s0 = smov 0  }
   0x2   :  { %26 = vst [vmem:[#allocation2] sm:$0x3] %v1720_v0  ;;  %27 = vst [vmem:[#allocation2 + $0x2] sm:$0x3] %v1720_v0  ;;  %v1733_v2 = vld [vmem:[%s3369_s3] sm:$0x3] }
   0x3   :  { %28 = vst [vmem:[#allocation2 + $0x4] sm:$0x3] %v1720_v0  ;;  %29 = vst [vmem:[#allocation2 + $0x6] sm:$0x3] %v1720_v0  ;;  %v1738_v3 = vld [vmem:[%s3370_s4] sm:$0x3] }
   0x4   :  { %30 = vst [vmem:[#allocation3] sm:$0x3] %v1720_v0  ;;  %31 = vst [vmem:[#allocation3 + $0x2] sm:$0x3] %v1720_v0  ;;  %v34_v4 = vsub.f32 0.25, %v1720_v0  ;;  %v1819_v7 = vand.u32 127, %v125_v1 }
   0x5   :  { %32 = vst [vmem:[#allocation3 + $0x4] sm:$0x3] %v1720_v0  ;;  %33 = vst [vmem:[#allocation3 + $0x6] sm:$0x3] %v1720_v0  ;;  %v38_v9 = vsub.f32 0.5, %v1720_v0  ;;  %v41_v10 = vsub.f32 0.75, %v1720_v0 }
   0x6   :  { %3462 = vst [vmem:[#allocation20_spill] sm:$0xff] %v1733_v2  ;;  %3463 = vst [vmem:[#allocation21_spill] sm:$0xff] %v1738_v3  ;;  %v35_v8 = vmul.f32 %v34_v4, %v34_v4  ;;  %v44_v11 = vsub.f32 1.0, %v1720_v0 }
   0x7   :  { %52 = vst [vmem:[#allocation4 + $0x2] sm:$0x3] %v1677_v6  ;;  %53 = vst [vmem:[#allocation4 + $0x4] sm:$0x3] %v1677_v6  ;;  %v39_v13 = vmul.f32 %v38_v9, %v38_v9  ;;  %v42_v14 = vmul.f32 %v41_v10, %v41_v10 }
   0x8   :  { %54 = vst [vmem:[#allocation4 + $0x6] sm:$0x3] %v1677_v6  ;;  %55 = vst [vmem:[#allocation5] sm:$0x3] %v1677_v6  ;;  %v37_v12 = vmul.f32 %v1744_v5, %v35_v8  ;;  %v45_v15 = vmul.f32 %v44_v11, %v44_v11 }
   0x9   :  { %56 = vst [vmem:[#allocation5 + $0x2] sm:$0x3] %v1677_v6  ;;  %57 = vst [vmem:[#allocation5 + $0x4] sm:$0x3] %v1677_v6  ;;  %v40_v16 = vmul.f32 %v39_v13, %v1744_v5  ;;  %v43_v17 = vmul.f32 %v42_v14, %v1744_v5 }
   0xa   :  { %58 = vst [vmem:[#allocation5 + $0x6] sm:$0x3] %v1677_v6  ;;  %59 = vst [vmem:[#allocation6] sm:$0x3] %v1677_v6  ;;  %v46_v18 = vmul.f32 %v45_v15, %v1744_v5 }
   0xb   :  { %60 = vst [vmem:[#allocation6 + $0x2] sm:$0x3] %v1677_v6  ;;  %61 = vst [vmem:[#allocation6 + $0x4] sm:$0x3] %v1677_v6 }
   0xc   :  { %62 = vst [vmem:[#allocation6 + $0x6] sm:$0x3] %v1677_v6  ;;  %63 = vst [vmem:[#allocation8] sm:$0x3] %v1677_v6 }
   0xd   :  { %64 = vst [vmem:[#allocation8 + $0x2] sm:$0x3] %v1677_v6  ;;  %65 = vst [vmem:[#allocation8 + $0x4] sm:$0x3] %v1677_v6 }
   0xe   :  { %66 = vst [vmem:[#allocation8 + $0x6] sm:$0x3] %v1677_v6  ;;  %67 = vst [vmem:[#allocation8 + $0x8] sm:$0x3] %v1677_v6 }
   0xf   :  { %68 = vst [vmem:[#allocation8 + $0xa] sm:$0x3] %v1677_v6  ;;  %69 = vst [vmem:[#allocation8 + $0xc] sm:$0x3] %v1677_v6 }
  0x10   :  { %70 = vst [vmem:[#allocation8 + $0xe] sm:$0x3] %v1677_v6  ;;  %71 = vst [vmem:[#allocation8 + $0x10] sm:$0x3] %v1677_v6 }
  0x11   :  { %72 = vst [vmem:[#allocation8 + $0x12] sm:$0x3] %v1677_v6  ;;  %73 = vst [vmem:[#allocation9] sm:$0x3] %v1677_v6 }
  0x12   :  { %74 = vst [vmem:[#allocation9 + $0x2] sm:$0x3] %v1677_v6  ;;  %75 = vst [vmem:[#allocation9 + $0x4] sm:$0x3] %v1677_v6 }
  0x13   :  { %76 = vst [vmem:[#allocation9 + $0x6] sm:$0x3] %v1677_v6  ;;  %77 = vst [vmem:[#allocation9 + $0x8] sm:$0x3] %v1677_v6 }
  0x14   :  { %78 = vst [vmem:[#allocation9 + $0xa] sm:$0x3] %v1677_v6  ;;  %79 = vst [vmem:[#allocation9 + $0xc] sm:$0x3] %v1677_v6 }
  0x15   :  { %80 = vst [vmem:[#allocation9 + $0xe] sm:$0x3] %v1677_v6  ;;  %81 = vst [vmem:[#allocation9 + $0x10] sm:$0x3] %v1677_v6 }
  0x16   :  { %82 = vst [vmem:[#allocation9 + $0x12] sm:$0x3] %v1677_v6  ;;  %83 = vst [vmem:[#allocation10] sm:$0x3] %v1677_v6 }
  0x17   :  { %84 = vst [vmem:[#allocation10 + $0x2] sm:$0x3] %v1677_v6  ;;  %85 = vst [vmem:[#allocation10 + $0x4] sm:$0x3] %v1677_v6 }
  0x18   :  { %86 = vst [vmem:[#allocation10 + $0x6] sm:$0x3] %v1677_v6  ;;  %87 = vst [vmem:[#allocation10 + $0x8] sm:$0x3] %v1677_v6 }
  0x19   :  { %88 = vst [vmem:[#allocation10 + $0xa] sm:$0x3] %v1677_v6  ;;  %89 = vst [vmem:[#allocation10 + $0xc] sm:$0x3] %v1677_v6 }
  0x1a   :  { %90 = vst [vmem:[#allocation10 + $0xe] sm:$0x3] %v1677_v6  ;;  %91 = vst [vmem:[#allocation10 + $0x10] sm:$0x3] %v1677_v6 }
  0x1b   :  { %92 = vst [vmem:[#allocation10 + $0x12] sm:$0x3] %v1677_v6  ;;  %93 = vst [vmem:[#allocation11] sm:$0x3] %v1677_v6 }
  0x1c   :  { %94 = vst [vmem:[#allocation11 + $0x2] sm:$0x3] %v1677_v6  ;;  %95 = vst [vmem:[#allocation11 + $0x4] sm:$0x3] %v1677_v6 }
  0x1d   :  { %96 = vst [vmem:[#allocation11 + $0x6] sm:$0x3] %v1677_v6  ;;  %97 = vst [vmem:[#allocation11 + $0x8] sm:$0x3] %v1677_v6 }
  0x1e   :  { %98 = vst [vmem:[#allocation11 + $0xa] sm:$0x3] %v1677_v6  ;;  %99 = vst [vmem:[#allocation11 + $0xc] sm:$0x3] %v1677_v6 }
  0x1f   :  { %100 = vst [vmem:[#allocation11 + $0xe] sm:$0x3] %v1677_v6  ;;  %101 = vst [vmem:[#allocation11 + $0x10] sm:$0x3] %v1677_v6 }
  0x20   :  { %102 = vst [vmem:[#allocation11 + $0x12] sm:$0x3] %v1677_v6  ;;  %103 = vst [vmem:[#allocation12] sm:$0x3] %v1677_v6 }
  0x21   :  { %104 = vst [vmem:[#allocation12 + $0x2] sm:$0x3] %v1677_v6  ;;  %105 = vst [vmem:[#allocation12 + $0x4] sm:$0x3] %v1677_v6 }
  0x22   :  { %106 = vst [vmem:[#allocation12 + $0x6] sm:$0x3] %v1677_v6  ;;  %107 = vst [vmem:[#allocation12 + $0x8] sm:$0x3] %v1677_v6 }
  0x23   :  { %108 = vst [vmem:[#allocation12 + $0xa] sm:$0x3] %v1677_v6  ;;  %109 = vst [vmem:[#allocation12 + $0xc] sm:$0x3] %v1677_v6 }
  0x24   :  { %110 = vst [vmem:[#allocation12 + $0xe] sm:$0x3] %v1677_v6  ;;  %111 = vst [vmem:[#allocation12 + $0x10] sm:$0x3] %v1677_v6 }
  0x25   :  { %112 = vst [vmem:[#allocation12 + $0x12] sm:$0x3] %v1677_v6  ;;  %113 = vst [vmem:[#allocation13] sm:$0x3] %v1677_v6 }
  0x26   :  { %114 = vst [vmem:[#allocation13 + $0x2] sm:$0x3] %v1677_v6  ;;  %115 = vst [vmem:[#allocation13 + $0x4] sm:$0x3] %v1677_v6 }
  0x27   :  { %116 = vst [vmem:[#allocation13 + $0x6] sm:$0x3] %v1677_v6  ;;  %117 = vst [vmem:[#allocation13 + $0x8] sm:$0x3] %v1677_v6 }
  0x28   :  { %118 = vst [vmem:[#allocation13 + $0xa] sm:$0x3] %v1677_v6  ;;  %119 = vst [vmem:[#allocation13 + $0xc] sm:$0x3] %v1677_v6 }
  0x29   :  { %120 = vst [vmem:[#allocation13 + $0xe] sm:$0x3] %v1677_v6  ;;  %121 = vst [vmem:[#allocation13 + $0x10] sm:$0x3] %v1677_v6 }
  0x2a   :  { %122 = vst [vmem:[#allocation13 + $0x12] sm:$0x3] %v1677_v6  ;;  %3464 = vst [vmem:[#allocation22_spill] sm:$0xff] %v1819_v7 }
  0x2b   :  { %47 = vst [vmem:[#allocation7] sm:$0x3] %v37_v12  ;;  %48 = vst [vmem:[#allocation7 + $0x2] sm:$0x3] %v40_v16 }
  0x2c   :  { %49 = vst [vmem:[#allocation7 + $0x4] sm:$0x3] %v43_v17  ;;  %50 = vst [vmem:[#allocation7 + $0x6] sm:$0x3] %v46_v18 }
  0x2d LB: > { %v3465_v3 = vld [vmem:[#allocation21_spill] sm:$0xff]  ;;  %v3466_v2 = vld [vmem:[#allocation20_spill] sm:$0xff]  ;;  %s139_s3 = sld [smem:[#allocation14]]  ;;  %s1674_s0 = sphi %s1835_s0, %s138_s0  }
  0x31   : > { %v3467_v7 = vld [vmem:[#allocation22_spill] sm:$0xff] }
  0x33   : > { %p1426_p0 = scmp.ne.s32.totalorder %s139_s3, 0 }
  0x35   : > { %143 = sbr.rel (%p1426_p0) target bundleno = 724 (0x2d4), region = 32 }
  0x3c   : > { %v1840_v19 = vld [vmem:[#allocation3 + $0x2] sm:$0x3]  ;;  %s1678_s4 = smov 127   ;;  %s1679_s26 = smov 112   ;;  %v1844_v20 = vld [vmem:[#allocation2] sm:$0x3]  ;;  %v1867_v40 = vstv %s3367_s1 }
  0x3d   : > { %232 = vrot.lane.b32.xlu1 %v1840_v19, %s1678_s4  ;;  %154 = vrot.lane.b32.xlu0 %v1840_v19, %s1679_s26  ;;  %3468 = vst [vmem:[#allocation23_spill] sm:$0xff] %v1844_v20  ;;  %v1846_v21 = vld [vmem:[#allocation3 + $0x4] sm:$0x3]  ;;  %v1345_v22 = vsub.f32 2.0, %v1844_v20  ;;  %v1849_v23 = vld [vmem:[#allocation3] sm:$0x3] }
  0x3e   : > { %v1680_v24 = vmov 1.0   ;;  %v1851_v25 = vld [vmem:[#allocation2 + $0x6] sm:$0x3]  ;;  %v1681_v26 = vmov 0.0   ;;  %v1856_v28 = vld [vmem:[#allocation3 + $0x6] sm:$0x3]  ;;  %v296_v47 = vsub.f32 %v1846_v21, %v1840_v19  ;;  %v295_v49 = vsub.f32 %v1840_v19, %v1849_v23 }
  0x3f   : > { %1339 = vst [vmem:[#allocation2] sm:$0x3] %v1680_v24  ;;  %3469 = vst [vmem:[#allocation24_spill] sm:$0xff] %v1851_v25  ;;  %v3372_v27 = vsub.f32 0.0, %v1851_v25  ;;  %v858_v29 = vld [vmem:[#allocation8] sm:$0x3]  ;;  %v297_v60 = vsub.f32 %v1856_v28, %v1846_v21 }
  0x40   : > { %1349 = vst [vmem:[#allocation3] sm:$0x3] %v1345_v22  ;;  %1342 = vst [vmem:[#allocation2 + $0x6] sm:$0x3] %v1681_v26  ;;  %v868_v30 = vld [vmem:[#allocation12] sm:$0x3] }
  0x41   : > { %234 = vrot.lane.b32.xlu1 %v1846_v21, %s1678_s4  ;;  %156 = vrot.lane.b32.xlu0 %v1846_v21, %s1679_s26  ;;  %1352 = vst [vmem:[#allocation3 + $0x6] sm:$0x3] %v3372_v27  ;;  %v888_v31 = vld [vmem:[#allocation9] sm:$0x3]  ;;  %v878_v32 = vsub.f32 %v858_v29, %v868_v30  ;;  %v898_v33 = vld [vmem:[#allocation13] sm:$0x3] }
  0x42   : > { %v908_v34 = vsub.f32 %v888_v31, %v898_v33  ;;  %3470 = vst [vmem:[#allocation25_spill] sm:$0xff] %v1867_v40  ;;  %v379_v48 = vmul.f32 0.14285715, %v296_v47  ;;  %v375_v50 = vld [vmem:[#allocation6 + $0x2] sm:$0x3]  ;;  %vm3450_vm10 = vcmask 1047554  }
  0x43   : > { %v918_v35 = vmul.f32 %v878_v32, %v878_v32  ;;  %v378_v52 = vmul.f32 0.14285715, %v295_v49  ;;  %v1883_v53 = vld [vmem:[#allocation7 + $0x2] sm:$0x3]  ;;  %v374_v54 = vld [vmem:[#allocation6] sm:$0x3] }
  0x44   : > { %v928_v36 = vmul.f32 %v908_v34, %v908_v34  ;;  %v1881_v51 = vadd.f32 %v379_v48, %v375_v50  ;;  %v1889_v57 = vld [vmem:[#allocation7] sm:$0x3]  ;;  %v380_v63 = vmul.f32 0.14285715, %v297_v60  ;;  %v376_v0 = vld [vmem:[#allocation6 + $0x4] sm:$0x3] }
  0x45   : > { %230 = vrot.lane.b32.xlu1 %v1849_v23, %s1678_s4  ;;  %152 = vrot.lane.b32.xlu0 %v1849_v23, %s1679_s26  ;;  %v1887_v56 = vadd.f32 %v378_v52, %v374_v54  ;;  %v377_v5 = vld [vmem:[#allocation6 + $0x6] sm:$0x3]  ;;  %v1897_v6 = vld [vmem:[#allocation7 + $0x6] sm:$0x3]  ;;  %v1901_v9 = vld [vmem:[#allocation7 + $0x4] sm:$0x3] }
  0x46   : > { %v938_v37 = vadd.f32 %v928_v36, %v918_v35  ;;  %v410_v55 = vadd.f32 %v1881_v51, %v1883_v53  ;;  %3473 = vst [vmem:[#allocation28_spill] sm:$0xff] %v1897_v6  ;;  %v1899_v8 = vadd.f32 %v380_v63, %v376_v0  ;;  %3475 = vst [vmem:[#allocation30_spill] sm:$0xff] %v1901_v9  ;;  %v323_v35 = vld [vmem:[#allocation11 + $0x6] sm:$0x3]  ;;  %v303_v47 = vld [vmem:[#allocation10 + $0xa] sm:$0x3] }
  0x47   : > { %v409_v59 = vadd.f32 %v1887_v56, %v1889_v57  ;;  %v412_v10 = vadd.f32 %v377_v5, %v1897_v6  ;;  %v304_v48 = vld [vmem:[#allocation10 + $0xc] sm:$0x3]  ;;  %v321_v50 = vld [vmem:[#allocation11 + $0x2] sm:$0x3]  ;;  %v299_v0 = vld [vmem:[#allocation10 + $0x2] sm:$0x3] }
  0x48   : > { %vm948_vm4 = vcmp.eq.f32.partialorder %v938_v37, 0.0  ;;  %v434_v58 = vmul.f32 0.5, %v410_v55  ;;  %3474 = vst [vmem:[#allocation29_spill] sm:$0xff] %v1899_v8  ;;  %v411_v13 = vadd.f32 %v1899_v8, %v1901_v9  ;;  %v324_v55 = vld [vmem:[#allocation11 + $0x8] sm:$0x3]  ;;  %v311_v60 = vadd.f32 %v304_v48, %v303_v47  ;;  %s1682_s29 = smov 16  }
  0x49   : > { %236 = vrot.lane.b32.xlu1 %v1856_v28, %s1678_s4  ;;  %158 = vrot.lane.b32.xlu0 %v1856_v28, %s1679_s26  ;;  %v958_v38 = vsel %vm948_vm4, 1.0, %v938_v37  ;;  %v433_v62 = vmul.f32 0.5, %v409_v59  ;;  %v436_v14 = vmul.f32 0.5, %v412_v10  ;;  %vm254_vm11 = vcmp.ge.s32.totalorder %v3467_v7, 127  ;;  %s1683_s30 = smov 1   ;;  %s1354_s6 = ssub.s32 0, %s1674_s0 }
  0x4a   : > { %1539 = vrsqrt.f32 %v958_v38  ;;  %v438_v61 = vsub.f32 1.0, %v434_v58  ;;  %v435_v17 = vmul.f32 0.5, %v411_v13  ;;  %v325_v38 = vld [vmem:[#allocation11 + $0xa] sm:$0x3]  ;;  %v306_v13 = vld [vmem:[#allocation10 + $0x10] sm:$0x3]  ;;  %s1439_s7 = smin.u32 %s1674_s0, %s1354_s6 }
  0x4b   : > { %v437_v4 = vsub.f32 1.0, %v433_v62  ;;  %v440_v18 = vsub.f32 1.0, %v436_v14  ;;  %v328_v62 = vld [vmem:[#allocation11 + $0x10] sm:$0x3]  ;;  %vm177_vm12 = vcmp.ge.s32.totalorder %v3467_v7, 112  ;;  %vm3482_vm0 = vcmp.eq.s32.totalorder %v3466_v2, 15 }
  0x4c   : > { %v1895_v1 = vmul.f32 0.6666667, %v438_v61  ;;  %v439_v24 = vsub.f32 1.0, %v435_v17  ;;  %v327_v61 = vld [vmem:[#allocation11 + $0xe] sm:$0x3]  ;;  %vm3483_vm2 = vcmp.eq.s32.totalorder %v3465_v3, 15 }
  0x4d   : > { %v1905_v12 = vmul.f32 0.6666667, %v437_v4  ;;  %v1910_v26 = vmul.f32 0.6666667, %v440_v18  ;;  %v302_v4 = vld [vmem:[#allocation10 + $0x8] sm:$0x3]  ;;  %v335_v17 = vadd.f32 %v328_v62, %v327_v61 }
  0x4e   : > { %v446_v11 = vsub.f32 0.0, %v1895_v1  ;;  %v1912_v29 = vmul.f32 0.6666667, %v439_v24  ;;  %1537 = sdivrem.u32 %s1439_s7, 10  ;;  %p1353_p1 = scmp.lt.s32.totalorder %s1674_s0, 0 }
  0x4f   : > { %v445_v16 = vsub.f32 0.0, %v1905_v12  ;;  %3476 = vst [vmem:[#allocation31_spill] sm:$0xff] %v1910_v26  ;;  %v448_v30 = vsub.f32 0.0, %v1910_v26 }
  0x50   : > { %v450_v15 = vmax.f32 %v446_v11, 0.0  ;;  %3477 = vst [vmem:[#allocation32_spill] sm:$0xff] %v1912_v29  ;;  %v447_v31 = vsub.f32 0.0, %v1912_v29  ;;  %v305_v11 = vld [vmem:[#allocation10 + $0xe] sm:$0x3] }
  0x51   : > { %v449_v22 = vmax.f32 %v445_v16, 0.0  ;;  %v1916_v33 = vmax.f32 %v448_v30, 0.0 }
  0x52   : > { %1541 = vrsqrt.f32 %v450_v15  ;;  %vm462_vm6 = vcmp.eq.f32.partialorder %v450_v15, inf  ;;  %v465_v49 = vand.u32 2147483648, %v450_v15  ;;  %vm464_vm7 = vcmp.eq.f32.partialorder %v450_v15, 0.0 }
  0x53   : > { %1543 = vrsqrt.f32 %v449_v22  ;;  %vm455_vm8 = vcmp.eq.f32.partialorder %v449_v22, inf  ;;  %v458_v14 = vand.u32 2147483648, %v449_v22  ;;  %vm457_vm9 = vcmp.eq.f32.partialorder %v449_v22, 0.0 }
  0x54   : > { %v1540_v39 = vpop.eup %1539  ;;  %1545 = vrsqrt.f32 %v1916_v33  ;;  %vm476_vm13 = vcmp.eq.f32.partialorder %v1916_v33, inf }
  0x55   : > { %v978_v41 = vmul.f32 %v1540_v39, %v938_v37  ;;  %v999_v42 = vmul.f32 %v1540_v39, %v1867_v40  ;;  %v1918_v37 = vmax.f32 %v447_v31, 0.0  ;;  %v326_v39 = vld [vmem:[#allocation11 + $0xc] sm:$0x3]  ;;  %v312_v31 = vadd.f32 %v311_v60, %v302_v4  ;;  %v889_v4 = vld [vmem:[#allocation9 + $0x2] sm:$0x3] }
  0x56   : > { %v333_v52 = vadd.f32 %v326_v39, %v325_v38  ;;  %v339_v16 = vadd.f32 %v326_v39, %v323_v35 }
  0x57   : > { %vm989_vm5 = vcmp.gt.f32.partialorder %v978_v41, %v1867_v40  ;;  %v1009_v43 = vmul.f32 %v999_v42, %v878_v32  ;;  %v1029_v44 = vmul.f32 %v999_v42, %v908_v34  ;;  %v300_v42 = vld [vmem:[#allocation10 + $0x4] sm:$0x3]  ;;  %1547 = vrsqrt.f32 %v1918_v37  ;;  %s1538_s8 = spop.drf %1537 }
  0x58   : > { %v334_v10 = vadd.f32 %v333_v52, %v324_v55  ;;  %v340_v39 = vadd.f32 %v339_v16, %v328_v62  ;;  %v859_v62 = vld [vmem:[#allocation8 + $0x2] sm:$0x3]  ;;  %vm469_vm15 = vcmp.eq.f32.partialorder %v1918_v37, inf  ;;  %s1358_s9 = ssub.s32 0, %s1538_s8 }
  0x59   : > { %v1871_v45 = vsel %vm989_vm5, %v1009_v43, %v878_v32  ;;  %v1873_v46 = vsel %vm989_vm5, %v1029_v44, %v908_v34  ;;  %v322_v34 = vld [vmem:[#allocation11 + $0x4] sm:$0x3]  ;;  %v301_v43 = vld [vmem:[#allocation10 + $0x6] sm:$0x3]  ;;  %s3637_s9 = smov (!%p1353_p1, %s1358_s9), %s1538_s8 }
  0x5a   : > { %3471 = vst [vmem:[#allocation26_spill] sm:$0xff] %v1871_v45  ;;  %3472 = vst [vmem:[#allocation27_spill] sm:$0xff] %v1873_v46  ;;  %v330_v44 = vadd.f32 %v323_v35, %v322_v34  ;;  %v308_v59 = vadd.f32 %v301_v43, %v300_v42  ;;  %v298_v42 = vld [vmem:[#allocation10] sm:$0x3]  ;;  %p1441_p2 = scmp.lt.s32.totalorder %s3637_s9, 0  ;;  %s1364_s10 = sadd.s32 10, %s3637_s9 }
  0x5b   : > { %1049 = vst [vmem:[#allocation8] sm:$0x3] %v1871_v45  ;;  %1059 = vst [vmem:[#allocation9] sm:$0x3] %v1873_v46 }
  0x5c   : > { %v1542_v32 = vpop.eup %1541  ;;  %v331_v63 = vadd.f32 %v330_v44, %v321_v50  ;;  %v337_v18 = vadd.f32 %v333_v52, %v330_v44  ;;  %v309_v30 = vadd.f32 %v308_v59, %v299_v0  ;;  %v315_v38 = vadd.f32 %v311_v60, %v308_v59  ;;  %v329_v52 = vld [vmem:[#allocation11 + $0x12] sm:$0x3]  ;;  %v869_v0 = vld [vmem:[#allocation12 + $0x2] sm:$0x3]  ;;  %s3639_s10 = smov (!%p1441_p2, %s1364_s10), %s3637_s9 }
  0x5d   : > { %v461_v36 = vmul.f32 %v1542_v32, %v450_v15  ;;  %v1544_v41 = vpop.eup %1543  ;;  %p1442_p3 = scmp.ne.s32.totalorder %s3639_s10, 0 }
  0x5e   : > { %v454_v58 = vmul.f32 %v1544_v41, %v449_v22  ;;  %v320_v41 = vld [vmem:[#allocation11] sm:$0x3]  ;;  %v1546_v44 = vpop.eup %1545  ;;  %v1942_v60 = vadd.f32 %v309_v30, %v298_v42 }
  0x5f   : > { %v463_v54 = vsel %vm462_vm6, %v450_v15, %v461_v36  ;;  %v317_v15 = vadd.f32 %v304_v48, %v301_v43  ;;  %v313_v36 = vadd.f32 %v306_v13, %v305_v11  ;;  %v1932_v48 = vadd.f32 %v337_v18, %v335_v17  ;;  %v862_v17 = vld [vmem:[#allocation8 + $0x8] sm:$0x3]  ;;  %v872_v18 = vld [vmem:[#allocation12 + $0x8] sm:$0x3] }
  0x60   : > { %v1922_v5 = vsel %vm464_vm7, %v465_v49, %v463_v54  ;;  %v456_v24 = vsel %vm455_vm8, %v449_v22, %v454_v58  ;;  %v1930_v22 = vadd.f32 %v334_v10, %v331_v63  ;;  %v307_v54 = vld [vmem:[#allocation10 + $0x12] sm:$0x3]  ;;  %v1938_v58 = vadd.f32 %v312_v31, %v309_v30 }
  0x61   : > { %v482_v32 = vmul.f32 %v1922_v5, %v1922_v5  ;;  %v1928_v35 = vsel %vm457_vm9, %v458_v14, %v456_v24  ;;  %v318_v43 = vadd.f32 %v317_v15, %v306_v13  ;;  %v1548_v55 = vpop.eup %1547  ;;  %v1940_v59 = vadd.f32 %v331_v63, %v320_v41  ;;  %v899_v14 = vld [vmem:[#allocation13 + $0x2] sm:$0x3]  ;;  %v892_v24 = vld [vmem:[#allocation9 + $0x8] sm:$0x3] }
  0x62   : > { %v1947_v10 = vadd.f32 %v315_v38, %v313_v36  ;;  %v481_v11 = vmul.f32 %v1928_v35, %v1928_v35  ;;  %v1952_v13 = vsub.f32 %v859_v62, %v869_v0  ;;  %v1954_v63 = vadd.f32 %v340_v39, %v329_v52  ;;  %v902_v36 = vld [vmem:[#allocation13 + $0x8] sm:$0x3] }
  0x63   : > { %v1945_v61 = vmul.f32 %v482_v32, %v1922_v5  ;;  %v1956_v16 = vadd.f32 %v318_v43, %v307_v54  ;;  %v475_v15 = vmul.f32 %v1546_v44, %v1916_v33  ;;  %v1959_v30 = vsub.f32 %v889_v4, %v899_v14 }
  0x64   : > { %v1962_v32 = vsub.f32 %v862_v17, %v872_v18  ;;  %v919_v38 = vmul.f32 %v1952_v13, %v1952_v13  ;;  %v468_v41 = vmul.f32 %v1548_v55, %v1918_v37  ;;  %v1968_v43 = vsub.f32 %v892_v24, %v902_v36 }
  0x65   : > { %3478 = vst [vmem:[#allocation33_spill] sm:$0xff] %v1959_v30  ;;  %vm586_vm14 = vcmp.eq.f32.partialorder %v1945_v61, 0.0  ;;  %v929_v44 = vmul.f32 %v1959_v30, %v1959_v30  ;;  %v1974_v62 = vmul.f32 %v481_v11, %v1928_v35  ;;  %v1980_v55 = vsel %vm476_vm13, %v1916_v33, %v475_v15 }
  0x66   : > { %3479 = vst [vmem:[#allocation34_spill] sm:$0xff] %v1968_v43  ;;  %v922_v4 = vmul.f32 %v1962_v32, %v1962_v32  ;;  %v932_v14 = vmul.f32 %v1968_v43, %v1968_v43  ;;  %v1991_v24 = vsel %vm586_vm14, 1.0, %v1945_v61  ;;  %v1994_v36 = vsel %vm469_vm15, %v1918_v37, %v468_v41 }
  0x67   : > { %v1986_v17 = vadd.f32 %v929_v44, %v919_v38  ;;  %vm478_vm6 = vcmp.eq.f32.partialorder %v1916_v33, 0.0  ;;  %vm471_vm7 = vcmp.eq.f32.partialorder %v1918_v37, 0.0  ;;  %vm585_vm9 = vcmp.eq.f32.partialorder %v1974_v62, 0.0 }
  0x68   : > { %v1996_v38 = vadd.f32 %v932_v14, %v922_v4  ;;  %v3480_v4 = vrot.slane %v1840_v19, 7 }
  0x69   : > { %vm949_vm4 = vcmp.eq.f32.partialorder %v1986_v17, 0.0 }
  0x6a   : > { %v3481_v8 = vmov %v3480_v4  ;;  %vm952_vm5 = vcmp.eq.f32.partialorder %v1996_v38, 0.0 }
  0xaf   : > { %v233_v42 = vpop.permute.xlu1 %232  ;;  %v155_v39 = vpop.permute.xlu0 %154 }
  0xb0   : > { %v240_v52 = vrot.slane %v233_v42, 6  ;;  %v163_v54 = vrot.slane %v155_v39, 6  ;;  %v262_v27 = vrot.slane %v233_v42, 7  ;;  %v185_v31 = vrot.slane %v155_v39, 7 }
  0xb2   : > { %v241_v18 = vsel %vm3450_vm10, %v240_v52, %v233_v42  ;;  %v164_v11 = vsel %vm3450_vm10, %v163_v54, %v155_v39 }
  0xb3   : > { %v247_v15 = vrot.slane %v241_v18, 6  ;;  %v170_v0 = vrot.slane %v164_v11, 6  ;;  %v235_v50 = vpop.permute.xlu1 %234  ;;  %v157_v49 = vpop.permute.xlu0 %156 }
  0xb4   : > { %v242_v47 = vrot.slane %v235_v50, 6  ;;  %v165_v34 = vrot.slane %v157_v49, 6  ;;  %v263_v54 = vrot.slane %v235_v50, 7  ;;  %v186_v25 = vrot.slane %v157_v49, 7 }
  0xb5   : > { %v251_v44 = vsel %vm3450_vm10, %v247_v15, %v233_v42  ;;  %v174_v52 = vsel %vm3450_vm10, %v170_v0, %v155_v39 }
  0xb6   : > { %v270_v41 = vsel %vm254_vm11, %v251_v44, %v262_v27  ;;  %v193_v18 = vsel %vm177_vm12, %v174_v52, %v185_v31  ;;  %v243_v11 = vsel %vm3450_vm10, %v242_v47, %v235_v50  ;;  %v166_v20 = vsel %vm3450_vm10, %v165_v34, %v157_v49 }
  0xb7   : > { %v274_v14 = vsub.f32 %v270_v41, %v3480_v4  ;;  %v209_v42 = vsub.f32 %v193_v18, %v3481_v8  ;;  %v248_v15 = vrot.slane %v243_v11, 6  ;;  %v171_v39 = vrot.slane %v166_v20, 6  ;;  %v231_v0 = vpop.permute.xlu1 %230  ;;  %v153_v46 = vpop.permute.xlu0 %152 }
  0xb8   : > { %v238_v43 = vrot.slane %v231_v0, 6  ;;  %v261_v45 = vrot.slane %v231_v0, 7  ;;  %v161_v27 = vrot.slane %v153_v46, 6  ;;  %v184_v44 = vrot.slane %v153_v46, 7 }
  0xb9   : > { %v284_v30 = vrot.slane %v274_v14, 1  ;;  %v219_v31 = vrot.slane %v209_v42, 1  ;;  %v252_v47 = vsel %vm3450_vm10, %v248_v15, %v235_v50  ;;  %v175_v34 = vsel %vm3450_vm10, %v171_v39, %v157_v49  ;;  %v359_v15 = vld [vmem:[#allocation5 + $0x2] sm:$0x3] }
  0xba   : > { %v271_v52 = vsel %vm254_vm11, %v252_v47, %v263_v54  ;;  %v194_v19 = vsel %vm177_vm12, %v175_v34, %v186_v25  ;;  %v239_v20 = vsel %vm3450_vm10, %v238_v43, %v231_v0  ;;  %v162_v8 = vsel %vm3450_vm10, %v161_v27, %v153_v46 }
  0xbb   : > { %v292_v41 = vsel %vm3482_vm0, 0.0, %v284_v30  ;;  %v227_v18 = vsel %vm3483_vm2, 0.0, %v219_v31  ;;  %v3484_v50 = vrot.slane %v1846_v21, 7  ;;  %v237_v54 = vpop.permute.xlu1 %236  ;;  %v246_v14 = vrot.slane %v239_v20, 6 }
  0xbc   : > { %v363_v25 = vadd.f32 %v1930_v22, %v292_v41  ;;  %v347_v43 = vadd.f32 %v1938_v58, %v227_v18  ;;  %v169_v42 = vrot.slane %v162_v8, 6  ;;  %v244_v27 = vrot.slane %v237_v54, 6 }
  0xbd   : > { %v275_v11 = vsub.f32 %v271_v52, %v3484_v50  ;;  %v3485_v49 = vmov %v3484_v50  ;;  %v959_v31 = vsel %vm949_vm4, 1.0, %v1986_v17  ;;  %v250_v34 = vsel %vm3450_vm10, %v246_v14, %v231_v0 }
  0xbe   : > { %v210_v4 = vsub.f32 %v194_v19, %v3485_v49  ;;  %v367_v47 = vmul.f32 0.14285715, %v363_v25  ;;  %v351_v21 = vmul.f32 0.14285715, %v347_v43  ;;  %v173_v52 = vsel %vm3450_vm10, %v169_v42, %v153_v46  ;;  %v159_v19 = vpop.permute.xlu0 %158  ;;  %v360_v49 = vld [vmem:[#allocation5 + $0x4] sm:$0x3] }
  0xbf   : > { %v285_v30 = vrot.slane %v275_v11, 1  ;;  %v269_v20 = vsel %vm254_vm11, %v250_v34, %v261_v45  ;;  %v192_v8 = vsel %vm177_vm12, %v173_v52, %v184_v44  ;;  %v3487_v46 = vrot.slane %v1849_v23, 7  ;;  %v343_v11 = vld [vmem:[#allocation4 + $0x2] sm:$0x3] }
  0xc0   : > { %v220_v39 = vrot.slane %v210_v4, 1  ;;  %v2043_v41 = vadd.f32 %v367_v47, %v359_v15  ;;  %v245_v45 = vsel %vm3450_vm10, %v244_v27, %v237_v54  ;;  %v264_v43 = vrot.slane %v237_v54, 7 }
  0xc1   : > { %v293_v22 = vsel %vm3482_vm0, 0.0, %v285_v30  ;;  %v273_v50 = vsub.f32 %v269_v20, %v3487_v46  ;;  %v3488_v4 = vmov %v3487_v46  ;;  %v167_v44 = vrot.slane %v159_v19, 6 }
  0xc2   : > { %v228_v58 = vsel %vm3483_vm2, 0.0, %v220_v39  ;;  %3486 = vst [vmem:[#allocation35_spill] sm:$0xff] %v2043_v41  ;;  %v364_v18 = vadd.f32 %v1932_v48, %v293_v22  ;;  %v208_v25 = vsub.f32 %v192_v8, %v3488_v4  ;;  %v390_v14 = vmul.f32 %v2043_v41, %v2043_v41 }
  0xc3   : > { %v348_v0 = vadd.f32 %v1947_v10, %v228_v58  ;;  %v283_v42 = vrot.slane %v273_v50, 1  ;;  %v187_v10 = vrot.slane %v159_v19, 7  ;;  %v249_v30 = vrot.slane %v245_v45, 6 }
  0xc4   : > { %v368_v48 = vmul.f32 0.14285715, %v364_v18  ;;  %v218_v15 = vrot.slane %v208_v25, 1  ;;  %v168_v39 = vsel %vm3450_vm10, %v167_v44, %v159_v19  ;;  %v2057_v47 = vadd.f32 %v351_v21, %v343_v11  ;;  %v344_v18 = vld [vmem:[#allocation4 + $0x4] sm:$0x3] }
  0xc5   : > { %v352_v34 = vmul.f32 0.14285715, %v348_v0  ;;  %v291_v27 = vsel %vm3482_vm0, 0.0, %v283_v42  ;;  %v172_v52 = vrot.slane %v168_v39, 6  ;;  %v253_v20 = vsel %vm3450_vm10, %v249_v30, %v237_v54  ;;  %v358_v21 = vld [vmem:[#allocation5] sm:$0x3] }
  0xc6   : > { %3489 = vst [vmem:[#allocation36_spill] sm:$0xff] %v2057_v47  ;;  %v2059_v23 = vadd.f32 %v368_v48, %v360_v49  ;;  %v362_v22 = vadd.f32 %v1940_v59, %v291_v27  ;;  %v226_v58 = vsel %vm3483_vm2, 0.0, %v218_v15  ;;  %v386_v8 = vmul.f32 %v2057_v47, %v2057_v47  ;;  %v342_v49 = vld [vmem:[#allocation4] sm:$0x3]  ;;  %v874_v47 = vld [vmem:[#allocation12 + $0xc] sm:$0x3] }
  0xc7   : > { %v346_v46 = vadd.f32 %v1942_v60, %v226_v58  ;;  %v272_v0 = vsel %vm254_vm11, %v253_v20, %v264_v43  ;;  %v176_v50 = vsel %vm3450_vm10, %v172_v52, %v159_v19  ;;  %v962_v59 = vsel %vm952_vm5, 1.0, %v1996_v38  ;;  %v361_v20 = vld [vmem:[#allocation5 + $0x6] sm:$0x3] }
  0xc8   : > { %3490 = vst [vmem:[#allocation37_spill] sm:$0xff] %v2059_v23  ;;  %v366_v11 = vmul.f32 0.14285715, %v362_v22  ;;  %v3491_v54 = vrot.slane %v1856_v28, 7  ;;  %v195_v25 = vsel %vm177_vm12, %v176_v50, %v187_v10  ;;  %v2080_v45 = vadd.f32 %v390_v14, %v386_v8 }
  0xc9   : > { %v350_v60 = vmul.f32 0.14285715, %v346_v46  ;;  %1549 = vrsqrt.f32 %v959_v31  ;;  %v2084_v19 = vadd.f32 %v352_v34, %v344_v18  ;;  %v391_v48 = vmul.f32 %v2059_v23, %v2059_v23 }
  0xca   : > { %v276_v4 = vsub.f32 %v272_v0, %v3491_v54  ;;  %v3492_v44 = vmov %v3491_v54  ;;  %v2088_v42 = vadd.f32 %v366_v11, %v358_v21  ;;  %vm414_vm8 = vcmp.eq.f32.partialorder %v2080_v45, 0.0  ;;  %v345_v21 = vld [vmem:[#allocation4 + $0x6] sm:$0x3] }
  0xcb   : > { %v211_v43 = vsub.f32 %v195_v25, %v3492_v44  ;;  %3493 = vst [vmem:[#allocation38_spill] sm:$0xff] %v2084_v19  ;;  %v2091_v30 = vadd.f32 %v350_v60, %v342_v49  ;;  %v418_v14 = vsel %vm414_vm8, 1.0, %v2080_v45  ;;  %1551 = vrsqrt.f32 %v962_v59 }
  0xcc   : > { %3494 = vst [vmem:[#allocation39_spill] sm:$0xff] %v2088_v42  ;;  %v286_v15 = vrot.slane %v276_v4, 1  ;;  %v389_v28 = vmul.f32 %v2088_v42, %v2088_v42  ;;  %v3496_v39 = vand.u32 2147483648, %v1916_v33  ;;  %1553 = vrsqrt.f32 %v418_v14 }
  0xcd   : > { %3495 = vst [vmem:[#allocation40_spill] sm:$0xff] %v2091_v30  ;;  %v221_v10 = vrot.slane %v211_v43, 1  ;;  %v385_v27 = vmul.f32 %v2091_v30, %v2091_v30  ;;  %v387_v58 = vmul.f32 %v2084_v19, %v2084_v19  ;;  %1555 = vrcp.f32 %v1991_v24  ;;  %v903_v30 = vld [vmem:[#allocation13 + $0xa] sm:$0x3] }
  0xce   : > { %v294_v31 = vsel %vm3482_vm0, 0.0, %v286_v15  ;;  %v2103_v34 = vsel %vm478_vm6, %v3496_v39, %v1980_v55  ;;  %v3497_v33 = vand.u32 2147483648, %v1918_v37  ;;  %v510_v4 = vmul.f32 %v1895_v1, %v1895_v1 }
  0xcf   : > { %v365_v52 = vadd.f32 %v1954_v63, %v294_v31  ;;  %v229_v22 = vsel %vm3483_vm2, 0.0, %v221_v10  ;;  %v2122_v63 = vadd.f32 %v389_v28, %v385_v27  ;;  %v484_v46 = vmul.f32 %v2103_v34, %v2103_v34 }
  0xd0   : > { %v349_v8 = vadd.f32 %v1956_v16, %v229_v22  ;;  %v2120_v55 = vsel %vm471_vm7, %v3497_v33, %v1994_v36  ;;  %v2126_v0 = vadd.f32 %v391_v48, %v387_v58  ;;  %v589_v36 = vsel %vm585_vm9, 1.0, %v1974_v62 }
  0xd1   : > { %v369_v18 = vmul.f32 0.14285715, %v365_v52  ;;  %vm413_vm11 = vcmp.eq.f32.partialorder %v2122_v63, 0.0  ;;  %v483_v24 = vmul.f32 %v2120_v55, %v2120_v55  ;;  %v2141_v54 = vmul.f32 %v484_v46, %v2103_v34 }
  0xd2   : > { %v353_v50 = vmul.f32 0.14285715, %v349_v8  ;;  %v417_v37 = vsel %vm413_vm11, 1.0, %v2122_v63  ;;  %vm415_vm12 = vcmp.eq.f32.partialorder %v2126_v0, 0.0  ;;  %v509_v48 = vmul.f32 %v1905_v12, %v1905_v12 }
  0xd3   : > { %v2129_v16 = vadd.f32 %v369_v18, %v361_v20  ;;  %v1550_v11 = vpop.eup %1549  ;;  %1557 = vrsqrt.f32 %v417_v37  ;;  %v419_v15 = vsel %vm415_vm12, 1.0, %v2126_v0  ;;  %v2157_v10 = vmul.f32 %v483_v24, %v2120_v55 }
  0xd4   : > { %v2135_v59 = vadd.f32 %v353_v50, %v345_v21  ;;  %v2148_v60 = vmul.f32 %v1550_v11, %v1986_v17  ;;  %v2151_v44 = vmul.f32 %v1550_v11, %v1867_v40  ;;  %1559 = vrcp.f32 %v589_v36 }
  0xd5   : > { %3498 = vst [vmem:[#allocation41_spill] sm:$0xff] %v2129_v16  ;;  %v392_v49 = vmul.f32 %v2129_v16, %v2129_v16  ;;  %v1552_v43 = vpop.eup %1551  ;;  %vm588_vm14 = vcmp.eq.f32.partialorder %v2141_v54, 0.0  ;;  %v514_v27 = vmul.f32 %v510_v4, %v1895_v1  ;;  %1561 = vrsqrt.f32 %v419_v15 }
  0xd6   : > { %3499 = vst [vmem:[#allocation42_spill] sm:$0xff] %v2135_v59  ;;  %v388_v25 = vmul.f32 %v2135_v59, %v2135_v59  ;;  %3500 = vst [vmem:[#allocation43_spill] sm:$0xff] %v2148_v60  ;;  %v2159_v14 = vpop.eup %1553  ;;  %v2164_v17 = vmul.f32 %v1552_v43, %v1996_v38  ;;  %vm3459_vm13 = vcmp.gt.f32.partialorder %v2148_v60, %v1867_v40  ;;  %v592_v18 = vsel %vm588_vm14, 1.0, %v2141_v54  ;;  %v873_v60 = vld [vmem:[#allocation12 + $0xa] sm:$0x3] }
  0xd7   : > { %3501 = vst [vmem:[#allocation44_spill] sm:$0xff] %v2151_v44  ;;  %3502 = vst [vmem:[#allocation45_spill] sm:$0xff] %v2159_v14  ;;  %v2169_v31 = vmul.f32 %v1552_v43, %v1867_v40  ;;  %v2174_v39 = vmul.f32 %v2159_v14, %v2080_v45  ;;  %v1010_v52 = vmul.f32 %v2151_v44, %v1952_v13  ;;  %v1556_v22 = vpop.eup %1555  ;;  %vm587_vm5 = vcmp.eq.f32.partialorder %v2157_v10, 0.0  ;;  %v875_v44 = vld [vmem:[#allocation12 + $0xe] sm:$0x3] }
  0xd8   : > { %v2161_v28 = vadd.f32 %v392_v49, %v388_v25  ;;  %3503 = vst [vmem:[#allocation46_spill] sm:$0xff] %v2164_v17  ;;  %v512_v38 = vmul.f32 %v1910_v26, %v1910_v26  ;;  %vm3451_vm4 = vcmp.gt.f32.partialorder %v2164_v17, %v1867_v40  ;;  %vm490_vm6 = vcmp.lt.f32.partialorder %v1895_v1, 0.0  ;;  %v900_v17 = vld [vmem:[#allocation13 + $0x4] sm:$0x3] }
  0xd9   : > { %3504 = vst [vmem:[#allocation47_spill] sm:$0xff] %v2169_v31  ;;  %v1013_v58 = vmul.f32 %v2169_v31, %v1962_v32  ;;  %v2188_v8 = vmul.f32 0.5, %v2174_v39  ;;  %v2194_v33 = vsel %vm3459_vm13, %v1010_v52, %v1952_v13  ;;  %vm489_vm7 = vcmp.lt.f32.partialorder %v1905_v12, 0.0 }
  0xda   : > { %vm416_vm15 = vcmp.eq.f32.partialorder %v2161_v28, 0.0  ;;  %3505 = vst [vmem:[#allocation48_spill] sm:$0xff] %v2194_v33  ;;  %1050 = vst [vmem:[#allocation8 + $0x2] sm:$0x3] %v2194_v33  ;;  %v513_v43 = vmul.f32 %v509_v48, %v1905_v12  ;;  %v2229_v15 = vmul.f32 %v512_v38, %v1910_v26  ;;  %v2243_v48 = vmul.f32 2.0, %v1928_v35 }
  0xdb   : > { %v420_v20 = vsel %vm416_vm15, 1.0, %v2161_v28  ;;  %v2201_v21 = vsel %vm3451_vm4, %v1013_v58, %v1962_v32  ;;  %v494_v46 = vsub.f32 %v2188_v8, %v1945_v61  ;;  %v498_v13 = vadd.f32 %v1945_v61, %v2188_v8 }
  0xdc   : > { %1563 = vrsqrt.f32 %v420_v20  ;;  %3506 = vst [vmem:[#allocation49_spill] sm:$0xff] %v2201_v21  ;;  %v506_v50 = vmul.f32 %v2188_v8, %v2188_v8  ;;  %v2212_v24 = vmul.f32 %v1556_v22, %v2188_v8  ;;  %1053 = vst [vmem:[#allocation8 + $0x8] sm:$0x3] %v2201_v21  ;;  %v511_v32 = vmul.f32 %v1912_v29, %v1912_v29 }
  0xdd   : > { %v2218_v37 = vpop.eup %1557  ;;  %v502_v36 = vmul.f32 %v498_v13, %v494_v46  ;;  %v591_v61 = vsel %vm587_vm5, 1.0, %v2157_v10  ;;  %1565 = vrcp.f32 %v592_v18  ;;  %v860_v18 = vld [vmem:[#allocation8 + $0x4] sm:$0x3]  ;;  %v870_v46 = vld [vmem:[#allocation12 + $0x4] sm:$0x3]  ;;  %v2246_v38 = vmul.f32 0.25, %v2080_v45 }
  0xde   : > { %v518_v11 = vadd.f32 %v514_v27, %v506_v50  ;;  %v602_v49 = vsub.f32 1.0, %v2212_v24  ;;  %v2224_v4 = vmul.f32 %v2218_v37, %v2122_v63  ;;  %v1560_v25 = vpop.eup %1559  ;;  %v2240_v20 = vmul.f32 %v511_v32, %v1912_v29 }
  0xdf   : > { %1567 = vrcp.f32 %v591_v61  ;;  %v2249_v13 = vmul.f32 2.0, %v1922_v5  ;;  %v2265_v45 = vmul.f32 2.0, %v2103_v34  ;;  %v2269_v5 = vmul.f32 2.0, %v2120_v55  ;;  %v861_v34 = vld [vmem:[#allocation8 + $0x6] sm:$0x3] }
  0xe0   : > { %v2231_v52 = vsel %vm490_vm6, %v502_v36, %v518_v11  ;;  %v607_v27 = vmul.f32 0.11111111, %v602_v49  ;;  %v2234_v22 = vmul.f32 0.5, %v2224_v4  ;;  %v2262_v49 = vpop.eup %1561  ;;  %v2271_v61 = vsub.f32 %v860_v18, %v870_v46 }
  0xe1   : > { %v2237_v58 = vmax.f32 %v2231_v52, 0.0  ;;  %3507 = vst [vmem:[#allocation50_spill] sm:$0xff] %v2262_v49  ;;  %3508 = vst [vmem:[#allocation51_spill] sm:$0xff] %v2265_v45  ;;  %vm492_vm8 = vcmp.lt.f32.partialorder %v1910_v26, 0.0  ;;  %v2279_v2 = vmul.f32 0.25, %v2122_v63  ;;  %v2287_v46 = vmul.f32 0.25, %v2126_v0 }
  0xe2   : > { %v2251_v50 = vsub.f32 1.0, %v607_v27  ;;  %v493_v36 = vsub.f32 %v2234_v22, %v1974_v62  ;;  %v497_v32 = vadd.f32 %v1974_v62, %v2234_v22  ;;  %v505_v11 = vmul.f32 %v2234_v22, %v2234_v22  ;;  %3509 = vst [vmem:[#allocation52_spill] sm:$0xff] %v2269_v5  ;;  %3510 = vst [vmem:[#allocation53_spill] sm:$0xff] %v2271_v61  ;;  %v890_v27 = vld [vmem:[#allocation9 + $0x4] sm:$0x3] }
  0xe3   : > { %v2260_v35 = vmul.f32 %v1560_v25, %v2234_v22  ;;  %1569 = vrsqrt.f32 %v2237_v58  ;;  %3513 = vst [vmem:[#allocation56_spill] sm:$0xff] %v2287_v46  ;;  %v2297_v63 = vmul.f32 %v2262_v49, %v2126_v0  ;;  %v863_v5 = vld [vmem:[#allocation8 + $0xa] sm:$0x3]  ;;  %v2305_v21 = vsub.f32 %v890_v27, %v900_v17  ;;  %v867_v45 = vld [vmem:[#allocation8 + $0x12] sm:$0x3] }
  0xe4   : > { %v501_v7 = vmul.f32 %v497_v32, %v493_v36  ;;  %v517_v23 = vadd.f32 %v513_v43, %v505_v11  ;;  %v615_v19 = vmul.f32 4.0, %v2251_v50  ;;  %v639_v18 = vmul.f32 12.0, %v2251_v50  ;;  %v871_v43 = vld [vmem:[#allocation12 + $0x6] sm:$0x3]  ;;  %v877_v26 = vld [vmem:[#allocation12 + $0x12] sm:$0x3] }
  0xe5   : > { %v601_v25 = vsub.f32 1.0, %v2260_v35  ;;  %3514 = vst [vmem:[#allocation57_spill] sm:$0xff] %v2297_v63  ;;  %3515 = vst [vmem:[#allocation58_spill] sm:$0xff] %v2305_v21  ;;  %v2315_v49 = vsub.f32 %v861_v34, %v871_v43  ;;  %v2322_v27 = vsub.f32 %v863_v5, %v873_v60  ;;  %vm538_vm9 = vcmp.eq.f32.partialorder %v2237_v58, inf }
  0xe6   : > { %v2273_v62 = vpop.eup %1563  ;;  %v2291_v36 = vsel %vm489_vm7, %v501_v7, %v517_v23  ;;  %v2309_v7 = vmul.f32 %v2271_v61, %v2271_v61  ;;  %v619_v0 = vmul.f32 %v615_v19, %v2251_v50  ;;  %v643_v11 = vmul.f32 %v639_v18, %v2251_v50 }
  0xe7   : > { %3511 = vst [vmem:[#allocation54_spill] sm:$0xff] %v2273_v62  ;;  %v2283_v55 = vmul.f32 %v2273_v62, %v2161_v28  ;;  %v606_v32 = vmul.f32 0.11111111, %v601_v25  ;;  %v2300_v31 = vmax.f32 %v2291_v36, 0.0  ;;  %v1566_v23 = vpop.eup %1565  ;;  %3516 = vst [vmem:[#allocation59_spill] sm:$0xff] %v2315_v49  ;;  %v2331_v18 = vmul.f32 0.5, %v2297_v63 }
  0xe8   : > { %3517 = vst [vmem:[#allocation60_spill] sm:$0xff] %v2322_v27  ;;  %v623_v9 = vmul.f32 %v619_v0, %v2251_v50  ;;  %v1428_v46 = vadd.f32 -3.0, %v643_v11  ;;  %vm491_vm11 = vcmp.lt.f32.partialorder %v1912_v29, 0.0  ;;  %vm540_vm12 = vcmp.eq.f32.partialorder %v2237_v58, 0.0 }
  0xe9   : > { %3512 = vst [vmem:[#allocation55_spill] sm:$0xff] %v2283_v55  ;;  %v2303_v40 = vmul.f32 0.5, %v2283_v55  ;;  %v2311_v25 = vsub.f32 1.0, %v606_v32  ;;  %1571 = vrsqrt.f32 %v2300_v31  ;;  %v2324_v61 = vpop.eup %1567  ;;  %vm531_vm14 = vcmp.eq.f32.partialorder %v2300_v31, inf }
  0xea   : > { %1573 = vrcp.f32 %v1428_v46  ;;  %v507_v46 = vmul.f32 %v2331_v18, %v2331_v18  ;;  %vm533_vm15 = vcmp.eq.f32.partialorder %v2300_v31, 0.0 }
  0xeb   : > { %v614_v32 = vmul.f32 4.0, %v2311_v25  ;;  %v638_v19 = vmul.f32 12.0, %v2311_v25  ;;  %v496_v34 = vsub.f32 %v2303_v40, %v2141_v54  ;;  %v500_v43 = vadd.f32 %v2141_v54, %v2303_v40 }
  0xec   : > { %v508_v17 = vmul.f32 %v2303_v40, %v2303_v40  ;;  %v2338_v60 = vmul.f32 %v1566_v23, %v2303_v40  ;;  %v626_v54 = vmul.f32 3.0, %v2311_v25 }
  0xed   : > { %v618_v5 = vmul.f32 %v614_v32, %v2311_v25  ;;  %v642_v33 = vmul.f32 %v638_v19, %v2311_v25  ;;  %v1570_v63 = vpop.eup %1569  ;;  %v504_v16 = vmul.f32 %v500_v43, %v496_v34  ;;  %v495_v32 = vsub.f32 %v2331_v18, %v2157_v10  ;;  %v865_v43 = vld [vmem:[#allocation8 + $0xe] sm:$0x3] }
  0xee   : > { %v520_v59 = vadd.f32 %v2229_v15, %v508_v17  ;;  %v604_v23 = vsub.f32 1.0, %v2338_v60  ;;  %v537_v62 = vmul.f32 %v1570_v63, %v2237_v58  ;;  %v499_v34 = vadd.f32 %v2157_v10, %v2331_v18  ;;  %v864_v17 = vld [vmem:[#allocation8 + $0xc] sm:$0x3] }
  0xef   : > { %v1427_v3 = vadd.f32 -3.0, %v642_v33  ;;  %v622_v0 = vmul.f32 %v618_v5, %v2311_v25  ;;  %v627_v33 = vmul.f32 3.0, %v2251_v50 }
  0xf0   : > { %v2354_v11 = vsel %vm492_vm8, %v504_v16, %v520_v59  ;;  %v609_v19 = vmul.f32 0.11111111, %v604_v23  ;;  %v539_v16 = vsel %vm538_vm9, %v2237_v58, %v537_v62  ;;  %v541_v59 = vand.u32 2147483648, %v2237_v58 }
  0xf1   : > { %1575 = vrcp.f32 %v1427_v3  ;;  %v2359_v15 = vmax.f32 %v2354_v11, 0.0  ;;  %v534_v3 = vand.u32 2147483648, %v2300_v31  ;;  %v631_v10 = vsub.f32 %v623_v9, %v627_v33  ;;  %v866_v33 = vld [vmem:[#allocation8 + $0x10] sm:$0x3] }
  0xf2   : > { %v2364_v63 = vsub.f32 1.0, %v609_v19  ;;  %v630_v23 = vsub.f32 %v622_v0, %v626_v54  ;;  %v503_v62 = vmul.f32 %v499_v34, %v495_v32  ;;  %v542_v55 = vsel %vm540_vm12, %v541_v59, %v539_v16  ;;  %v893_v59 = vld [vmem:[#allocation9 + $0xa] sm:$0x3] }
  0xf3   : > { %1577 = vrsqrt.f32 %v2359_v15  ;;  %v1572_v5 = vpop.eup %1571  ;;  %v519_v9 = vadd.f32 %v2240_v20, %v507_v46  ;;  %v2382_v54 = vmul.f32 0.25, %v2161_v28  ;;  %v2387_v34 = vadd.f32 %v542_v55, %v2188_v8  ;;  %v891_v28 = vld [vmem:[#allocation9 + $0x6] sm:$0x3] }
  0xf4   : > { %v617_v19 = vmul.f32 4.0, %v2364_v63  ;;  %v641_v41 = vmul.f32 12.0, %v2364_v63  ;;  %v530_v14 = vmul.f32 %v1572_v5, %v2300_v31  ;;  %v876_v5 = vld [vmem:[#allocation12 + $0x10] sm:$0x3]  ;;  %v635_v20 = vsub.f32 %v631_v10, %v2212_v24  ;;  %v1574_v10 = vpop.eup %1573 }
  0xf5   : > { %3518 = vst [vmem:[#allocation61_spill] sm:$0xff] %v2382_v54  ;;  %v2393_v46 = vsub.f32 %v864_v17, %v874_v47  ;;  %v2395_v16 = vsub.f32 %v865_v43, %v875_v44  ;;  %v634_v8 = vsub.f32 %v630_v23, %v2260_v35  ;;  %v2402_v42 = vsel %vm491_vm11, %v503_v62, %v519_v9  ;;  %v896_v43 = vld [vmem:[#allocation9 + $0x10] sm:$0x3] }
  0xf6   : > { %v621_v0 = vmul.f32 %v617_v19, %v2364_v63  ;;  %v645_v32 = vmul.f32 %v641_v41, %v2364_v63  ;;  %v532_v58 = vsel %vm531_vm14, %v2300_v31, %v530_v14  ;;  %v894_v19 = vld [vmem:[#allocation9 + $0xc] sm:$0x3]  ;;  %3521 = vst [vmem:[#allocation64_spill] sm:$0xff] %v2402_v42  ;;  %v901_v14 = vld [vmem:[#allocation13 + $0x6] sm:$0x3]  ;;  %v629_v17 = vmul.f32 3.0, %v2364_v63 }
  0xf7   : > { %3519 = vst [vmem:[#allocation62_spill] sm:$0xff] %v2393_v46  ;;  %3520 = vst [vmem:[#allocation63_spill] sm:$0xff] %v2395_v16  ;;  %v535_v41 = vsel %vm533_vm15, %v534_v3, %v532_v58  ;;  %v2410_v31 = vand.u32 2147483647, %v2387_v34  ;;  %v904_v3 = vld [vmem:[#allocation13 + $0xc] sm:$0x3]  ;;  %v2414_v23 = vsub.f32 %v866_v33, %v876_v5  ;;  %v2416_v62 = vsub.f32 %v867_v45, %v877_v26 }
  0xf8   : > { %v1430_v55 = vadd.f32 -3.0, %v645_v32  ;;  %v2405_v47 = vadd.f32 %v535_v41, %v2234_v22  ;;  %v625_v44 = vmul.f32 %v621_v0, %v2364_v63  ;;  %v655_v32 = vmul.f32 %v1574_v10, %v635_v20  ;;  %v895_v58 = vld [vmem:[#allocation9 + $0xe] sm:$0x3]  ;;  %v906_v33 = vld [vmem:[#allocation13 + $0x10] sm:$0x3] }
  0xf9   : > { %3522 = vst [vmem:[#allocation65_spill] sm:$0xff] %v2414_v23  ;;  %3523 = vst [vmem:[#allocation66_spill] sm:$0xff] %v2416_v62  ;;  %v2422_v0 = vmax.f32 %v2402_v42, 0.0  ;;  %v2424_v41 = vsub.f32 %v891_v28, %v901_v14  ;;  %v2427_v5 = vsub.f32 %v893_v59, %v903_v30  ;;  %v2429_v26 = vsub.f32 %v894_v19, %v904_v3  ;;  %v897_v28 = vld [vmem:[#allocation9 + $0x12] sm:$0x3] }
  0xfa   : > { %1579 = vrcp.f32 %v1430_v55  ;;  %v2419_v22 = vand.u32 2147483647, %v2405_v47  ;;  %v905_v55 = vld [vmem:[#allocation13 + $0xe] sm:$0x3]  ;;  %vm552_vm5 = vcmp.eq.f32.partialorder %v2359_v15, inf  ;;  %v555_v20 = vand.u32 2147483648, %v2359_v15 }
  0xfb   : > { %v1576_v9 = vpop.eup %1575  ;;  %3524 = vst [vmem:[#allocation67_spill] sm:$0xff] %v2424_v41  ;;  %1581 = vlog2.f32 %v2410_v31  ;;  %3525 = vst [vmem:[#allocation68_spill] sm:$0xff] %v2427_v5  ;;  %v633_v10 = vsub.f32 %v625_v44, %v629_v17  ;;  %v907_v14 = vld [vmem:[#allocation13 + $0x12] sm:$0x3]  ;;  %vm554_vm6 = vcmp.eq.f32.partialorder %v2359_v15, 0.0  ;;  %v2441_v30 = vmul.f32 %v2324_v61, %v2331_v18 }
  0xfc   : > { %v654_v29 = vmul.f32 %v1576_v9, %v634_v8  ;;  %3526 = vst [vmem:[#allocation69_spill] sm:$0xff] %v2429_v26  ;;  %1583 = vlog2.f32 %v2419_v22  ;;  %v2444_v59 = vsub.f32 %v2251_v50, %v655_v32  ;;  %v2447_v19 = vsub.f32 %v895_v58, %v905_v55 }
  0xfd   : > { %v1578_v45 = vpop.eup %1577  ;;  %1585 = vrsqrt.f32 %v2422_v0  ;;  %v2449_v44 = vsub.f32 %v896_v43, %v906_v33  ;;  %v2454_v3 = vsub.f32 %v897_v28, %v907_v14  ;;  %v637_v61 = vsub.f32 %v633_v10, %v2338_v60 }
  0xfe   : > { %v2435_v8 = vsub.f32 %v2311_v25, %v654_v29  ;;  %v551_v9 = vmul.f32 %v1578_v45, %v2359_v15  ;;  %3527 = vst [vmem:[#allocation70_spill] sm:$0xff] %v2447_v19  ;;  %v663_v50 = vmul.f32 4.0, %v2444_v59  ;;  %v687_v32 = vmul.f32 12.0, %v2444_v59 }
  0xff   : > { %3528 = vst [vmem:[#allocation71_spill] sm:$0xff] %v2449_v44  ;;  %3529 = vst [vmem:[#allocation72_spill] sm:$0xff] %v2454_v3  ;;  %v603_v33 = vsub.f32 1.0, %v2441_v30  ;;  %v2473_v10 = vmul.f32 %v2322_v27, %v2322_v27  ;;  %vm545_vm7 = vcmp.eq.f32.partialorder %v2422_v0, inf  ;;  %vm547_vm8 = vcmp.eq.f32.partialorder %v2422_v0, 0.0 }
 0x100   : > { %v662_v29 = vmul.f32 4.0, %v2435_v8  ;;  %v686_v25 = vmul.f32 12.0, %v2435_v8  ;;  %v553_v17 = vsel %vm552_vm5, %v2359_v15, %v551_v9  ;;  %v667_v15 = vmul.f32 %v663_v50, %v2444_v59 }
 0x101   : > { %v556_v45 = vsel %vm554_vm6, %v555_v20, %v553_v17  ;;  %v691_v28 = vmul.f32 %v687_v32, %v2444_v59  ;;  %v2469_v20 = vmul.f32 %v2315_v49, %v2315_v49  ;;  %v608_v42 = vmul.f32 0.11111111, %v603_v33 }
 0x102   : > { %v666_v58 = vmul.f32 %v662_v29, %v2435_v8  ;;  %v690_v43 = vmul.f32 %v686_v25, %v2435_v8  ;;  %v2462_v55 = vadd.f32 %v556_v45, %v2303_v40  ;;  %v2477_v40 = vmul.f32 %v2393_v46, %v2393_v46 }
 0x103   : > { %v2481_v29 = vmul.f32 %v2395_v16, %v2395_v16  ;;  %v2485_v25 = vmul.f32 %v2414_v23, %v2414_v23  ;;  %v674_v45 = vmul.f32 3.0, %v2435_v8  ;;  %v1432_v27 = vadd.f32 -3.0, %v691_v28 }
 0x104   : > { %v1580_v14 = vpop.eup %1579  ;;  %v1431_v9 = vadd.f32 -3.0, %v690_v43  ;;  %v670_v17 = vmul.f32 %v666_v58, %v2435_v8  ;;  %v2490_v50 = vand.u32 2147483647, %v2462_v55  ;;  %v671_v23 = vmul.f32 %v667_v15, %v2444_v59 }
 0x105   : > { %v657_v32 = vmul.f32 %v1580_v14, %v637_v61  ;;  %v1582_v43 = vpop.eup %1581  ;;  %v675_v33 = vmul.f32 3.0, %v2444_v59  ;;  %v2502_v28 = vsub.f32 1.0, %v608_v42  ;;  %vm1453_vm9 = vweird.f32 %v2419_v22 }
 0x106   : > { %1587 = vrcp.f32 %v1431_v9  ;;  %v1584_v16 = vpop.eup %1583  ;;  %v1468_v61 = vmul.f32 0.33333334, %v1582_v43  ;;  %v678_v9 = vsub.f32 %v670_v17, %v674_v45  ;;  %vm1455_vm11 = vcmp.eq.f32.partialorder %v2419_v22, 0.0 }
 0x107   : > { %1589 = vlog2.f32 %v2490_v50  ;;  %v1450_v58 = vmul.f32 0.33333334, %v1584_v16  ;;  %v2498_v6 = vsub.f32 %v2364_v63, %v657_v32  ;;  %v1586_v14 = vpop.eup %1585  ;;  %v548_v16 = vand.u32 2147483648, %v2422_v0 }
 0x108   : > { %1591 = vrcp.f32 %v1432_v27  ;;  %v679_v63 = vsub.f32 %v671_v23, %v675_v33  ;;  %v544_v32 = vmul.f32 %v1586_v14, %v2422_v0  ;;  %v616_v43 = vmul.f32 4.0, %v2502_v28 }
 0x109   : > { %1593 = vpow2.f32 %v1450_v58  ;;  %v665_v46 = vmul.f32 4.0, %v2498_v6  ;;  %v689_v15 = vmul.f32 12.0, %v2498_v6  ;;  %v677_v42 = vmul.f32 3.0, %v2498_v6 }
 0x10a   : > { %1595 = vpow2.f32 %v1468_v61  ;;  %v640_v45 = vmul.f32 12.0, %v2502_v28  ;;  %v682_v58 = vsub.f32 %v678_v9, %v2260_v35  ;;  %v546_v61 = vsel %vm545_vm7, %v2422_v0, %v544_v32 }
 0x10b   : > { %v669_v17 = vmul.f32 %v665_v46, %v2498_v6  ;;  %v693_v27 = vmul.f32 %v689_v15, %v2498_v6  ;;  %v620_v14 = vmul.f32 %v616_v43, %v2502_v28  ;;  %vm1444_vm12 = vcmp.lt.f32.partialorder %v2405_v47, 0.0 }
 0x10c   : > { %v549_v15 = vsel %vm547_vm8, %v548_v16, %v546_v61  ;;  %v644_v49 = vmul.f32 %v640_v45, %v2502_v28  ;;  %vm1443_vm14 = vcmp.eq.f32.partialorder %v2405_v47, 0.0  ;;  %vm1471_vm15 = vweird.f32 %v2410_v31 }
 0x10d   : > { %v673_v46 = vmul.f32 %v669_v17, %v2498_v6  ;;  %v1434_v33 = vadd.f32 -3.0, %v693_v27  ;;  %v683_v9 = vsub.f32 %v679_v63, %v2212_v24  ;;  %v2530_v32 = vadd.f32 %v549_v15, %v2331_v18 }
 0x10e   : > { %v624_v43 = vmul.f32 %v620_v14, %v2502_v28  ;;  %v2535_v17 = vmul.f32 %v2416_v62, %v2416_v62  ;;  %vm1446_vm5 = vcmp.eq.f32.partialorder %v2419_v22, inf  ;;  %vm1473_vm6 = vcmp.eq.f32.partialorder %v2410_v31, 0.0 }
 0x10f   : > { %v681_v0 = vsub.f32 %v673_v46, %v677_v42  ;;  %1597 = vrcp.f32 %v1434_v33  ;;  %v628_v16 = vmul.f32 3.0, %v2502_v28  ;;  %v2542_v63 = vmul.f32 %v2305_v21, %v2305_v21 }
 0x110   : > { %v1588_v27 = vpop.eup %1587  ;;  %vm1462_vm7 = vcmp.lt.f32.partialorder %v2387_v34, 0.0  ;;  %v2546_v61 = vand.u32 2147483647, %v2530_v32  ;;  %v2550_v14 = vmul.f32 %v2424_v41, %v2424_v41  ;;  %v2554_v42 = vmul.f32 %v2427_v5, %v2427_v5 }
 0x111   : > { %v1590_v18 = vpop.eup %1589  ;;  %v702_v45 = vmul.f32 %v1588_v27, %v682_v58  ;;  %v632_v33 = vsub.f32 %v624_v43, %v628_v16  ;;  %v1429_v15 = vadd.f32 -3.0, %v644_v49  ;;  %v2558_v23 = vmul.f32 %v2429_v26, %v2429_v26 }
 0x112   : > { %v1504_v46 = vmul.f32 0.33333334, %v1590_v18  ;;  %v1592_v58 = vpop.eup %1591  ;;  %v685_v21 = vsub.f32 %v681_v0, %v2338_v60  ;;  %vm1461_vm8 = vcmp.eq.f32.partialorder %v2387_v34, 0.0  ;;  %1599 = vlog2.f32 %v2546_v61 }
 0x113   : > { %v2561_v27 = vsub.f32 %v2435_v8, %v702_v45  ;;  %v2568_v5 = vmul.f32 %v2447_v19, %v2447_v19  ;;  %v1594_v43 = vpop.eup %1593  ;;  %vm1464_vm1 = vcmp.eq.f32.partialorder %v2410_v31, inf  ;;  %v703_v49 = vmul.f32 %v1592_v58, %v683_v9 }
 0x114   : > { %1601 = vpow2.f32 %v1504_v46  ;;  %v2573_v8 = vsub.f32 %v632_v33, %v2441_v30  ;;  %v1596_v18 = vpop.eup %1595  ;;  %v3530_v0 = vand.u32 2147483648, %v2405_v47  ;;  %vm1507_vm3 = vweird.f32 %v2490_v50 }
 0x115   : > { %v710_v26 = vmul.f32 4.0, %v2561_v27  ;;  %v722_v41 = vmul.f32 3.0, %v2561_v27  ;;  %v734_v19 = vmul.f32 12.0, %v2561_v27  ;;  %v3531_v46 = vand.u32 2147483648, %v2387_v34 }
 0x116   : > { %v1452_v45 = vor.u32 %v1594_v43, %v3530_v0  ;;  %v2584_v58 = vsub.f32 %v2444_v59, %v703_v49  ;;  %1603 = vrcp.f32 %v1429_v15  ;;  %v2588_v33 = vmul.f32 %v2449_v44, %v2449_v44 }
 0x117   : > { %v1470_v9 = vor.u32 %v1596_v18, %v3531_v46  ;;  %v714_v0 = vmul.f32 %v710_v26, %v2561_v27  ;;  %v738_v16 = vmul.f32 %v734_v19, %v2561_v27  ;;  %vm1509_vm10 = vcmp.eq.f32.partialorder %v2490_v50, 0.0 }
 0x118   : > { %v1454_v43 = vsel %vm1453_vm9, %v2405_v47, %v1452_v45  ;;  %v2598_v18 = vmul.f32 %v2454_v3, %v2454_v3  ;;  %v3532_v59 = vand.u32 2147483648, %v2405_v47  ;;  %vm1498_vm4 = vcmp.lt.f32.partialorder %v2462_v55, 0.0 }
 0x119   : > { %v1472_v49 = vsel %vm1471_vm15, %v2387_v34, %v1470_v9  ;;  %v711_v26 = vmul.f32 4.0, %v2584_v58  ;;  %v723_v19 = vmul.f32 3.0, %v2584_v58  ;;  %v718_v46 = vmul.f32 %v714_v0, %v2561_v27  ;;  %v1598_v44 = vpop.eup %1597 }
 0x11a   : > { %v1457_v15 = vsel %vm1455_vm11, %v3532_v59, %v1454_v43  ;;  %v1435_v3 = vadd.f32 -3.0, %v738_v16  ;;  %vm1497_vm9 = vcmp.eq.f32.partialorder %v2462_v55, 0.0  ;;  %v3533_v43 = vand.u32 2147483648, %v2387_v34 }
 0x11b   : > { %v1458_v45 = vsel %vm1444_vm12, nan, %v1457_v15  ;;  %vm1500_vm11 = vcmp.eq.f32.partialorder %v2490_v50, inf  ;;  %v715_v15 = vmul.f32 %v711_v26, %v2584_v58  ;;  %v735_v16 = vmul.f32 12.0, %v2584_v58 }
 0x11c   : > { %v1475_v59 = vsel %vm1473_vm6, %v3533_v43, %v1472_v49  ;;  %v1459_v9 = vsel %vm1443_vm14, 0.0, %v1458_v45  ;;  %v726_v54 = vsub.f32 %v718_v46, %v722_v41  ;;  %1605 = vrcp.f32 %v1435_v3 }
 0x11d   : > { %v1476_v62 = vsel %vm1462_vm7, nan, %v1475_v59  ;;  %v2627_v0 = vsel %vm1446_vm5, inf, %v1459_v9  ;;  %v705_v49 = vmul.f32 %v1598_v44, %v685_v21  ;;  %v719_v45 = vmul.f32 %v715_v15, %v2584_v58  ;;  %v1600_v59 = vpop.eup %1599 }
 0x11e   : > { %vm569_vm12 = vcmp.eq.f32.partialorder %v2627_v0, 0.0  ;;  %v1477_v47 = vsel %vm1461_vm8, 0.0, %v1476_v62  ;;  %v739_v43 = vmul.f32 %v735_v16, %v2584_v58  ;;  %v730_v26 = vsub.f32 %v726_v54, %v2260_v35  ;;  %v1602_v34 = vpop.eup %1601 }
 0x11f   : > { %v762_v22 = vsel %vm569_vm12, 1.0, %v2627_v0  ;;  %v2639_v41 = vsub.f32 %v2498_v6, %v705_v49  ;;  %v2643_v21 = vsel %vm1464_vm1, inf, %v1477_v47  ;;  %v727_v62 = vsub.f32 %v719_v45, %v723_v19 }
 0x120   : > { %1607 = vrcp.f32 %v762_v22  ;;  %vm570_vm14 = vcmp.eq.f32.partialorder %v2643_v21, 0.0  ;;  %v1436_v44 = vadd.f32 -3.0, %v739_v43  ;;  %v3534_v3 = vand.u32 2147483648, %v2462_v55  ;;  %v1604_v9 = vpop.eup %1603 }
 0x121   : > { %v713_v54 = vmul.f32 4.0, %v2639_v41  ;;  %v725_v46 = vmul.f32 3.0, %v2639_v41  ;;  %v737_v6 = vmul.f32 12.0, %v2639_v41  ;;  %vm565_vm15 = vcmp.ge.f32.partialorder %v2291_v36, 0.0 }
 0x122   : > { %v1506_v35 = vor.u32 %v1602_v34, %v3534_v3  ;;  %v731_v31 = vsub.f32 %v727_v62, %v2212_v24  ;;  %1609 = vrcp.f32 %v1436_v44  ;;  %v763_v19 = vsel %vm570_vm14, 1.0, %v2643_v21  ;;  %vm2745_vm13 = vmand %vm565_vm15, %vm569_vm12 }
 0x123   : > { %v1486_v15 = vmul.f32 0.33333334, %v1600_v59  ;;  %v717_v49 = vmul.f32 %v713_v54, %v2639_v41  ;;  %v741_v47 = vmul.f32 %v737_v6, %v2639_v41  ;;  %1611 = vrcp.f32 %v763_v19 }
 0x124   : > { %v1508_v16 = vsel %vm1507_vm3, %v2462_v55, %v1506_v35  ;;  %vm577_vm1 = vcmp.lt.f32.partialorder %v2291_v36, 0.0  ;;  %v3535_v45 = vmov %v3534_v3  ;;  %v656_v43 = vmul.f32 %v1604_v9, %v2573_v8 }
 0x125   : > { %v1511_v24 = vsel %vm1509_vm10, %v3535_v45, %v1508_v16  ;;  %1613 = vpow2.f32 %v1486_v15  ;;  %v2669_v59 = vadd.f32 %v2542_v63, %v2309_v7  ;;  %v721_v34 = vmul.f32 %v717_v49, %v2639_v41 }
 0x126   : > { %v1512_v22 = vsel %vm1498_vm4, nan, %v1511_v24  ;;  %v1438_v62 = vadd.f32 -3.0, %v741_v47  ;;  %v2676_v44 = vadd.f32 %v2550_v14, %v2469_v20  ;;  %v2681_v35 = vsub.f32 %v2502_v28, %v656_v43  ;;  %v1606_v8 = vpop.eup %1605 }
 0x127   : > { %v1513_v3 = vsel %vm1497_vm9, 0.0, %v1512_v22  ;;  %v2685_v7 = vadd.f32 %v2554_v42, %v2473_v10  ;;  %v2689_v63 = vadd.f32 %v2558_v23, %v2477_v40  ;;  %v729_v20 = vsub.f32 %v721_v34, %v725_v46 }
 0x128   : > { %v2693_v54 = vsel %vm1500_vm11, inf, %v1513_v3  ;;  %1615 = vrcp.f32 %v1438_v62  ;;  %v2697_v55 = vadd.f32 %v2568_v5, %v2481_v29  ;;  %v750_v28 = vmul.f32 %v1606_v8, %v730_v26 }
 0x129   : > { %vm3460_vm3 = vcmp.eq.f32.partialorder %v2693_v54, 0.0  ;;  %vm1489_vm10 = vweird.f32 %v2546_v61  ;;  %v664_v10 = vmul.f32 4.0, %v2681_v35  ;;  %v676_v40 = vmul.f32 3.0, %v2681_v35 }
 0x12a   : > { %v733_v23 = vsub.f32 %v729_v20, %v2338_v60  ;;  %v765_v50 = vsel %vm3460_vm3, 1.0, %v2693_v54  ;;  %vm1491_vm4 = vcmp.eq.f32.partialorder %v2546_v61, 0.0  ;;  %v688_v5 = vmul.f32 12.0, %v2681_v35  ;;  %v1608_v14 = vpop.eup %1607 }
 0x12b   : > { %v2711_v29 = vadd.f32 %v2588_v33, %v2485_v25  ;;  %v754_v42 = vsub.f32 %v2561_v27, %v750_v28  ;;  %1617 = vrcp.f32 %v765_v50  ;;  %v668_v60 = vmul.f32 %v664_v10, %v2681_v35 }
 0x12c   : > { %v2720_v26 = vadd.f32 %v2598_v18, %v2535_v17  ;;  %v770_v46 = vmul.f32 %v1608_v14, %v1905_v12  ;;  %v692_v25 = vmul.f32 %v688_v5, %v2681_v35  ;;  %vm950_vm9 = vcmp.eq.f32.partialorder %v2669_v59, 0.0  ;;  %v1610_v27 = vpop.eup %1609 }
 0x12d   : > { %vm951_vm11 = vcmp.eq.f32.partialorder %v2676_v44, 0.0  ;;  %v758_v33 = vmul.f32 %v754_v42, %v2243_v48  ;;  %v672_v17 = vmul.f32 %v668_v60, %v2681_v35  ;;  %vm953_vm2 = vcmp.eq.f32.partialorder %v2685_v7, 0.0  ;;  %v1612_v12 = vpop.eup %1611  ;;  %v3554_v48 = vld [vmem:[#allocation55_spill] sm:$0xff] }
 0x12e   : > { %vm954_vm3 = vcmp.eq.f32.partialorder %v2689_v63, 0.0  ;;  %v3536_v18 = vsub.f32 %v2279_v2, %v1889_v57  ;;  %v774_v9 = vsub.f32 %v2627_v0, %v770_v46  ;;  %v751_v19 = vmul.f32 %v1610_v27, %v731_v31  ;;  %v3551_v46 = vld [vmem:[#allocation39_spill] sm:$0xff] }
 0x12f   : > { %vm1482_vm0 = vcmp.eq.f32.partialorder %v2546_v61, inf  ;;  %v1433_v15 = vadd.f32 -3.0, %v692_v25  ;;  %vm955_vm7 = vcmp.eq.f32.partialorder %v2697_v55, 0.0  ;;  %v1614_v2 = vpop.eup %1613  ;;  %vm580_vm6 = vcmp.lt.f32.partialorder %v2354_v11, 0.0  ;;  %v3552_v27 = vld [vmem:[#allocation31_spill] sm:$0xff] }
 0x130   : > { %vm2737_vm8 = vcmp.lt.f32.partialorder %v1887_v56, %v3536_v18  ;;  %v771_v57 = vmul.f32 %v1612_v12, %v1895_v1  ;;  %v680_v16 = vsub.f32 %v672_v17, %v676_v40  ;;  %vm956_vm5 = vcmp.eq.f32.partialorder %v2711_v29, 0.0  ;;  %v3553_v12 = vld [vmem:[#allocation51_spill] sm:$0xff] }
 0x131   : > { %vm957_vm12 = vcmp.eq.f32.partialorder %v2720_v26, 0.0  ;;  %v778_v49 = vsel %vm577_vm1, %v758_v33, %v774_v9  ;;  %v755_v0 = vsub.f32 %v2584_v58, %v751_v19  ;;  %v3541_v31 = vand.u32 2147483648, %v2530_v32 }
 0x132   : > { %1619 = vrcp.f32 %v1433_v15  ;;  %v782_v45 = vsel %vm2745_vm13, 0.0, %v778_v49  ;;  %v775_v24 = vsub.f32 %v2643_v21, %v771_v57  ;;  %v684_v1 = vsub.f32 %v680_v16, %v2441_v30  ;;  %v1616_v22 = vpop.eup %1615  ;;  %v2834_v15 = vld [vmem:[#allocation6 + $0x6] sm:$0x3]  ;;  %v3558_v57 = vld [vmem:[#allocation28_spill] sm:$0xff] }
 0x133   : > { %v1488_v47 = vor.u32 %v1614_v2, %v3541_v31  ;;  %v960_v43 = vsel %vm950_vm9, 1.0, %v2669_v59  ;;  %v786_v36 = vmul.f32 2.0, %v782_v45  ;;  %v759_v34 = vmul.f32 %v755_v0, %v2249_v13  ;;  %v3557_v2 = vld [vmem:[#allocation61_spill] sm:$0xff]  ;;  %v3577_v49 = vld [vmem:[#allocation48_spill] sm:$0xff] }
 0x134   : > { %v961_v62 = vsel %vm951_vm11, 1.0, %v2676_v44  ;;  %v753_v3 = vmul.f32 %v1616_v22, %v733_v23  ;;  %vm795_vm13 = vcmp.eq.f32.partialorder %v2174_v39, 0.0  ;;  %v3542_v8 = vmov %v3541_v31  ;;  %v3566_v0 = vld [vmem:[#allocation45_spill] sm:$0xff] }
 0x135   : > { %v1490_v58 = vsel %vm1489_vm10, %v2530_v32, %v1488_v47  ;;  %v963_v13 = vsel %vm953_vm2, 1.0, %v2685_v7  ;;  %v964_v28 = vsel %vm954_vm3, 1.0, %v2689_v63  ;;  %v790_v10 = vmul.f32 %v2218_v37, %v786_v36  ;;  %v1618_v37 = vpop.eup %1617  ;;  %v3567_v45 = vld [vmem:[#allocation33_spill] sm:$0xff]  ;;  %v3569_v36 = vld [vmem:[#allocation26_spill] sm:$0xff] }
 0x136   : > { %v1493_v20 = vsel %vm1491_vm4, %v3542_v8, %v1490_v58  ;;  %v3543_v40 = vsub.f32 %v2246_v38, %v1883_v53  ;;  %vm3546_vm1 = vcmp.ge.f32.partialorder %v2231_v52, 0.0  ;;  %vm3547_vm2 = vcmp.lt.f32.partialorder %v2231_v52, 0.0  ;;  %v3550_v52 = vld [vmem:[#allocation40_spill] sm:$0xff] }
 0x137   : > { %vm574_vm10 = vmand %vm3546_vm1, %vm570_vm14  ;;  %v779_v50 = vsel %vm3547_vm2, %v759_v34, %v775_v24  ;;  %vm3548_vm3 = vcmp.lt.f32.partialorder %v2530_v32, 0.0  ;;  %v965_v53 = vsel %vm955_vm7, 1.0, %v2697_v55  ;;  %v757_v38 = vsub.f32 %v2639_v41, %v753_v3  ;;  %v3568_v24 = vld [vmem:[#allocation44_spill] sm:$0xff] }
 0x138   : > { %vm2791_vm15 = vcmp.lt.f32.partialorder %v1881_v51, %v3543_v40  ;;  %v1494_v5 = vsel %vm3548_vm3, nan, %v1493_v20  ;;  %v783_v14 = vsel %vm574_vm10, 0.0, %v779_v50  ;;  %vm3549_vm4 = vcmp.eq.f32.partialorder %v2530_v32, 0.0  ;;  %v3570_v58 = vld [vmem:[#allocation36_spill] sm:$0xff]  ;;  %v3571_v40 = vld [vmem:[#allocation35_spill] sm:$0xff] }
 0x139   : > { %v1495_v21 = vsel %vm3549_vm4, 0.0, %v1494_v5  ;;  %v2812_v42 = vsel %vm956_vm5, 1.0, %v2711_v29  ;;  %v798_v60 = vmul.f32 %v790_v10, %v3550_v52  ;;  %v810_v25 = vmul.f32 %v790_v10, %v3551_v46 }
 0x13a   : > { %v773_v33 = vmul.f32 %v1618_v37, %v3552_v27  ;;  %v787_v17 = vmul.f32 2.0, %v783_v14  ;;  %v761_v18 = vmul.f32 %v757_v38, %v3553_v12  ;;  %vm797_vm14 = vcmp.eq.f32.partialorder %v3554_v48, 0.0  ;;  %v3575_v12 = vld [vmem:[#allocation42_spill] sm:$0xff] }
 0x13b   : > { %v2821_v32 = vsel %vm1482_vm0, inf, %v1495_v21  ;;  %v2826_v41 = vsel %vm957_vm12, 1.0, %v2720_v26  ;;  %1621 = vrsqrt.f32 %v960_v43  ;;  %vm3555_vm5 = vcmp.eq.f32.partialorder %v2224_v4, 0.0 }
 0x13c   : > { %v802_v9 = vsel %vm3555_vm5, 0.0, %v798_v60  ;;  %vm3556_vm7 = vmmov %vm3555_vm5  ;;  %v3559_v61 = vsub.f32 %v3557_v2, %v3558_v57  ;;  %vm3562_vm9 = vcmp.eq.f32.partialorder %v2693_v54, 0.0  ;;  %vm3563_vm11 = vcmp.ge.f32.partialorder %v2354_v11, 0.0  ;;  %v1620_v22 = vpop.eup %1619 }
 0x13d   : > { %v2832_v19 = vsel %vm3556_vm7, 0.0, %v810_v25  ;;  %vm2848_vm12 = vmand %vm3563_vm11, %vm3562_vm9  ;;  %v777_v4 = vsub.f32 %v2693_v54, %v773_v33  ;;  %v791_v31 = vmul.f32 %v3566_v0, %v787_v17  ;;  %v2857_v47 = vsel %vm2737_vm8, %v802_v9, %v3550_v52  ;;  %v3572_v52 = vld [vmem:[#allocation54_spill] sm:$0xff]  ;;  %v3573_v25 = vld [vmem:[#allocation21_spill] sm:$0xff] }
 0x13e   : > { %vm2840_vm0 = vcmp.lt.f32.partialorder %v2834_v15, %v3559_v61  ;;  %vm571_vm1 = vcmp.eq.f32.partialorder %v2821_v32, 0.0  ;;  %1623 = vrsqrt.f32 %v961_v62  ;;  %v2862_v43 = vmul.f32 %v3568_v24, %v3567_v45  ;;  %846 = vst [vmem:[#allocation4] sm:$0x3] %v2857_v47  ;;  %v1087_v62 = vld [vmem:[#allocation10] sm:$0x3] }
 0x13f   : > { %v1107_v54 = vsub.f32 %v3569_v36, %v2857_v47  ;;  %v781_v34 = vsel %vm580_vm6, %v761_v18, %v777_v4  ;;  %v799_v3 = vmul.f32 %v791_v31, %v3570_v58  ;;  %v764_v8 = vsel %vm571_vm1, 1.0, %v2821_v32  ;;  %v3576_v9 = vld [vmem:[#allocation41_spill] sm:$0xff] }
 0x140   : > { %v785_v20 = vsel %vm2848_vm12, 0.0, %v781_v34  ;;  %v704_v10 = vmul.f32 %v1620_v22, %v684_v1  ;;  %1625 = vrcp.f32 %v764_v8  ;;  %v811_v50 = vmul.f32 %v791_v31, %v3571_v40 }
 0x141   : > { %v1117_v5 = vmul.f32 0.22222222, %v1107_v54  ;;  %v789_v37 = vmul.f32 2.0, %v785_v20  ;;  %v803_v11 = vsel %vm795_vm13, 0.0, %v799_v3  ;;  %1627 = vrsqrt.f32 %v963_v13  ;;  %v1088_v54 = vld [vmem:[#allocation10 + $0x2] sm:$0x3] }
 0x142   : > { %v807_v38 = vsel %vm2791_vm15, %v803_v11, %v3570_v58  ;;  %v2882_v14 = vsub.f32 %v2681_v35, %v704_v10  ;;  %1629 = vrsqrt.f32 %v964_v28  ;;  %v2886_v1 = vsel %vm795_vm13, 0.0, %v811_v50  ;;  %v3578_v3 = vld [vmem:[#allocation49_spill] sm:$0xff]  ;;  %v1091_v20 = vld [vmem:[#allocation10 + $0x8] sm:$0x3] }
 0x143   : > { %v1127_v21 = vadd.f32 %v1117_v5, %v1087_v62  ;;  %v793_v60 = vmul.f32 %v3572_v52, %v789_v37  ;;  %vm3574_vm6 = vcmp.eq.s32.totalorder %v3573_v25, 15  ;;  %v2893_v13 = vmul.f32 %v807_v38, %v807_v38  ;;  %847 = vst [vmem:[#allocation4 + $0x2] sm:$0x3] %v807_v38 }
 0x144   : > { %v2891_v27 = vsel %vm3574_vm6, 0.0, %v807_v38  ;;  %v2898_v35 = vadd.f32 %v807_v38, %v2857_v47  ;;  %v712_v39 = vmul.f32 4.0, %v2882_v14  ;;  %v724_v28 = vmul.f32 3.0, %v2882_v14 }
 0x145   : > { %1249 = vrot.lane.b32.xlu0 %v2891_v27, %s1682_s29  ;;  %v736_v33 = vmul.f32 12.0, %v2882_v14  ;;  %v1167_v17 = vmul.f32 2.0, %v1127_v21  ;;  %1227 = vst [vmem:[#allocation10] sm:$0x3] %v1127_v21  ;;  %v801_v18 = vmul.f32 %v793_v60, %v3575_v12  ;;  %v813_v2 = vmul.f32 %v793_v60, %v3576_v9  ;;  %v1622_v57 = vpop.eup %1621 }
 0x146   : > { %1631 = vrsqrt.f32 %v965_v53  ;;  %v1072_v61 = vsub.f32 %v2898_v35, %v2857_v47  ;;  %v1108_v4 = vsub.f32 %v3577_v49, %v2898_v35  ;;  %v716_v0 = vmul.f32 %v712_v39, %v2882_v14  ;;  %v3579_v39 = vld [vmem:[#allocation32_spill] sm:$0xff] }
 0x147   : > { %v740_v31 = vmul.f32 %v736_v33, %v2882_v14  ;;  %v1177_v24 = vsub.f32 %v1167_v17, %v1087_v62  ;;  %v805_v22 = vsel %vm797_vm14, 0.0, %v801_v18  ;;  %v817_v36 = vsel %vm797_vm14, 0.0, %v813_v2 }
 0x148   : > { %1633 = vrsqrt.f32 %v2812_v42  ;;  %v1624_v53 = vpop.eup %1623  ;;  %v2919_v34 = vsel %vm2840_vm0, %v805_v22, %v3575_v12  ;;  %v2924_v58 = vsel %vm2840_vm0, %v817_v36, %v3576_v9  ;;  %v1111_v8 = vsub.f32 %v3578_v3, %v1072_v61 }
 0x149   : > { %v1118_v62 = vmul.f32 0.22222222, %v1108_v4  ;;  %1187 = vst [vmem:[#allocation12] sm:$0x3] %v1177_v24  ;;  %v825_v48 = vmul.f32 %v2919_v34, %v2919_v34  ;;  %v829_v42 = vmul.f32 %v2924_v58, %v2924_v58  ;;  %849 = vst [vmem:[#allocation4 + $0x6] sm:$0x3] %v2919_v34  ;;  %v720_v10 = vmul.f32 %v716_v0, %v2882_v14 }
 0x14a   : > { %853 = vst [vmem:[#allocation5 + $0x6] sm:$0x3] %v2924_v58  ;;  %v1437_v50 = vadd.f32 -3.0, %v740_v31  ;;  %v1626_v5 = vpop.eup %1625  ;;  %v1121_v37 = vmul.f32 0.22222222, %v1111_v8  ;;  %1635 = vrsqrt.f32 %v2826_v41  ;;  %v2936_v38 = vmul.f32 %v1622_v57, %v2669_v59  ;;  %v3580_v0 = vld [vmem:[#allocation25_spill] sm:$0xff] }
 0x14b   : > { %v1128_v11 = vadd.f32 %v1118_v62, %v1088_v54  ;;  %v1628_v21 = vpop.eup %1627  ;;  %v833_v52 = vadd.f32 %v829_v42, %v825_v48  ;;  %v728_v60 = vsub.f32 %v720_v10, %v724_v28  ;;  %v2939_v33 = vmul.f32 %v1626_v5, %v3579_v39  ;;  %v3581_v62 = vld [vmem:[#allocation53_spill] sm:$0xff]  ;;  %v3583_v42 = vld [vmem:[#allocation64_spill] sm:$0xff] }
 0x14c   : > { %1637 = vrcp.f32 %v1437_v50  ;;  %v1630_v17 = vpop.eup %1629  ;;  %v1131_v12 = vadd.f32 %v1121_v37, %v1091_v20  ;;  %v2942_v9 = vmul.f32 %v1624_v53, %v2676_v44  ;;  %v2945_v2 = vmul.f32 %v1628_v21, %v2685_v7  ;;  %v1640_v7 = vld [vmem:[#allocation7 + $0x6] sm:$0x3]  ;;  %v3585_v50 = vld [vmem:[#allocation62_spill] sm:$0xff] }
 0x14d   : > { %v1168_v18 = vmul.f32 2.0, %v1128_v11  ;;  %1228 = vst [vmem:[#allocation10 + $0x2] sm:$0x3] %v1128_v11  ;;  %v837_v41 = vmul.f32 0.25, %v833_v52  ;;  %v732_v59 = vsub.f32 %v728_v60, %v2441_v30  ;;  %v776_v28 = vsub.f32 %v2821_v32, %v2939_v33  ;;  %v3587_v52 = vld [vmem:[#allocation65_spill] sm:$0xff]  ;;  %v3606_v33 = vld [vmem:[#allocation72_spill] sm:$0xff] }
 0x14e   : > { %v2951_v61 = vmul.f32 %v1630_v17, %v2689_v63  ;;  %v1171_v49 = vmul.f32 2.0, %v1131_v12  ;;  %1231 = vst [vmem:[#allocation10 + $0x8] sm:$0x3] %v1131_v12  ;;  %vm991_vm13 = vcmp.gt.f32.partialorder %v2936_v38, %v3580_v0  ;;  %vm992_vm10 = vcmp.gt.f32.partialorder %v2942_v9, %v3580_v0 }
 0x14f   : > { %v1178_v4 = vsub.f32 %v1168_v18, %v1088_v54  ;;  %v841_v31 = vsub.f32 %v837_v41, %v1640_v7  ;;  %vm994_vm2 = vcmp.gt.f32.partialorder %v2945_v2, %v3580_v0  ;;  %v2962_v30 = vmul.f32 %v1622_v57, %v3580_v0 }
 0x150   : > { %v1632_v44 = vpop.eup %1631  ;;  %vm995_vm3 = vcmp.gt.f32.partialorder %v2951_v61, %v3580_v0  ;;  %v1181_v63 = vsub.f32 %v1171_v49, %v1091_v20  ;;  %v1002_v22 = vmul.f32 %v1624_v53, %v3580_v0  ;;  %v2969_v36 = vmul.f32 %v1628_v21, %v3580_v0  ;;  %v3584_v20 = vld [vmem:[#allocation60_spill] sm:$0xff]  ;;  %v3608_v61 = vld [vmem:[#allocation57_spill] sm:$0xff] }
 0x151   : > { %1188 = vst [vmem:[#allocation12 + $0x2] sm:$0x3] %v1178_v4  ;;  %v2965_v24 = vmul.f32 %v1632_v44, %v2697_v55  ;;  %v845_v3 = vsel %vm2840_vm0, %v841_v31, %v2834_v15  ;;  %v2975_v8 = vmul.f32 %v1630_v17, %v3580_v0  ;;  %v2978_v57 = vmul.f32 %v1632_v44, %v3580_v0  ;;  %v3582_v15 = vld [vmem:[#allocation59_spill] sm:$0xff]  ;;  %v3589_v31 = vld [vmem:[#allocation34_spill] sm:$0xff] }
 0x152   : > { %v1634_v54 = vpop.eup %1633  ;;  %v1011_v55 = vmul.f32 %v2962_v30, %v3581_v62  ;;  %857 = vst [vmem:[#allocation6 + $0x6] sm:$0x3] %v845_v3  ;;  %1191 = vst [vmem:[#allocation12 + $0x8] sm:$0x3] %v1181_v63  ;;  %v1012_v48 = vmul.f32 %v1002_v22, %v3582_v15  ;;  %vm567_vm14 = vcmp.ge.f32.partialorder %v3583_v42, 0.0  ;;  %vm579_vm5 = vcmp.lt.f32.partialorder %v3583_v42, 0.0 }
 0x153   : > { %v2983_v53 = vmul.f32 %v1634_v54, %v2711_v29  ;;  %vm996_vm4 = vcmp.gt.f32.partialorder %v2965_v24, %v3580_v0  ;;  %v2988_v16 = vmul.f32 %v1634_v54, %v3580_v0  ;;  %v1014_v10 = vmul.f32 %v2969_v36, %v3584_v20  ;;  %v3586_v29 = vld [vmem:[#allocation63_spill] sm:$0xff]  ;;  %vm575_vm6 = vmand %vm567_vm14, %vm571_vm1  ;;  %v3609_v24 = vld [vmem:[#allocation38_spill] sm:$0xff] }
 0x154   : > { %v1015_v5 = vmul.f32 %v2975_v8, %v3585_v50  ;;  %v1016_v37 = vmul.f32 %v2978_v57, %v3586_v29  ;;  %v3003_v11 = vsel %vm991_vm13, %v1011_v55, %v3581_v62  ;;  %v1636_v21 = vpop.eup %1635  ;;  %v3013_v39 = vsel %vm992_vm10, %v1012_v48, %v3582_v15  ;;  %v3590_v63 = vld [vmem:[#allocation47_spill] sm:$0xff]  ;;  %v3593_v15 = vld [vmem:[#allocation20_spill] sm:$0xff] }
 0x155   : > { %vm997_vm7 = vcmp.gt.f32.partialorder %v2983_v53, %v3580_v0  ;;  %v1017_v60 = vmul.f32 %v2988_v16, %v3587_v52  ;;  %1051 = vst [vmem:[#allocation8 + $0x4] sm:$0x3] %v3003_v11  ;;  %v819_v17 = vsel %vm2791_vm15, %v2886_v1, %v3571_v40  ;;  %v3021_v18 = vmul.f32 %v1636_v21, %v2720_v26  ;;  %v3591_v3 = vld [vmem:[#allocation43_spill] sm:$0xff] }
 0x156   : > { %v1638_v12 = vpop.eup %1637  ;;  %v1008_v41 = vmul.f32 %v1636_v21, %v3580_v0  ;;  %v3028_v49 = vsel %vm994_vm2, %v1014_v10, %v3584_v20  ;;  %v3034_v4 = vsel %vm995_vm3, %v1015_v5, %v3585_v50  ;;  %1052 = vst [vmem:[#allocation8 + $0x6] sm:$0x3] %v3013_v39  ;;  %851 = vst [vmem:[#allocation5 + $0x2] sm:$0x3] %v819_v17  ;;  %vm3594_vm11 = vcmp.eq.s32.totalorder %v3593_v15, 15  ;;  %v3599_v50 = vld [vmem:[#allocation52_spill] sm:$0xff] }
 0x157   : > { %v752_v40 = vmul.f32 %v1638_v12, %v732_v59  ;;  %v3041_v26 = vsel %vm996_vm4, %v1016_v37, %v3586_v29  ;;  %v3047_v1 = vsel %vm997_vm7, %v1017_v60, %v3587_v52  ;;  %1054 = vst [vmem:[#allocation8 + $0xa] sm:$0x3] %v3028_v49  ;;  %1055 = vst [vmem:[#allocation8 + $0xc] sm:$0x3] %v3034_v4  ;;  %v3588_v59 = vld [vmem:[#allocation66_spill] sm:$0xff]  ;;  %v3066_v48 = vsel %vm3594_vm11, 0.0, %v819_v17 }
 0x158   : > { %v827_v44 = vmul.f32 %v819_v17, %v819_v17  ;;  %vm998_vm0 = vcmp.gt.f32.partialorder %v3021_v18, %v3580_v0  ;;  %v1018_v7 = vmul.f32 %v1008_v41, %v3588_v59  ;;  %1056 = vst [vmem:[#allocation8 + $0xe] sm:$0x3] %v3041_v26  ;;  %1057 = vst [vmem:[#allocation8 + $0x10] sm:$0x3] %v3047_v1  ;;  %1286 = vrot.lane.b32.xlu0 %v3066_v48, %s1683_s30  ;;  %v1097_v29 = vld [vmem:[#allocation11] sm:$0x3] }
 0x159   : > { %v1033_v54 = vmul.f32 %v3590_v63, %v3589_v31  ;;  %vm3592_vm9 = vcmp.gt.f32.partialorder %v3591_v3, %v3580_v0  ;;  %v756_v55 = vsub.f32 %v2882_v14, %v752_v40  ;;  %3595 = vst [vmem:[#allocation40_spill] sm:$0xff] %v3066_v48  ;;  %v3072_v20 = vsel %vm2737_vm8, %v2832_v19, %v3551_v46  ;;  %v3598_v19 = vld [vmem:[#allocation27_spill] sm:$0xff]  ;;  %v3600_v21 = vld [vmem:[#allocation58_spill] sm:$0xff] }
 0x15a   : > { %v1040_v62 = vsel %vm3592_vm9, %v2862_v43, %v3567_v45  ;;  %v831_v10 = vadd.f32 %v827_v44, %v2893_v13  ;;  %v3079_v45 = vsel %vm998_vm0, %v1018_v7, %v3588_v59  ;;  %v3596_v43 = vld [vmem:[#allocation46_spill] sm:$0xff]  ;;  %850 = vst [vmem:[#allocation5] sm:$0x3] %v3072_v20  ;;  %v3089_v46 = vadd.f32 %v819_v17, %v3072_v20  ;;  %v3601_v60 = vld [vmem:[#allocation67_spill] sm:$0xff]  ;;  %v3602_v59 = vld [vmem:[#allocation68_spill] sm:$0xff] }
 0x15b   : > { %1060 = vst [vmem:[#allocation9 + $0x2] sm:$0x3] %v1040_v62  ;;  %vm3597_vm12 = vcmp.gt.f32.partialorder %v3596_v43, %v3580_v0  ;;  %v1137_v13 = vsub.f32 %v3598_v19, %v3072_v20  ;;  %v760_v5 = vmul.f32 %v756_v55, %v3599_v50  ;;  %1058 = vst [vmem:[#allocation8 + $0x12] sm:$0x3] %v3079_v45  ;;  %v1101_v50 = vld [vmem:[#allocation11 + $0x8] sm:$0x3] }
 0x15c   : > { %v1043_v14 = vsel %vm3597_vm12, %v1033_v54, %v3589_v31  ;;  %v835_v37 = vmul.f32 0.25, %v831_v10  ;;  %v1031_v52 = vmul.f32 %v2962_v30, %v3600_v21  ;;  %v1032_v12 = vmul.f32 %v1002_v22, %v3601_v60  ;;  %v1098_v22 = vld [vmem:[#allocation11 + $0x2] sm:$0x3]  ;;  %v1641_v31 = vld [vmem:[#allocation7 + $0x2] sm:$0x3]  ;;  %v3603_v54 = vld [vmem:[#allocation69_spill] sm:$0xff] }
 0x15d   : > { %1063 = vst [vmem:[#allocation9 + $0x8] sm:$0x3] %v1043_v14  ;;  %v1081_v40 = vsub.f32 %v3089_v46, %v3072_v20  ;;  %v1138_v17 = vsub.f32 %v1040_v62, %v3089_v46  ;;  %v1147_v44 = vmul.f32 0.22222222, %v1137_v13  ;;  %v1034_v7 = vmul.f32 %v2969_v36, %v3602_v59  ;;  %v3604_v62 = vld [vmem:[#allocation70_spill] sm:$0xff]  ;;  %v3605_v48 = vld [vmem:[#allocation71_spill] sm:$0xff] }
 0x15e   : > { %v780_v30 = vsel %vm579_vm5, %v760_v5, %v776_v28  ;;  %v839_v63 = vsub.f32 %v835_v37, %v1641_v31  ;;  %v1035_v3 = vmul.f32 %v2975_v8, %v3603_v54  ;;  %v1036_v36 = vmul.f32 %v2978_v57, %v3604_v62  ;;  %v3614_v0 = vld [vmem:[#allocation29_spill] sm:$0xff] }
 0x15f   : > { %v784_v55 = vsel %vm575_vm6, 0.0, %v780_v30  ;;  %v1141_v10 = vsub.f32 %v1043_v14, %v1081_v40  ;;  %v1148_v43 = vmul.f32 0.22222222, %v1138_v17  ;;  %v1157_v19 = vadd.f32 %v1147_v44, %v1097_v29  ;;  %v3610_v40 = vld [vmem:[#allocation37_spill] sm:$0xff]  ;;  %v3612_v30 = vld [vmem:[#allocation30_spill] sm:$0xff] }
 0x160   : > { %v788_v13 = vmul.f32 2.0, %v784_v55  ;;  %v1037_v32 = vmul.f32 %v2988_v16, %v3605_v48  ;;  %v1038_v28 = vmul.f32 %v1008_v41, %v3606_v33  ;;  %v3123_v42 = vsel %vm991_vm13, %v1031_v52, %v3600_v21  ;;  %v3607_v16 = vld [vmem:[#allocation50_spill] sm:$0xff] }
 0x161   : > { %v1151_v8 = vmul.f32 0.22222222, %v1141_v10  ;;  %v1158_v5 = vadd.f32 %v1148_v43, %v1098_v22  ;;  %v1197_v57 = vmul.f32 2.0, %v1157_v19  ;;  %1237 = vst [vmem:[#allocation11] sm:$0x3] %v1157_v19  ;;  %v3129_v14 = vsel %vm992_vm10, %v1032_v12, %v3601_v60 }
 0x162   : > { %1061 = vst [vmem:[#allocation9 + $0x4] sm:$0x3] %v3123_v42  ;;  %v792_v41 = vmul.f32 %v3607_v16, %v788_v13  ;;  %v3137_v38 = vsel %vm994_vm2, %v1034_v7, %v3602_v59  ;;  %v3143_v37 = vsel %vm995_vm3, %v1035_v3, %v3603_v54  ;;  %v3149_v9 = vsel %vm996_vm4, %v1036_v36, %v3604_v62  ;;  %v3611_v7 = vld [vmem:[#allocation56_spill] sm:$0xff] }
 0x163   : > { %1062 = vst [vmem:[#allocation9 + $0x6] sm:$0x3] %v3129_v14  ;;  %v1161_v21 = vadd.f32 %v1151_v8, %v1101_v50  ;;  %v1198_v52 = vmul.f32 2.0, %v1158_v5  ;;  %v1207_v60 = vsub.f32 %v1197_v57, %v1097_v29  ;;  %1238 = vst [vmem:[#allocation11 + $0x2] sm:$0x3] %v1158_v5  ;;  %v3156_v2 = vsel %vm997_vm7, %v1037_v32, %v3605_v48 }
 0x164   : > { %1064 = vst [vmem:[#allocation9 + $0xa] sm:$0x3] %v3137_v38  ;;  %1065 = vst [vmem:[#allocation9 + $0xc] sm:$0x3] %v3143_v37  ;;  %vm796_vm1 = vcmp.eq.f32.partialorder %v3608_v61, 0.0  ;;  %v800_v12 = vmul.f32 %v792_v41, %v3609_v24  ;;  %v812_v17 = vmul.f32 %v792_v41, %v3610_v40  ;;  %v3168_v29 = vsel %vm998_vm0, %v1038_v28, %v3606_v33 }
 0x165   : > { %1066 = vst [vmem:[#allocation9 + $0xe] sm:$0x3] %v3149_v9  ;;  %1067 = vst [vmem:[#allocation9 + $0x10] sm:$0x3] %v3156_v2  ;;  %v1201_v53 = vmul.f32 2.0, %v1161_v21  ;;  %v1208_v48 = vsub.f32 %v1198_v52, %v1098_v22  ;;  %v822_v44 = vmul.f32 %v2857_v47, %v2857_v47  ;;  %v826_v59 = vmul.f32 %v3072_v20, %v3072_v20 }
 0x166   : > { %1217 = vst [vmem:[#allocation13] sm:$0x3] %v1207_v60  ;;  %1241 = vst [vmem:[#allocation11 + $0x8] sm:$0x3] %v1161_v21  ;;  %v3613_v31 = vsub.f32 %v3611_v7, %v3612_v30  ;;  %v804_v54 = vsel %vm796_vm1, 0.0, %v800_v12  ;;  %v816_v22 = vsel %vm796_vm1, 0.0, %v812_v17  ;;  %v3187_v3 = vsel %vm2791_vm15, %v839_v63, %v1881_v51 }
 0x167   : > { %1068 = vst [vmem:[#allocation9 + $0x12] sm:$0x3] %v3168_v29  ;;  %v1211_v36 = vsub.f32 %v1201_v53, %v1101_v50  ;;  %1218 = vst [vmem:[#allocation13 + $0x2] sm:$0x3] %v1208_v48  ;;  %v830_v10 = vadd.f32 %v826_v59, %v822_v44  ;;  %vm3617_vm10 = vcmp.eq.s32.totalorder %v3573_v25, 15  ;;  %vm3624_vm7 = vcmp.eq.s32.totalorder %v3573_v25, 0 }
 0x168   : > { %vm3180_vm13 = vcmp.lt.f32.partialorder %v3614_v0, %v3613_v31  ;;  %855 = vst [vmem:[#allocation6 + $0x2] sm:$0x3] %v3187_v3  ;;  %vm3618_vm15 = vmmov %vm3594_vm11  ;;  %v1089_v21 = vld [vmem:[#allocation10 + $0x4] sm:$0x3]  ;;  %v1090_v52 = vld [vmem:[#allocation10 + $0x6] sm:$0x3] }
 0x169   : > { %v808_v62 = vsel %vm3180_vm13, %v804_v54, %v3609_v24  ;;  %v820_v55 = vsel %vm3180_vm13, %v816_v22, %v3610_v40  ;;  %1221 = vst [vmem:[#allocation13 + $0x8] sm:$0x3] %v1211_v36  ;;  %v3210_v50 = vmul.f32 0.25, %v830_v10  ;;  %v3229_v12 = vld [vmem:[#allocation10 + $0xc] sm:$0x3]  ;;  %vm3625_vm0 = vcmp.eq.s32.totalorder %v3593_v15, 0  ;;  %vm3631_vm1 = vmmov %vm3624_vm7 }
 0x16a   : > { %v3198_v43 = vsel %vm3617_vm10, 0.0, %v808_v62  ;;  %v824_v23 = vmul.f32 %v808_v62, %v808_v62  ;;  %848 = vst [vmem:[#allocation4 + $0x4] sm:$0x3] %v808_v62  ;;  %v1070_v51 = vadd.f32 %v2898_v35, %v808_v62  ;;  %v828_v63 = vmul.f32 %v820_v55, %v820_v55  ;;  %852 = vst [vmem:[#allocation5 + $0x4] sm:$0x3] %v820_v55  ;;  %v3633_v15 = vld [vmem:[#allocation23_spill] sm:$0xff] (!%p1442_p3) }
 0x16b   : > { %1251 = vrot.lane.b32.xlu1 %v3198_v43, %s1682_s29  ;;  %v3205_v19 = vsel %vm3618_vm15, 0.0, %v820_v55  ;;  %v3208_v13 = vadd.f32 %v3089_v46, %v820_v55  ;;  %v1094_v48 = vld [vmem:[#allocation10 + $0xe] sm:$0x3]  ;;  %v3237_v44 = vld [vmem:[#allocation10 + $0x10] sm:$0x3]  ;;  %vm1377_vm10 = vcmask (!%p1442_p3), 1041408  }
 0x16c   : > { %v1071_v32 = vadd.f32 %v1070_v51, %v2919_v34  ;;  %v1073_v33 = vsub.f32 %v1070_v51, %v2857_v47  ;;  %v1075_v28 = vsub.f32 %v1070_v51, %v2898_v35  ;;  %v1109_v8 = vsub.f32 %v3003_v11, %v1070_v51  ;;  %v3224_v34 = vld [vmem:[#allocation10 + $0xa] sm:$0x3]  ;;  %v1096_v7 = vld [vmem:[#allocation10 + $0x12] sm:$0x3]  ;;  %v3242_v31 = vld [vmem:[#allocation7 + $0x4] sm:$0x3] }
 0x16d   : > { %v832_v5 = vadd.f32 %v828_v63, %v824_v23  ;;  %v3218_v57 = vadd.f32 %v3208_v13, %v2924_v58  ;;  %v1082_v16 = vsub.f32 %v3208_v13, %v3072_v20  ;;  %v1084_v41 = vsub.f32 %v3208_v13, %v3089_v46 }
 0x16e   : > { %v1074_v60 = vsub.f32 %v1071_v32, %v2857_v47  ;;  %v1076_v61 = vsub.f32 %v1071_v32, %v2898_v35  ;;  %v1077_v11 = vsub.f32 %v1071_v32, %v1070_v51  ;;  %v1110_v24 = vsub.f32 %v3013_v39, %v1071_v32 }
 0x16f   : > { %v1112_v58 = vsub.f32 %v3028_v49, %v1073_v33  ;;  %v1114_v40 = vsub.f32 %v3041_v26, %v1075_v28  ;;  %v1119_v17 = vmul.f32 0.22222222, %v1109_v8  ;;  %1288 = vrot.lane.b32.xlu1 %v3205_v19, %s1683_s30  ;;  %v3235_v53 = vmul.f32 0.25, %v832_v5 }
 0x170   : > { %v1113_v47 = vsub.f32 %v3034_v4, %v1074_v60  ;;  %v1115_v35 = vsub.f32 %v3047_v1, %v1076_v61  ;;  %v1116_v39 = vsub.f32 %v3079_v45, %v1077_v11  ;;  %v1120_v59 = vmul.f32 0.22222222, %v1110_v24 }
 0x171   : > { %v1122_v49 = vmul.f32 0.22222222, %v1112_v58  ;;  %v1124_v30 = vmul.f32 0.22222222, %v1114_v40  ;;  %v1129_v26 = vadd.f32 %v1119_v17, %v1089_v21  ;;  %v840_v54 = vsub.f32 %v3235_v53, %v3242_v31  ;;  %v3254_v17 = vld [vmem:[#allocation11 + $0x4] sm:$0x3] }
 0x172   : > { %v1123_v22 = vmul.f32 0.22222222, %v1113_v47  ;;  %v1125_v62 = vmul.f32 0.22222222, %v1115_v35  ;;  %v1126_v36 = vmul.f32 0.22222222, %v1116_v39  ;;  %v1130_v55 = vadd.f32 %v1120_v59, %v1090_v52 }
 0x173   : > { %v1132_v4 = vadd.f32 %v1122_v49, %v3224_v34  ;;  %v1134_v10 = vadd.f32 %v1124_v30, %v1094_v48  ;;  %v1169_v1 = vmul.f32 2.0, %v1129_v26  ;;  %1229 = vst [vmem:[#allocation10 + $0x4] sm:$0x3] %v1129_v26  ;;  %v1083_v45 = vsub.f32 %v3218_v57, %v3072_v20  ;;  %v1103_v30 = vld [vmem:[#allocation11 + $0xc] sm:$0x3] }
 0x174   : > { %v1133_v23 = vadd.f32 %v1123_v22, %v3229_v12  ;;  %v1135_v51 = vadd.f32 %v1125_v62, %v3237_v44  ;;  %v1136_v63 = vadd.f32 %v1126_v36, %v1096_v7  ;;  %v1170_v32 = vmul.f32 2.0, %v1130_v55  ;;  %1230 = vst [vmem:[#allocation10 + $0x6] sm:$0x3] %v1130_v55  ;;  %v1105_v26 = vld [vmem:[#allocation11 + $0x10] sm:$0x3] }
 0x175   : > { %v1172_v33 = vmul.f32 2.0, %v1132_v4  ;;  %v1174_v28 = vmul.f32 2.0, %v1134_v10  ;;  %v1179_v8 = vsub.f32 %v1169_v1, %v1089_v21  ;;  %1232 = vst [vmem:[#allocation10 + $0xa] sm:$0x3] %v1132_v4  ;;  %1234 = vst [vmem:[#allocation10 + $0xe] sm:$0x3] %v1134_v10  ;;  %v1085_v5 = vsub.f32 %v3218_v57, %v3089_v46 }
 0x176   : > { %v1173_v60 = vmul.f32 2.0, %v1133_v23  ;;  %v1175_v61 = vmul.f32 2.0, %v1135_v51  ;;  %v1176_v11 = vmul.f32 2.0, %v1136_v63  ;;  %v1180_v24 = vsub.f32 %v1170_v32, %v1090_v52  ;;  %1233 = vst [vmem:[#allocation10 + $0xc] sm:$0x3] %v1133_v23 }
 0x177   : > { %1235 = vst [vmem:[#allocation10 + $0x10] sm:$0x3] %v1135_v51  ;;  %1236 = vst [vmem:[#allocation10 + $0x12] sm:$0x3] %v1136_v63  ;;  %v1182_v58 = vsub.f32 %v1172_v33, %v3224_v34  ;;  %v1184_v40 = vsub.f32 %v1174_v28, %v1094_v48  ;;  %v3256_v21 = vld [vmem:[#allocation11 + $0x6] sm:$0x3]  ;;  %v1086_v47 = vsub.f32 %v3218_v57, %v3208_v13 }
 0x178   : > { %1189 = vst [vmem:[#allocation12 + $0x4] sm:$0x3] %v1179_v8  ;;  %v1139_v35 = vsub.f32 %v3123_v42, %v3208_v13  ;;  %v1183_v52 = vsub.f32 %v1173_v60, %v3229_v12  ;;  %v1185_v39 = vsub.f32 %v1175_v61, %v3237_v44  ;;  %v1186_v59 = vsub.f32 %v1176_v11, %v1096_v7  ;;  %v3264_v34 = vld [vmem:[#allocation11 + $0xa] sm:$0x3]  ;;  %v3266_v48 = vld [vmem:[#allocation11 + $0xe] sm:$0x3] }
 0x179   : > { %1190 = vst [vmem:[#allocation12 + $0x6] sm:$0x3] %v1180_v24  ;;  %v1140_v49 = vsub.f32 %v3129_v14, %v3218_v57  ;;  %1192 = vst [vmem:[#allocation12 + $0xa] sm:$0x3] %v1182_v58  ;;  %v1142_v42 = vsub.f32 %v3137_v38, %v1082_v16  ;;  %v1143_v12 = vsub.f32 %v3143_v37, %v1083_v45  ;;  %v1106_v14 = vld [vmem:[#allocation11 + $0x12] sm:$0x3] }
 0x17a   : > { %1194 = vst [vmem:[#allocation12 + $0xe] sm:$0x3] %v1184_v40  ;;  %v1144_v44 = vsub.f32 %v3149_v9, %v1084_v41  ;;  %v1145_v7 = vsub.f32 %v3156_v2, %v1085_v5  ;;  %1193 = vst [vmem:[#allocation12 + $0xc] sm:$0x3] %v1183_v52  ;;  %v1146_v57 = vsub.f32 %v3168_v29, %v1086_v47  ;;  %v1149_v22 = vmul.f32 0.22222222, %v1139_v35 }
 0x17b   : > { %1195 = vst [vmem:[#allocation12 + $0x10] sm:$0x3] %v1185_v39  ;;  %1196 = vst [vmem:[#allocation12 + $0x12] sm:$0x3] %v1186_v59  ;;  %v1150_v20 = vmul.f32 0.22222222, %v1140_v49  ;;  %v3290_v9 = vsel %vm3180_vm13, %v840_v54, %v3614_v0 }
 0x17c   : > { %v1643_v62 = vld [vmem:[#allocation7] sm:$0x3]  ;;  %v1152_v37 = vmul.f32 0.22222222, %v1142_v42  ;;  %v1153_v16 = vmul.f32 0.22222222, %v1143_v12  ;;  %v1159_v29 = vadd.f32 %v1149_v22, %v3254_v17  ;;  %v1322_v28 = vsub.f32 %v3290_v9, %v3187_v3  ;;  %vm3632_vm13 = vmmov %vm3625_vm0 }
 0x17d   : > { %v838_v38 = vsub.f32 %v3210_v50, %v1643_v62  ;;  %v1154_v46 = vmul.f32 0.22222222, %v1144_v44  ;;  %v1155_v2 = vmul.f32 0.22222222, %v1145_v7  ;;  %v1156_v13 = vmul.f32 0.22222222, %v1146_v57 }
 0x17e   : > { %v1160_v41 = vadd.f32 %v1150_v20, %v3256_v21  ;;  %856 = vst [vmem:[#allocation6 + $0x4] sm:$0x3] %v3290_v9  ;;  %v1162_v50 = vadd.f32 %v1152_v37, %v3264_v34  ;;  %v1163_v36 = vadd.f32 %v1153_v16, %v1103_v30  ;;  %v1199_v31 = vmul.f32 2.0, %v1159_v29  ;;  %1239 = vst [vmem:[#allocation11 + $0x4] sm:$0x3] %v1159_v29  ;;  %v3620_v58 = vld [vmem:[#allocation22_spill] sm:$0xff] }
 0x17f   : > { %v1164_v55 = vadd.f32 %v1154_v46, %v3266_v48  ;;  %v3300_v53 = vsel %vm2737_vm8, %v838_v38, %v1887_v56  ;;  %v1165_v0 = vadd.f32 %v1155_v2, %v1105_v26  ;;  %v1166_v18 = vadd.f32 %v1156_v13, %v1106_v14  ;;  %v3626_v44 = vld [vmem:[#allocation40_spill] sm:$0xff]  ;;  %v1324_v62 = vld [vmem:[#allocation2 + $0x2] sm:$0x3] }
 0x180   : > { %v1200_v54 = vmul.f32 2.0, %v1160_v41  ;;  %1240 = vst [vmem:[#allocation11 + $0x6] sm:$0x3] %v1160_v41  ;;  %854 = vst [vmem:[#allocation6] sm:$0x3] %v3300_v53  ;;  %v1202_v4 = vmul.f32 2.0, %v1162_v50  ;;  %v1321_v6 = vsub.f32 %v3187_v3, %v3300_v53  ;;  %v1209_v23 = vsub.f32 %v1199_v31, %v3254_v17 }
 0x181   : > { %v1203_v10 = vmul.f32 2.0, %v1163_v36  ;;  %v1204_v1 = vmul.f32 2.0, %v1164_v55  ;;  %1242 = vst [vmem:[#allocation11 + $0xa] sm:$0x3] %v1162_v50  ;;  %1243 = vst [vmem:[#allocation11 + $0xc] sm:$0x3] %v1163_v36 }
 0x182   : > { %1244 = vst [vmem:[#allocation11 + $0xe] sm:$0x3] %v1164_v55  ;;  %v1205_v56 = vmul.f32 2.0, %v1165_v0  ;;  %v1206_v45 = vmul.f32 2.0, %v1166_v18  ;;  %v1210_v51 = vsub.f32 %v1200_v54, %v3256_v21  ;;  %1245 = vst [vmem:[#allocation11 + $0x10] sm:$0x3] %v1165_v0  ;;  %v1212_v63 = vsub.f32 %v1202_v4, %v3264_v34 }
 0x183   : > { %1246 = vst [vmem:[#allocation11 + $0x12] sm:$0x3] %v1166_v18  ;;  %v1213_v32 = vsub.f32 %v1203_v10, %v1103_v30  ;;  %v1214_v33 = vsub.f32 %v1204_v1, %v3266_v48  ;;  %1219 = vst [vmem:[#allocation13 + $0x4] sm:$0x3] %v1209_v23  ;;  %vm3619_vm8 = vcmask 1047554   ;;  %vm1261_vm2 = vcmp.lt.s32.totalorder %v3620_v58, 16 }
 0x184   : > { %v1215_v8 = vsub.f32 %v1205_v56, %v1105_v26  ;;  %v1216_v5 = vsub.f32 %v1206_v45, %v1106_v14  ;;  %1220 = vst [vmem:[#allocation13 + $0x6] sm:$0x3] %v1210_v51  ;;  %1222 = vst [vmem:[#allocation13 + $0xa] sm:$0x3] %v1212_v63  ;;  %vm1298_vm14 = vcmp.lt.s32.totalorder %v3620_v58, 1 }
 0x185   : > { %1223 = vst [vmem:[#allocation13 + $0xc] sm:$0x3] %v1213_v32  ;;  %1224 = vst [vmem:[#allocation13 + $0xe] sm:$0x3] %v1214_v33  ;;  %v1325_v32 = vld [vmem:[#allocation2 + $0x4] sm:$0x3] }
 0x186   : > { %1225 = vst [vmem:[#allocation13 + $0x10] sm:$0x3] %v1215_v8  ;;  %1226 = vst [vmem:[#allocation13 + $0x12] sm:$0x3] %v1216_v5 }
 0x187   : > { %vm3621_vm3 = vmmov %vm3619_vm8 }
 0x188   : > { %vm3622_vm4 = vmmov %vm3621_vm3 }
 0x189   : > { %vm3623_vm5 = vmmov %vm3621_vm3 }
 0x18a   : > { %vm3627_vm9 = vmmov %vm3621_vm3 }
 0x18b   : > { %vm3628_vm11 = vmmov %vm3621_vm3 }
 0x18c   : > { %vm3629_vm12 = vmmov %vm3621_vm3 }
 0x18d   : > { %vm3630_vm6 = vmmov %vm3621_vm3 }
 0x1b7   : > { %v1250_v60 = vpop.permute.xlu0 %1249 }
 0x1b8   : > { %v1253_v61 = vrot.slane %v1250_v60, 6  ;;  %v1266_v17 = vrot.slane %v1250_v60, 7 }
 0x1ba   : > { %v1254_v11 = vsel %vm3619_vm8, %v1253_v61, %v1250_v60 }
 0x1bb   : > { %v1257_v24 = vrot.slane %v1254_v11, 6 }
 0x1bd   : > { %v1259_v40 = vsel %vm3621_vm3, %v1257_v24, %v1250_v60  ;;  %v3634_v24 = vld [vmem:[#allocation24_spill] sm:$0xff] (!%p1442_p3) }
 0x1be   : > { %v1270_v47 = vsel %vm1261_vm2, %v1259_v40, %v1266_v17  ;;  %v3635_v58 = vsub.f32 (!%p1442_p3), 0.0, %v3634_v24 }
 0x1bf   : > { %v1276_v39 = vrot.slane %v1270_v47, 1 }
 0x1c0   : > { %v1376_v3 = vand.u32 (!%p1442_p3), 2147483647, %v3635_v58 }
 0x1c1   : > { %v1280_v30 = vsel %vm3624_vm7, 0.0, %v1276_v39 }
 0x1c2   : > { %v1282_v12 = vsub.f32 %v2891_v27, %v1280_v30 }
 0x1ca   : > { %v1287_v21 = vpop.permute.xlu0 %1286 }
 0x1cb   : > { %v1290_v35 = vrot.slane %v1287_v21, 6  ;;  %v1303_v34 = vrot.slane %v1287_v21, 7 }
 0x1cd   : > { %v1291_v52 = vsel %vm3622_vm4, %v1290_v35, %v1287_v21 }
 0x1ce   : > { %v1294_v59 = vrot.slane %v1291_v52, 6  ;;  %v1383_v52 = vsel (!%p1442_p3), %vm1377_vm10, %v1376_v3, 0.0 }
 0x1d0   : > { %v1296_v48 = vsel %vm3623_vm5, %v1294_v59, %v1287_v21 }
 0x1d1   : > { %v1307_v49 = vsel %vm1298_vm14, %v1296_v48, %v1303_v34 }
 0x1d2   : > { %v1313_v26 = vrot.slane %v1307_v49, 1 }
 0x1d4   : > { %v1317_v42 = vsel %vm3625_vm0, 0.0, %v1313_v26 }
 0x1d5   : > { %v1319_v7 = vsub.f32 %v3626_v44, %v1317_v42 }
 0x1d7   : > { %v1327_v14 = vadd.f32 %v1319_v7, %v1282_v12 }
 0x1d9   : > { %v1329_v20 = vadd.f32 %v1327_v14, %v1321_v6 }
 0x1db   : > { %v1331_v37 = vmul.f32 0.16666667, %v1329_v20 }
 0x1dd   : > { %v1252_v57 = vpop.permute.xlu1 %1251  ;;  %v1333_v13 = vadd.f32 %v1331_v37, %v1324_v62 }
 0x1de   : > { %v1255_v22 = vrot.slane %v1252_v57, 6  ;;  %v1267_v2 = vrot.slane %v1252_v57, 7 }
 0x1df   : > { %v1335_v50 = vmax.f32 %v1333_v13, 0.0 }
 0x1e0   : > { %v1256_v38 = vsel %vm3627_vm9, %v1255_v22, %v1252_v57 }
 0x1e1   : > { %v1258_v16 = vrot.slane %v1256_v38, 6  ;;  %v1289_v46 = vpop.permute.xlu1 %1288  ;;  %v1337_v0 = vmin.f32 %v1335_v50, 1.0 }
 0x1e2   : > { %v1292_v29 = vrot.slane %v1289_v46, 6  ;;  %v1304_v18 = vrot.slane %v1289_v46, 7 }
 0x1e3   : > { %v1260_v41 = vsel %vm3628_vm11, %v1258_v16, %v1252_v57  ;;  %1340 = vst [vmem:[#allocation2 + $0x2] sm:$0x3] %v1337_v0  ;;  %v1343_v54 = vmul.f32 2.0, %v1337_v0 }
 0x1e4   : > { %v1271_v27 = vsel %vm1261_vm2, %v1260_v41, %v1267_v2  ;;  %v1293_v36 = vsel %vm3629_vm12, %v1292_v29, %v1289_v46 }
 0x1e5   : > { %v1277_v55 = vrot.slane %v1271_v27, 1  ;;  %v1295_v53 = vrot.slane %v1293_v36, 6  ;;  %v1346_v6 = vsub.f32 %v1343_v54, %v1324_v62 }
 0x1e7   : > { %v1297_v31 = vsel %vm3630_vm6, %v1295_v53, %v1289_v46  ;;  %v1281_v10 = vsel %vm3631_vm1, 0.0, %v1277_v55  ;;  %1350 = vst [vmem:[#allocation3 + $0x2] sm:$0x3] %v1346_v6 }
 0x1e8   : > { %v1308_v4 = vsel %vm1298_vm14, %v1297_v31, %v1304_v18  ;;  %v1283_v45 = vsub.f32 %v3198_v43, %v1281_v10  ;;  %v1370_v43 = vsub.f32 (!%p1442_p3), 1.0, %v3633_v15 }
 0x1e9   : > { %v1314_v1 = vrot.slane %v1308_v4, 1 }
 0x1ea   : > { %v1373_v9 = vand.u32 (!%p1442_p3), 2147483647, %v1370_v43 }
 0x1eb   : > { %v1318_v56 = vsel %vm3632_vm13, 0.0, %v1314_v1 }
 0x1ec   : > { %v1320_v23 = vsub.f32 %v3205_v19, %v1318_v56  ;;  %v1371_v19 = vsub.f32 (!%p1442_p3), %v1337_v0, %v1324_v62  ;;  %v1378_v17 = vsel (!%p1442_p3), %vm1377_vm10, %v1373_v9, 0.0 }
 0x1ee   : > { %v1328_v51 = vadd.f32 %v1320_v23, %v1283_v45 }
 0x1f0   : > { %v1330_v63 = vadd.f32 %v1328_v51, %v1322_v28  ;;  %v1374_v28 = vand.u32 (!%p1442_p3), 2147483647, %v1371_v19 }
 0x1f2   : > { %v1332_v33 = vmul.f32 0.16666667, %v1330_v63  ;;  %v1379_v21 = vsel (!%p1442_p3), %vm1377_vm10, %v1374_v28, 0.0 }
 0x1f3   : > { %v1380_v35 = vadd.f32 (!%p1442_p3), %v1379_v21, %v1378_v17 }
 0x1f4   : > { %v1334_v8 = vadd.f32 %v1332_v33, %v1325_v32 }
 0x1f6   : > { %v1336_v25 = vmax.f32 %v1334_v8, 0.0 }
 0x1f8   : > { %v1338_v5 = vmin.f32 %v1336_v25, 1.0  ;;  %1369 = sbr.rel (%p1442_p3) target bundleno = 724 (0x2d4), region = 36 }
 0x1fa   : > { %1341 = vst [vmem:[#allocation2 + $0x4] sm:$0x3] %v1338_v5  ;;  %v1344_v60 = vmul.f32 2.0, %v1338_v5  ;;  %v1372_v11 = vsub.f32 (!%p1442_p3), %v1338_v5, %v1325_v32 }
 0x1fc   : > { %v1347_v61 = vsub.f32 %v1344_v60, %v1325_v32  ;;  %v1375_v40 = vand.u32 (!%p1442_p3), 2147483647, %v1372_v11 }
 0x1fe   : > { %1351 = vst [vmem:[#allocation3 + $0x4] sm:$0x3] %v1347_v61  ;;  %v1381_v47 = vsel (!%p1442_p3), %vm1377_vm10, %v1375_v40, 0.0 }
 0x1ff   : > { %v1382_v39 = vadd.f32 %v1381_v47, %v1380_v35 }
 0x201   : > { %v1384_v59 = vadd.f32 %v1383_v52, %v1382_v39 }
 0x203   : > { %1385 = vadd.xlane.f32.xlu0 %v1384_v59 }
 0x290   : > { %v1386_v34 = vpop.xlane.xlu0 %1385 }
 0x291   : > { %v1387_v48 = vrot.slane %v1386_v34, 4 }
 0x293   : > { %v1388_v49 = vadd.f32 %v1387_v48, %v1386_v34 }
 0x295   : > { %v1389_v30 = vrot.slane %v1388_v49, 2 }
 0x297   : > { %v1390_v26 = vadd.f32 %v1389_v30, %v1388_v49 }
 0x299   : > { %v1391_v42 = vrot.slane %v1390_v26, 1 }
 0x29b   : > { %v1392_v12 = vadd.f32 %v1391_v42, %v1390_v26 }
 0x29d   : > { %1515 = vpush %v1392_v12 }
 0x2ce   : > { %s1516_s11 = spop %1515 }
 0x2cf   : > { %p1394_p4 = scmp.le.f32.partialorder %s1516_s11, 0.0512 }
 0x2d1   : > { %s1395_s12 = scalar_select %p1394_p4, 1, 0 }
 0x2d3   : > { %1396 = sst [smem:[#allocation14]] %s1395_s12 }
 0x2d4 PF: > { %s138_s0 = sadd.s32 1, %s1674_s0  }
 0x2d5   : > { %p135_p5 = scmp.ge.s32.totalorder %s138_s0, 12  }
 0x2d6   :  { %v1397_v44 = vld [vmem:[#allocation2] sm:$0xff] (%p135_p5)   ;;  %s1684_s13 = smov (%p135_p5), [#allocation17]  }
 0x2d7   :  { %137 = sbr.rel (!%p135_p5) target bundleno = 45 (0x2d), region = 56  ;;  %1401 = vst [vmem:[#allocation17] sm:$0xff] (%p135_p5), %v1397_v44   ;;  %s1410_s14 = sshll.u32 (%p135_p5), %s1684_s13, 4  ;;  %s1411_s14 = int_to_ptr.vmem [resolvable:$true] %s1410_s14 }
 0x2d8   :  { %s1644_s15 = scalar_lea.vmem (%p135_p5), %s1411_s14, 128  ;;  %p1649_p7 = scmp.lt.s32.totalorder (%p135_p5), %s1411_s14, %s1411_s14 }
 0x2d9   :  { %p1645_p6 = scmp.ne.s32.totalorder (%p135_p5), %s1411_s14, %s1644_s15  ;;  %p1650_p8 = scmp.lt.s32.totalorder (%p135_p5), %s1644_s15, %s1644_s15 }
 0x2db   :  { %p1651_p9 = por (%p135_p5), %p1650_p8, %p1649_p7 }
 0x2dd   :  { %p1652_p10 = pnand (%p135_p5), %p1651_p9, %p1645_p6 }
 0x2df   :  { %1655 = shalt.err (!%p1652_p10)
}
 0x2e0   :  { %s1656_s18 = scalar_lea.hbm %s3371_s5, 128 }
 0x2e1   :  { %p1657_p11 = scmp.ne.s32.totalorder %s3371_s5, %s1656_s18  ;;  %p1660_p12 = scmp.lt.u32.totalorder %s1656_s18, %s3371_s5 }
 0x2e3   :  { %p1662_p13 = pnand %p1660_p12, %p1657_p11 }
 0x2e5   :  { %1665 = shalt.err (!%p1662_p13)
}
 0x2e6   :  { %s1685_s21 = smov 32   ;;  %s1686_s22 = smov 2  }
 0x2e7   :  { %1416 = dma.vmem_to_hbm [thread:$0]  %s1411_s14, 128, %s3371_s5, [#allocation18], %s1685_s21, %s1685_s21, %s1686_s22  }
 0x2e8   :  { %1670 = dma.done.wait [#allocation18], 128  }
 0x2e9   :  { %1671 = vsyncadd [#allocation18], 4294967168 }
 0x2ea   :  { %1420 = vsyncpa [#allocation18], 1 }

</bundles_post_ra>
